<compile_context>
chip_gen: v7x
topology: tpu7x:2x2x1
jax: 0.10.0
libtpu: 0.0.40
codegen_flags: <defaults>
</compile_context>

<pallas_src>
import functools

import numpy as np
import jax
import jax.numpy as jnp
from jax.experimental import pallas as pl
from jax.experimental.pallas import tpu as pltpu


# ----------------------------------------------------------------------------
# helpers
# ----------------------------------------------------------------------------
def _layer_norm(x, w, b, eps=1e-5):
    # LayerNorm over last dim, biased variance (matches torch.nn.LayerNorm), f32.
    mu = jnp.mean(x, axis=-1, keepdims=True)
    var = jnp.mean((x - mu) ** 2, axis=-1, keepdims=True)
    return (x - mu) * jax.lax.rsqrt(var + eps) * w + b


# ----------------------------------------------------------------------------
# Pallas kernel: embedding + all encoder layers for one block of b_blk sequences
# ----------------------------------------------------------------------------
def fused_encoder_kernel(lengths_ref,                      # SMEM scalar prefetch (B,)
                         x_ref, cls_ref, pos_ref, emb_b_ref, emb_w_ref,
                         wq_ref, bq_ref, wk_ref, bk_ref, wv_ref, bv_ref,
                         wo_ref, bo_ref, ln1w_ref, ln1b_ref,
                         w1_ref, b1_ref, w2_ref, b2_ref, ln2w_ref, ln2b_ref,
                         o_ref,
                         ctx_ref, ctx_cls_ref,
                         *, b_blk, n_layers, n_heads, d_k, d_v):
    S_raw = x_ref.shape[1]
    S = S_raw + 1
    din = x_ref.shape[-1]
    scale = 1.0 / np.sqrt(d_k)
    mm_dtype = emb_w_ref.dtype                 # bf16 on v6e/v7x path, f32 otherwise
    g = pl.program_id(0)

    # ---- embedding of the whole block: one batched matmul (M = b_blk * S_raw) ----
    x_flat = x_ref[...].reshape(b_blk * S_raw, din).astype(mm_dtype)
    emb_flat = jnp.dot(x_flat, emb_w_ref[...], preferred_element_type=jnp.float32)
    # CLS embedding is batch-invariant: computed once per grid step.
    cls_emb = jnp.dot(cls_ref[...].astype(mm_dtype), emb_w_ref[...],
                      preferred_element_type=jnp.float32)                    # (1, D)

    # ---- per-sequence positional bias and additive key-pad bias (from SMEM lengths) ----
    row_idx = jax.lax.broadcasted_iota(jnp.int32, (S, 1), 0)
    col_idx = jax.lax.broadcasted_iota(jnp.int32, (1, S), 1)
    emb_b = emb_b_ref[...]                                                   # (1, D)
    pos_tbl = pos_ref[...]                                                   # (S, D)
    h_rows, kbias = [], []
    for bi in range(b_blk):
        clen = lengths_ref[g * b_blk + bi]
        # position[i] = i if i <= clen else 0  ->  select pos row vs pos row 0
        posb = jnp.where(row_idx <= clen, pos_tbl, pos_tbl[0:1, :]) + emb_b  # (S, D)
        raw = jnp.concatenate(
            [cls_emb, emb_flat[bi * S_raw:(bi + 1) * S_raw, :]], axis=0)     # (S, D)
        h_rows.append(raw + posb)
        # key-pad bias: -1e9 where key index > clen (CLS column 0 is never masked)
        kbias.append(jnp.where(col_idx > clen,
                               jnp.float32(-1e9), jnp.float32(0.0)))         # (1, S)
    h = jnp.concatenate(h_rows, axis=0)                                      # (b_blk*S, D) f32

    def softmax_ctx(qh, kh, vh, kb):
        # qh: (Sq, d_k), kh: (S, d_k), vh: (S, d_v); A.B^T via last/last contraction
        s = jax.lax.dot_general(qh, kh, (((1,), (1,)), ((), ())),
                                preferred_element_type=jnp.float32) * scale + kb
        s = s - jnp.max(s, axis=-1, keepdims=True)
        e = jnp.exp(s)
        inv = pl.reciprocal(jnp.sum(e, axis=-1, keepdims=True), approx=True)
        return jnp.dot(e * inv, vh, preferred_element_type=jnp.float32)

    def attention_full(hx, li):
        hm = hx.astype(mm_dtype)
        q = jnp.dot(hm, wq_ref[li], preferred_element_type=jnp.float32) + bq_ref[li]
        k = jnp.dot(hm, wk_ref[li], preferred_element_type=jnp.float32) + bk_ref[li]
        v = jnp.dot(hm, wv_ref[li], preferred_element_type=jnp.float32) + bv_ref[li]
        for bi in range(b_blk):
            r0, r1 = bi * S, (bi + 1) * S
            for hd in range(n_heads):
                # write each head's context into its fixed lane slice of the scratch
                ctx_ref[r0:r1, hd * d_v:(hd + 1) * d_v] = softmax_ctx(
                    q[r0:r1, hd * d_k:(hd + 1) * d_k],
                    k[r0:r1, hd * d_k:(hd + 1) * d_k],
                    v[r0:r1, hd * d_v:(hd + 1) * d_v],
                    kbias[bi])
        context = ctx_ref[...]                                               # (b_blk*S, H*d_v)
        attn_out = jnp.dot(context.astype(mm_dtype), wo_ref[li],
                           preferred_element_type=jnp.float32) + bo_ref[li]
        return _layer_norm(attn_out + hx, ln1w_ref[li], ln1b_ref[li])

    def ffn(y, li):
        # Conv1d(kernel_size=1) == dense matmul over the feature dim
        h1 = jnp.maximum(
            jnp.dot(y.astype(mm_dtype), w1_ref[li],
                    preferred_element_type=jnp.float32) + b1_ref[li], 0.0)
        z = jnp.dot(h1.astype(mm_dtype), w2_ref[li],
                    preferred_element_type=jnp.float32) + b2_ref[li]
        return _layer_norm(z + y, ln2w_ref[li], ln2b_ref[li])

    # all but the last layer: full sequence for the whole block
    for li in range(n_layers - 1):
        h = ffn(attention_full(h, li), li)

    # ---- last layer: only the CLS query row per sequence is consumed downstream ----
    li = n_layers - 1
    hm = h.astype(mm_dtype)
    q = jnp.dot(hm, wq_ref[li], preferred_element_type=jnp.float32) + bq_ref[li]
    k = jnp.dot(hm, wk_ref[li], preferred_element_type=jnp.float32) + bk_ref[li]
    v = jnp.dot(hm, wv_ref[li], preferred_element_type=jnp.float32) + bv_ref[li]
    for bi in range(b_blk):
        r0, r1 = bi * S, (bi + 1) * S
        for hd in range(n_heads):
            ctx_cls_ref[bi:bi + 1, hd * d_v:(hd + 1) * d_v] = softmax_ctx(
                q[r0:r0 + 1, hd * d_k:(hd + 1) * d_k],
                k[r0:r1, hd * d_k:(hd + 1) * d_k],
                v[r0:r1, hd * d_v:(hd + 1) * d_v],
                kbias[bi])
    context_cls = ctx_cls_ref[...]                                           # (b_blk, H*d_v)
    attn_cls = jnp.dot(context_cls.astype(mm_dtype), wo_ref[li],
                       preferred_element_type=jnp.float32) + bo_ref[li]
    h_cls = jnp.concatenate([h[bi * S:bi * S + 1, :] for bi in range(b_blk)], axis=0)
    y = _layer_norm(attn_cls + h_cls, ln1w_ref[li], ln1b_ref[li])            # (b_blk, D)
    out = ffn(y, li)                                                         # (b_blk, D)
    o_ref[...] = out[:, None, :].astype(o_ref.dtype)


# ----------------------------------------------------------------------------
# pallas_call wrapper
# ----------------------------------------------------------------------------
def fused_encoder_forward(x, lengths, pos_s, fused, *, n_layers, n_head, d_k, d_v,
                          b_blk=None):
    B, S_raw, Din = x.shape
    S = S_raw + 1
    D = pos_s.shape[-1]
    if b_blk is None:
        b_blk = B            # whole batch per step (v5e/v6e); use B//2 on v7x megacore
    assert B % b_blk == 0

    kernel = functools.partial(fused_encoder_kernel, b_blk=b_blk, n_layers=n_layers,
                               n_heads=n_head, d_k=d_k, d_v=d_v)

    resident = [fused["cls"], pos_s, fused["emb_b"], fused["emb_w_t"],
                fused["wq_t"], fused["bq"], fused["wk_t"], fused["bk"],
                fused["wv_t"], fused["bv"], fused["wo_t"], fused["bo"],
                fused["ln1_w"], fused["ln1_b"],
                fused["w1_t"], fused["b1"], fused["w2_t"], fused["b2"],
                fused["ln2_w"], fused["ln2_b"]]

    def full_spec(a):
        # full-array block with constant index -> DMA'd once, stays resident in VMEM
        nd = a.ndim
        return pl.BlockSpec(a.shape, lambda g, lens, _nd=nd: (0,) * _nd)

    in_specs = ([pl.BlockSpec((b_blk, S_raw, Din), lambda g, lens: (g, 0, 0))]
                + [full_spec(a) for a in resident])

    out = pl.pallas_call(
        kernel,
        out_shape=jax.ShapeDtypeStruct((B, 1, D), jnp.float32),
        grid_spec=pltpu.PrefetchScalarGridSpec(
            num_scalar_prefetch=1,                 # lengths -> SMEM, visible to index_maps
            grid=(B // b_blk,),
            in_specs=in_specs,
            out_specs=pl.BlockSpec((b_blk, 1, D), lambda g, lens: (g, 0, 0)),
            scratch_shapes=[pltpu.VMEM((b_blk * S, n_head * d_v), jnp.float32),
                            pltpu.VMEM((b_blk, n_head * d_v), jnp.float32)]),
        compiler_params=pltpu.CompilerParams(
            dimension_semantics=("parallel",)),    # v7x: batch blocks split across TCs
    )(lengths, x, *resident)
    return out[:, 0, :]


# ----------------------------------------------------------------------------
# Parameter construction (deterministic, synthetic) + one-time host prep
# ----------------------------------------------------------------------------
def get_sinusoid_encoding_table(n_position, d_hid):
    def cal_angle(position, hid_idx):
        return position / np.power(10000, 2 * (hid_idx // 2) / d_hid)
    tbl = np.array([[cal_angle(p, j) for j in range(d_hid)]
                    for p in range(n_position)], dtype=np.float64)
    tbl[:, 0::2] = np.sin(tbl[:, 0::2])
    tbl[:, 1::2] = np.cos(tbl[:, 1::2])
    return jnp.asarray(tbl, dtype=jnp.float32)


def init_params(key, *, len_max_seq, d_word_vec, n_layers, n_head,
                d_k, d_v, d_model, d_inner):
    assert d_word_vec == d_model, "positional encoding is added to the d_model embedding"
    n_position = len_max_seq + 1
    keys = jax.random.split(key, 2 + n_layers)

    def lin(k, out_f, in_f, scale=0.05):
        kw, kb = jax.random.split(k)
        w = jax.random.normal(kw, (out_f, in_f), jnp.float32) * scale   # torch layout
        b = jax.random.normal(kb, (1, out_f), jnp.float32) * scale
        return w, b

    params = {
        "CLS": jax.random.normal(keys[0], (300,), jnp.float32),
        "pos_table": get_sinusoid_encoding_table(n_position, d_word_vec),
    }
    params["emb_w"], params["emb_b"] = lin(keys[1], d_model, 300)

    layers = []
    for li in range(n_layers):
        lk = jax.random.split(keys[2 + li], 6)
        lp = {}
        lp["wq"], lp["bq"] = lin(lk[0], n_head * d_k, d_model)
        lp["wk"], lp["bk"] = lin(lk[1], n_head * d_k, d_model)
        lp["wv"], lp["bv"] = lin(lk[2], n_head * d_v, d_model)
        lp["wo"], lp["bo"] = lin(lk[3], d_model, n_head * d_v)
        lp["ln1_w"] = jnp.ones((1, d_model), jnp.float32)
        lp["ln1_b"] = jnp.zeros((1, d_model), jnp.float32)
        lp["w1"], lp["b1"] = lin(lk[4], d_inner, d_model)       # Conv1d(k=1) squeezed
        lp["w2"], lp["b2"] = lin(lk[5], d_model, d_inner)
        lp["ln2_w"] = jnp.ones((1, d_model), jnp.float32)
        lp["ln2_b"] = jnp.zeros((1, d_model), jnp.float32)
        layers.append(lp)
    params["layers"] = layers
    return params


def prepare_fused_params(params, matmul_dtype=jnp.float32):
    """One-time host prep: pre-transpose matmul weights to (in, out), stack per layer,
    and cast the matmul operands to `matmul_dtype` (bf16 path for v6e/v7x).  Biases,
    LayerNorm params and the positional table stay f32."""
    layers = params["layers"]

    def stack(name):
        return jnp.stack([lp[name] for lp in layers], axis=0)

    def stack_t(name):
        return jnp.stack([lp[name].T for lp in layers], axis=0).astype(matmul_dtype)

    return {
        "cls": params["CLS"][None, :].astype(matmul_dtype),        # (1, 300)
        "pos_table": params["pos_table"],                          # (n_pos, D) f32
        "emb_w_t": params["emb_w"].T.astype(matmul_dtype),         # (300, D)
        "emb_b": params["emb_b"],                                  # (1, D) f32
        "wq_t": stack_t("wq"), "bq": stack("bq"),
        "wk_t": stack_t("wk"), "bk": stack("bk"),
        "wv_t": stack_t("wv"), "bv": stack("bv"),
        "wo_t": stack_t("wo"), "bo": stack("bo"),
        "ln1_w": stack("ln1_w"), "ln1_b": stack("ln1_b"),
        "w1_t": stack_t("w1"), "b1": stack("b1"),
        "w2_t": stack_t("w2"), "b2": stack("b2"),
        "ln2_w": stack("ln2_w"), "ln2_b": stack("ln2_b"),
    }


# ----------------------------------------------------------------------------
# Full forward pass: everything (CLS concat, positions, mask, encoder) is in-kernel
# ----------------------------------------------------------------------------
def sentence_encoding_forward(fused, enc_inputs, max_length, lengths,
                              *, n_layers, n_head, d_k, d_v, b_blk=None):
    assert enc_inputs.shape[1] == max_length
    S = max_length + 1                                   # +1 for the CLS mark
    assert fused["pos_table"].shape[0] >= S
    pos_s = fused["pos_table"][:S]                       # static host slice
    x = enc_inputs.astype(fused["emb_w_t"].dtype)        # bf16 path halves x DMA
    # dropout (p=0.1) is identity in eval mode
    return fused_encoder_forward(x, lengths.astype(jnp.int32), pos_s, fused,
                                 n_layers=n_layers, n_head=n_head, d_k=d_k, d_v=d_v,
                                 b_blk=b_blk)


# ----------------------------------------------------------------------------
# Pure-JAX reference (mirrors the PyTorch module, for sanity check)
# ----------------------------------------------------------------------------
def reference_forward(params, enc_inputs, max_length, lengths, *, n_head, d_k, d_v):
    B = enc_inputs.shape[0]
    max_length = max_length + 1
    cls = jnp.broadcast_to(params["CLS"][None, None, :], (B, 1, 300))
    x = jnp.concatenate([cls, enc_inputs], axis=1)
    S = x.shape[1]
    idx = jnp.arange(max_length)[None, :]
    position = jnp.where(idx <= lengths[:, None], idx, 0)
    pos_emb = params["pos_table"][position]
    key_pad = (jnp.arange(S)[None, :] > lengths[:, None])
    mask = jnp.broadcast_to(key_pad[:, None, :], (B, S, S))

    enc = x @ params["emb_w"].T + params["emb_b"] + pos_emb
    for lp in params["layers"]:
        q = enc @ lp["wq"].T + lp["bq"]
        k = enc @ lp["wk"].T + lp["bk"]
        v = enc @ lp["wv"].T + lp["bv"]
        q = q.reshape(B, S, n_head, d_k).transpose(0, 2, 1, 3)
        k = k.reshape(B, S, n_head, d_k).transpose(0, 2, 1, 3)
        v = v.reshape(B, S, n_head, d_v).transpose(0, 2, 1, 3)
        scores = jnp.einsum("bhqd,bhkd->bhqk", q, k) / np.sqrt(d_k)
        scores = jnp.where(mask[:, None, :, :], -1e9, scores)
        attn = jax.nn.softmax(scores, axis=-1)
        ctx = jnp.einsum("bhqk,bhkd->bhqd", attn, v)
        ctx = ctx.transpose(0, 2, 1, 3).reshape(B, S, n_head * d_v)
        out = ctx @ lp["wo"].T + lp["bo"]
        y = _layer_norm(out + enc, lp["ln1_w"], lp["ln1_b"])
        h1 = jnp.maximum(y @ lp["w1"].T + lp["b1"], 0.0)
        z = h1 @ lp["w2"].T + lp["b2"]
        enc = _layer_norm(z + y, lp["ln2_w"], lp["ln2_b"])
    return enc[:, 0, :]


if __name__ == "__main__":
    # small config
    LEN_MAX_SEQ = 8
    D_MODEL = 32
    D_WORD_VEC = 32       # must equal d_model (added to src_emb output)
    N_LAYERS = 2
    N_HEAD = 2
    D_K = 16
    D_V = 16
    D_INNER = 64
    BATCH = 2
    SEQ = 8               # raw sequence length (before CLS)

    key = jax.random.PRNGKey(0)
    kp, kx = jax.random.split(key)
    params = init_params(kp, len_max_seq=LEN_MAX_SEQ, d_word_vec=D_WORD_VEC,
                         n_layers=N_LAYERS, n_head=N_HEAD, d_k=D_K, d_v=D_V,
                         d_model=D_MODEL, d_inner=D_INNER)

    enc_inputs = jax.random.normal(kx, (BATCH, SEQ, 300), jnp.float32)
    lengths = jnp.array([8, 5], dtype=jnp.int32)

    ref = jax.block_until_ready(
        reference_forward(params, enc_inputs, SEQ, lengths,
                          n_head=N_HEAD, d_k=D_K, d_v=D_V))

    # --- f32 path, whole batch per grid step (v5e/v6e default) ---
    fused32 = prepare_fused_params(params, jnp.float32)
    out = jax.block_until_ready(
        sentence_encoding_forward(fused32, enc_inputs, SEQ, lengths,
                                  n_layers=N_LAYERS, n_head=N_HEAD, d_k=D_K, d_v=D_V))
    assert out.shape == (BATCH, D_MODEL), out.shape
    assert bool(jnp.all(jnp.isfinite(out)))
    assert bool(jnp.allclose(out, ref, rtol=1e-2, atol=1e-2)), \
        float(jnp.max(jnp.abs(out - ref)))

    # --- f32 path, one sequence per grid step (v7x: batch blocks split across TCs) ---
    out_split = jax.block_until_ready(
        sentence_encoding_forward(fused32, enc_inputs, SEQ, lengths,
                                  n_layers=N_LAYERS, n_head=N_HEAD, d_k=D_K, d_v=D_V,
                                  b_blk=1))
    assert bool(jnp.allclose(out_split, ref, rtol=1e-2, atol=1e-2)), \
        float(jnp.max(jnp.abs(out_split - ref)))

    # --- bf16 matmul path (v6e/v7x): bf16 weights/activations in dots, f32 elsewhere ---
    fused16 = prepare_fused_params(params, jnp.bfloat16)
    out16 = jax.block_until_ready(
        sentence_encoding_forward(fused16, enc_inputs, SEQ, lengths,
                                  n_layers=N_LAYERS, n_head=N_HEAD, d_k=D_K, d_v=D_V))
    assert bool(jnp.all(jnp.isfinite(out16)))
    assert bool(jnp.allclose(out16, ref, rtol=1e-1, atol=1e-1)), \
        float(jnp.max(jnp.abs(out16 - ref)))

    print("KERNEL_OK")
</pallas_src>

<mosaic_0001>
module attributes {stable_mosaic.version = 11 : i64} {
  func.func @fused_encoder_kernel(%arg0: i32, %arg1: memref<2xi32, #tpu.memory_space<smem>>, %arg2: memref<2x8x300xf32, #tpu.memory_space<vmem>>, %arg3: memref<1x300xf32, #tpu.memory_space<vmem>>, %arg4: memref<9x32xf32, #tpu.memory_space<vmem>>, %arg5: memref<1x32xf32, #tpu.memory_space<vmem>>, %arg6: memref<300x32xf32, #tpu.memory_space<vmem>>, %arg7: memref<2x32x32xf32, #tpu.memory_space<vmem>>, %arg8: memref<2x1x32xf32, #tpu.memory_space<vmem>>, %arg9: memref<2x32x32xf32, #tpu.memory_space<vmem>>, %arg10: memref<2x1x32xf32, #tpu.memory_space<vmem>>, %arg11: memref<2x32x32xf32, #tpu.memory_space<vmem>>, %arg12: memref<2x1x32xf32, #tpu.memory_space<vmem>>, %arg13: memref<2x32x32xf32, #tpu.memory_space<vmem>>, %arg14: memref<2x1x32xf32, #tpu.memory_space<vmem>>, %arg15: memref<2x1x32xf32, #tpu.memory_space<vmem>>, %arg16: memref<2x1x32xf32, #tpu.memory_space<vmem>>, %arg17: memref<2x32x64xf32, #tpu.memory_space<vmem>>, %arg18: memref<2x1x64xf32, #tpu.memory_space<vmem>>, %arg19: memref<2x64x32xf32, #tpu.memory_space<vmem>>, %arg20: memref<2x1x32xf32, #tpu.memory_space<vmem>>, %arg21: memref<2x1x32xf32, #tpu.memory_space<vmem>>, %arg22: memref<2x1x32xf32, #tpu.memory_space<vmem>>, %arg23: memref<2x1x32xf32, #tpu.memory_space<vmem>>, %arg24: memref<18x32xf32, #tpu.memory_space<vmem>>, %arg25: memref<2x32xf32, #tpu.memory_space<vmem>>) attributes {dimension_semantics = [#tpu.dimension_semantics<parallel>], iteration_bounds = array<i64: 1>, scalar_prefetch = 1 : i64, scratch_operands = 2 : i64, tpu.core_type = #tpu.core_type<tc>, window_params = [{transform_indices = @transform_0, window_bounds = array<i64: 2, 8, 300>}, {pipeline_mode = #tpu.pipeline_mode<synchronous>, transform_indices = @transform_1, window_bounds = array<i64: 1, 300>}, {pipeline_mode = #tpu.pipeline_mode<synchronous>, transform_indices = @transform_2, window_bounds = array<i64: 9, 32>}, {pipeline_mode = #tpu.pipeline_mode<synchronous>, transform_indices = @transform_3, window_bounds = array<i64: 1, 32>}, {pipeline_mode = #tpu.pipeline_mode<synchronous>, transform_indices = @transform_4, window_bounds = array<i64: 300, 32>}, {pipeline_mode = #tpu.pipeline_mode<synchronous>, transform_indices = @transform_5, window_bounds = array<i64: 2, 32, 32>}, {pipeline_mode = #tpu.pipeline_mode<synchronous>, transform_indices = @transform_6, window_bounds = array<i64: 2, 1, 32>}, {pipeline_mode = #tpu.pipeline_mode<synchronous>, transform_indices = @transform_7, window_bounds = array<i64: 2, 32, 32>}, {pipeline_mode = #tpu.pipeline_mode<synchronous>, transform_indices = @transform_8, window_bounds = array<i64: 2, 1, 32>}, {pipeline_mode = #tpu.pipeline_mode<synchronous>, transform_indices = @transform_9, window_bounds = array<i64: 2, 32, 32>}, {pipeline_mode = #tpu.pipeline_mode<synchronous>, transform_indices = @transform_10, window_bounds = array<i64: 2, 1, 32>}, {pipeline_mode = #tpu.pipeline_mode<synchronous>, transform_indices = @transform_11, window_bounds = array<i64: 2, 32, 32>}, {pipeline_mode = #tpu.pipeline_mode<synchronous>, transform_indices = @transform_12, window_bounds = array<i64: 2, 1, 32>}, {pipeline_mode = #tpu.pipeline_mode<synchronous>, transform_indices = @transform_13, window_bounds = array<i64: 2, 1, 32>}, {pipeline_mode = #tpu.pipeline_mode<synchronous>, transform_indices = @transform_14, window_bounds = array<i64: 2, 1, 32>}, {pipeline_mode = #tpu.pipeline_mode<synchronous>, transform_indices = @transform_15, window_bounds = array<i64: 2, 32, 64>}, {pipeline_mode = #tpu.pipeline_mode<synchronous>, transform_indices = @transform_16, window_bounds = array<i64: 2, 1, 64>}, {pipeline_mode = #tpu.pipeline_mode<synchronous>, transform_indices = @transform_17, window_bounds = array<i64: 2, 64, 32>}, {pipeline_mode = #tpu.pipeline_mode<synchronous>, transform_indices = @transform_18, window_bounds = array<i64: 2, 1, 32>}, {pipeline_mode = #tpu.pipeline_mode<synchronous>, transform_indices = @transform_19, window_bounds = array<i64: 2, 1, 32>}, {pipeline_mode = #tpu.pipeline_mode<synchronous>, transform_indices = @transform_20, window_bounds = array<i64: 2, 1, 32>}, {transform_indices = @transform_21, window_bounds = array<i64: 2, 1, 32>}]} {
    %c0 = arith.constant 0 : index
    %c0_0 = arith.constant 0 : index
    %c0_1 = arith.constant 0 : index
    %0 = vector.load %arg2[%c0, %c0_0, %c0_1] : memref<2x8x300xf32, #tpu.memory_space<vmem>>, vector<2x8x300xf32>
    %1 = vector.shape_cast %0 : vector<2x8x300xf32> to vector<16x300xf32>
    %c0_2 = arith.constant 0 : index
    %c0_3 = arith.constant 0 : index
    %2 = vector.load %arg6[%c0_2, %c0_3] : memref<300x32xf32, #tpu.memory_space<vmem>>, vector<300x32xf32>
    %cst = arith.constant dense<0.000000e+00> : vector<16x32xf32>
    %3 = tpu.matmul %1, %2, %cst {dimension_numbers = #tpu.dot_dimension_numbers<[1], [0], [0], [1], [0, 0, 1, 1], [], []>} : vector<16x300xf32>, vector<300x32xf32>, vector<16x32xf32> -> vector<16x32xf32>
    %c0_4 = arith.constant 0 : index
    %c0_5 = arith.constant 0 : index
    %4 = vector.load %arg3[%c0_4, %c0_5] : memref<1x300xf32, #tpu.memory_space<vmem>>, vector<1x300xf32>
    %c0_6 = arith.constant 0 : index
    %c0_7 = arith.constant 0 : index
    %5 = vector.load %arg6[%c0_6, %c0_7] : memref<300x32xf32, #tpu.memory_space<vmem>>, vector<300x32xf32>
    %cst_8 = arith.constant dense<0.000000e+00> : vector<1x32xf32>
    %6 = tpu.matmul %4, %5, %cst_8 {dimension_numbers = #tpu.dot_dimension_numbers<[1], [0], [0], [1], [0, 0, 1, 1], [], []>} : vector<1x300xf32>, vector<300x32xf32>, vector<1x32xf32> -> vector<1x32xf32>
    %7 = tpu.iota {dimensions = array<i32: 0>} : vector<9x1xi32>
    %8 = tpu.iota {dimensions = array<i32: 1>} : vector<1x9xi32>
    %c0_9 = arith.constant 0 : index
    %c0_10 = arith.constant 0 : index
    %9 = vector.load %arg5[%c0_9, %c0_10] : memref<1x32xf32, #tpu.memory_space<vmem>>, vector<1x32xf32>
    %c0_11 = arith.constant 0 : index
    %c0_12 = arith.constant 0 : index
    %10 = vector.load %arg4[%c0_11, %c0_12] : memref<9x32xf32, #tpu.memory_space<vmem>>, vector<9x32xf32>
    %c2_i32 = arith.constant 2 : i32
    %11 = arith.muli %arg0, %c2_i32 : i32
    %c0_i32 = arith.constant 0 : i32
    %12 = arith.addi %11, %c0_i32 : i32
    %13 = arith.index_cast %12 : i32 to index
    %14 = memref.load %arg1[%13] : memref<2xi32, #tpu.memory_space<smem>>
    %15 = vector.broadcast %14 : i32 to vector<9x1xi32>
    %16 = arith.cmpi sle, %7, %15 : vector<9x1xi32>
    %17 = vector.extract_strided_slice %10 {offsets = [0, 0], sizes = [1, 32], strides = [1, 1]} : vector<9x32xf32> to vector<1x32xf32>
    %18 = vector.shape_cast %16 : vector<9x1xi1> to vector<9x1xi1>
    %19 = vector.broadcast %18 : vector<9x1xi1> to vector<9x32xi1>
    %20 = vector.shape_cast %17 : vector<1x32xf32> to vector<1x32xf32>
    %21 = vector.broadcast %20 : vector<1x32xf32> to vector<9x32xf32>
    %22 = arith.select %19, %10, %21 : vector<9x32xi1>, vector<9x32xf32>
    %23 = vector.broadcast %9 : vector<1x32xf32> to vector<9x32xf32>
    %24 = arith.addf %22, %23 : vector<9x32xf32>
    %25 = vector.extract_strided_slice %3 {offsets = [0, 0], sizes = [8, 32], strides = [1, 1]} : vector<16x32xf32> to vector<8x32xf32>
    %26 = tpu.concatenate %6, %25 in 0 : vector<1x32xf32>, vector<8x32xf32> -> vector<9x32xf32>
    %27 = arith.addf %26, %24 : vector<9x32xf32>
    %28 = vector.broadcast %14 : i32 to vector<1x9xi32>
    %29 = arith.cmpi sgt, %8, %28 : vector<1x9xi32>
    %cst_13 = arith.constant -1.000000e+09 : f32
    %cst_14 = arith.constant 0.000000e+00 : f32
    %30 = vector.broadcast %cst_13 : f32 to vector<1x9xf32>
    %31 = vector.broadcast %cst_14 : f32 to vector<1x9xf32>
    %32 = arith.select %29, %30, %31 : vector<1x9xi1>, vector<1x9xf32>
    %c2_i32_15 = arith.constant 2 : i32
    %33 = arith.muli %arg0, %c2_i32_15 : i32
    %c1_i32 = arith.constant 1 : i32
    %34 = arith.addi %33, %c1_i32 : i32
    %35 = arith.index_cast %34 : i32 to index
    %36 = memref.load %arg1[%35] : memref<2xi32, #tpu.memory_space<smem>>
    %37 = vector.broadcast %36 : i32 to vector<9x1xi32>
    %38 = arith.cmpi sle, %7, %37 : vector<9x1xi32>
    %39 = vector.extract_strided_slice %10 {offsets = [0, 0], sizes = [1, 32], strides = [1, 1]} : vector<9x32xf32> to vector<1x32xf32>
    %40 = vector.shape_cast %38 : vector<9x1xi1> to vector<9x1xi1>
    %41 = vector.broadcast %40 : vector<9x1xi1> to vector<9x32xi1>
    %42 = vector.shape_cast %39 : vector<1x32xf32> to vector<1x32xf32>
    %43 = vector.broadcast %42 : vector<1x32xf32> to vector<9x32xf32>
    %44 = arith.select %41, %10, %43 : vector<9x32xi1>, vector<9x32xf32>
    %45 = vector.broadcast %9 : vector<1x32xf32> to vector<9x32xf32>
    %46 = arith.addf %44, %45 : vector<9x32xf32>
    %47 = vector.extract_strided_slice %3 {offsets = [8, 0], sizes = [8, 32], strides = [1, 1]} : vector<16x32xf32> to vector<8x32xf32>
    %48 = tpu.concatenate %6, %47 in 0 : vector<1x32xf32>, vector<8x32xf32> -> vector<9x32xf32>
    %49 = arith.addf %48, %46 : vector<9x32xf32>
    %50 = vector.broadcast %36 : i32 to vector<1x9xi32>
    %51 = arith.cmpi sgt, %8, %50 : vector<1x9xi32>
    %cst_16 = arith.constant -1.000000e+09 : f32
    %cst_17 = arith.constant 0.000000e+00 : f32
    %52 = vector.broadcast %cst_16 : f32 to vector<1x9xf32>
    %53 = vector.broadcast %cst_17 : f32 to vector<1x9xf32>
    %54 = arith.select %51, %52, %53 : vector<1x9xi1>, vector<1x9xf32>
    %55 = tpu.concatenate %27, %49 in 0 : vector<9x32xf32>, vector<9x32xf32> -> vector<18x32xf32>
    %c0_18 = arith.constant 0 : index
    %c0_19 = arith.constant 0 : index
    %c0_20 = arith.constant 0 : index
    %56 = vector.load %arg7[%c0_18, %c0_19, %c0_20] : memref<2x32x32xf32, #tpu.memory_space<vmem>>, vector<1x32x32xf32>
    %57 = vector.shape_cast %56 : vector<1x32x32xf32> to vector<32x32xf32>
    %cst_21 = arith.constant dense<0.000000e+00> : vector<18x32xf32>
    %58 = tpu.matmul %55, %57, %cst_21 {dimension_numbers = #tpu.dot_dimension_numbers<[1], [0], [0], [1], [0, 0, 1, 1], [], []>} : vector<18x32xf32>, vector<32x32xf32>, vector<18x32xf32> -> vector<18x32xf32>
    %c0_22 = arith.constant 0 : index
    %c0_23 = arith.constant 0 : index
    %c0_24 = arith.constant 0 : index
    %59 = vector.load %arg8[%c0_22, %c0_23, %c0_24] : memref<2x1x32xf32, #tpu.memory_space<vmem>>, vector<1x1x32xf32>
    %60 = vector.shape_cast %59 : vector<1x1x32xf32> to vector<1x32xf32>
    %61 = vector.broadcast %60 : vector<1x32xf32> to vector<18x32xf32>
    %62 = arith.addf %58, %61 : vector<18x32xf32>
    %c0_25 = arith.constant 0 : index
    %c0_26 = arith.constant 0 : index
    %c0_27 = arith.constant 0 : index
    %63 = vector.load %arg9[%c0_25, %c0_26, %c0_27] : memref<2x32x32xf32, #tpu.memory_space<vmem>>, vector<1x32x32xf32>
    %64 = vector.shape_cast %63 : vector<1x32x32xf32> to vector<32x32xf32>
    %cst_28 = arith.constant dense<0.000000e+00> : vector<18x32xf32>
    %65 = tpu.matmul %55, %64, %cst_28 {dimension_numbers = #tpu.dot_dimension_numbers<[1], [0], [0], [1], [0, 0, 1, 1], [], []>} : vector<18x32xf32>, vector<32x32xf32>, vector<18x32xf32> -> vector<18x32xf32>
    %c0_29 = arith.constant 0 : index
    %c0_30 = arith.constant 0 : index
    %c0_31 = arith.constant 0 : index
    %66 = vector.load %arg10[%c0_29, %c0_30, %c0_31] : memref<2x1x32xf32, #tpu.memory_space<vmem>>, vector<1x1x32xf32>
    %67 = vector.shape_cast %66 : vector<1x1x32xf32> to vector<1x32xf32>
    %68 = vector.broadcast %67 : vector<1x32xf32> to vector<18x32xf32>
    %69 = arith.addf %65, %68 : vector<18x32xf32>
    %c0_32 = arith.constant 0 : index
    %c0_33 = arith.constant 0 : index
    %c0_34 = arith.constant 0 : index
    %70 = vector.load %arg11[%c0_32, %c0_33, %c0_34] : memref<2x32x32xf32, #tpu.memory_space<vmem>>, vector<1x32x32xf32>
    %71 = vector.shape_cast %70 : vector<1x32x32xf32> to vector<32x32xf32>
    %cst_35 = arith.constant dense<0.000000e+00> : vector<18x32xf32>
    %72 = tpu.matmul %55, %71, %cst_35 {dimension_numbers = #tpu.dot_dimension_numbers<[1], [0], [0], [1], [0, 0, 1, 1], [], []>} : vector<18x32xf32>, vector<32x32xf32>, vector<18x32xf32> -> vector<18x32xf32>
    %c0_36 = arith.constant 0 : index
    %c0_37 = arith.constant 0 : index
    %c0_38 = arith.constant 0 : index
    %73 = vector.load %arg12[%c0_36, %c0_37, %c0_38] : memref<2x1x32xf32, #tpu.memory_space<vmem>>, vector<1x1x32xf32>
    %74 = vector.shape_cast %73 : vector<1x1x32xf32> to vector<1x32xf32>
    %75 = vector.broadcast %74 : vector<1x32xf32> to vector<18x32xf32>
    %76 = arith.addf %72, %75 : vector<18x32xf32>
    %77 = vector.extract_strided_slice %62 {offsets = [0, 0], sizes = [9, 16], strides = [1, 1]} : vector<18x32xf32> to vector<9x16xf32>
    %78 = vector.extract_strided_slice %69 {offsets = [0, 0], sizes = [9, 16], strides = [1, 1]} : vector<18x32xf32> to vector<9x16xf32>
    %79 = vector.extract_strided_slice %76 {offsets = [0, 0], sizes = [9, 16], strides = [1, 1]} : vector<18x32xf32> to vector<9x16xf32>
    %cst_39 = arith.constant dense<0.000000e+00> : vector<9x9xf32>
    %80 = tpu.matmul %77, %78, %cst_39 {dimension_numbers = #tpu.dot_dimension_numbers<[1], [1], [0], [0], [0, 0, 1, 0], [], []>} : vector<9x16xf32>, vector<9x16xf32>, vector<9x9xf32> -> vector<9x9xf32>
    %cst_40 = arith.constant 2.500000e-01 : f32
    %81 = vector.broadcast %cst_40 : f32 to vector<9x9xf32>
    %82 = arith.mulf %80, %81 : vector<9x9xf32>
    %83 = vector.broadcast %32 : vector<1x9xf32> to vector<9x9xf32>
    %84 = arith.addf %82, %83 : vector<9x9xf32>
    %cst_41 = arith.constant dense<0xFF800000> : vector<9xf32>
    %85 = vector.multi_reduction <maximumf>, %84, %cst_41 [1] : vector<9x9xf32> to vector<9xf32>
    %86 = vector.shape_cast %85 : vector<9xf32> to vector<9x1xf32>
    %87 = vector.broadcast %86 : vector<9x1xf32> to vector<9x9xf32>
    %88 = arith.subf %84, %87 : vector<9x9xf32>
    %89 = math.exp %88 : vector<9x9xf32>
    %cst_42 = arith.constant dense<0.000000e+00> : vector<9xf32>
    %90 = vector.multi_reduction <add>, %89, %cst_42 [1] : vector<9x9xf32> to vector<9xf32>
    %91 = vector.shape_cast %90 : vector<9xf32> to vector<9x1xf32>
    %92 = tpu.reciprocal %91 {approx = true} : vector<9x1xf32> -> vector<9x1xf32>
    %93 = vector.broadcast %92 : vector<9x1xf32> to vector<9x9xf32>
    %94 = arith.mulf %89, %93 : vector<9x9xf32>
    %cst_43 = arith.constant dense<0.000000e+00> : vector<9x16xf32>
    %95 = tpu.matmul %94, %79, %cst_43 {dimension_numbers = #tpu.dot_dimension_numbers<[1], [0], [0], [1], [0, 0, 1, 1], [], []>} : vector<9x9xf32>, vector<9x16xf32>, vector<9x16xf32> -> vector<9x16xf32>
    %c0_44 = arith.constant 0 : index
    %c0_45 = arith.constant 0 : index
    %96 = vector.load %arg24[%c0_44, %c0_45] : memref<18x32xf32, #tpu.memory_space<vmem>>, vector<9x16xf32>
    tpu.vector_store %arg24[%c0_44, %c0_45], %95 {strides = array<i32>} : memref<18x32xf32, #tpu.memory_space<vmem>>, vector<9x16xf32>,
    %97 = vector.extract_strided_slice %62 {offsets = [0, 16], sizes = [9, 16], strides = [1, 1]} : vector<18x32xf32> to vector<9x16xf32>
    %98 = vector.extract_strided_slice %69 {offsets = [0, 16], sizes = [9, 16], strides = [1, 1]} : vector<18x32xf32> to vector<9x16xf32>
    %99 = vector.extract_strided_slice %76 {offsets = [0, 16], sizes = [9, 16], strides = [1, 1]} : vector<18x32xf32> to vector<9x16xf32>
    %cst_46 = arith.constant dense<0.000000e+00> : vector<9x9xf32>
    %100 = tpu.matmul %97, %98, %cst_46 {dimension_numbers = #tpu.dot_dimension_numbers<[1], [1], [0], [0], [0, 0, 1, 0], [], []>} : vector<9x16xf32>, vector<9x16xf32>, vector<9x9xf32> -> vector<9x9xf32>
    %cst_47 = arith.constant 2.500000e-01 : f32
    %101 = vector.broadcast %cst_47 : f32 to vector<9x9xf32>
    %102 = arith.mulf %100, %101 : vector<9x9xf32>
    %103 = vector.broadcast %32 : vector<1x9xf32> to vector<9x9xf32>
    %104 = arith.addf %102, %103 : vector<9x9xf32>
    %cst_48 = arith.constant dense<0xFF800000> : vector<9xf32>
    %105 = vector.multi_reduction <maximumf>, %104, %cst_48 [1] : vector<9x9xf32> to vector<9xf32>
    %106 = vector.shape_cast %105 : vector<9xf32> to vector<9x1xf32>
    %107 = vector.broadcast %106 : vector<9x1xf32> to vector<9x9xf32>
    %108 = arith.subf %104, %107 : vector<9x9xf32>
    %109 = math.exp %108 : vector<9x9xf32>
    %cst_49 = arith.constant dense<0.000000e+00> : vector<9xf32>
    %110 = vector.multi_reduction <add>, %109, %cst_49 [1] : vector<9x9xf32> to vector<9xf32>
    %111 = vector.shape_cast %110 : vector<9xf32> to vector<9x1xf32>
    %112 = tpu.reciprocal %111 {approx = true} : vector<9x1xf32> -> vector<9x1xf32>
    %113 = vector.broadcast %112 : vector<9x1xf32> to vector<9x9xf32>
    %114 = arith.mulf %109, %113 : vector<9x9xf32>
    %cst_50 = arith.constant dense<0.000000e+00> : vector<9x16xf32>
    %115 = tpu.matmul %114, %99, %cst_50 {dimension_numbers = #tpu.dot_dimension_numbers<[1], [0], [0], [1], [0, 0, 1, 1], [], []>} : vector<9x9xf32>, vector<9x16xf32>, vector<9x16xf32> -> vector<9x16xf32>
    %c0_51 = arith.constant 0 : index
    %c16 = arith.constant 16 : index
    %116 = vector.load %arg24[%c0_51, %c16] : memref<18x32xf32, #tpu.memory_space<vmem>>, vector<9x16xf32>
    tpu.vector_store %arg24[%c0_51, %c16], %115 {strides = array<i32>} : memref<18x32xf32, #tpu.memory_space<vmem>>, vector<9x16xf32>,
    %117 = vector.extract_strided_slice %62 {offsets = [9, 0], sizes = [9, 16], strides = [1, 1]} : vector<18x32xf32> to vector<9x16xf32>
    %118 = vector.extract_strided_slice %69 {offsets = [9, 0], sizes = [9, 16], strides = [1, 1]} : vector<18x32xf32> to vector<9x16xf32>
    %119 = vector.extract_strided_slice %76 {offsets = [9, 0], sizes = [9, 16], strides = [1, 1]} : vector<18x32xf32> to vector<9x16xf32>
    %cst_52 = arith.constant dense<0.000000e+00> : vector<9x9xf32>
    %120 = tpu.matmul %117, %118, %cst_52 {dimension_numbers = #tpu.dot_dimension_numbers<[1], [1], [0], [0], [0, 0, 1, 0], [], []>} : vector<9x16xf32>, vector<9x16xf32>, vector<9x9xf32> -> vector<9x9xf32>
    %cst_53 = arith.constant 2.500000e-01 : f32
    %121 = vector.broadcast %cst_53 : f32 to vector<9x9xf32>
    %122 = arith.mulf %120, %121 : vector<9x9xf32>
    %123 = vector.broadcast %54 : vector<1x9xf32> to vector<9x9xf32>
    %124 = arith.addf %122, %123 : vector<9x9xf32>
    %cst_54 = arith.constant dense<0xFF800000> : vector<9xf32>
    %125 = vector.multi_reduction <maximumf>, %124, %cst_54 [1] : vector<9x9xf32> to vector<9xf32>
    %126 = vector.shape_cast %125 : vector<9xf32> to vector<9x1xf32>
    %127 = vector.broadcast %126 : vector<9x1xf32> to vector<9x9xf32>
    %128 = arith.subf %124, %127 : vector<9x9xf32>
    %129 = math.exp %128 : vector<9x9xf32>
    %cst_55 = arith.constant dense<0.000000e+00> : vector<9xf32>
    %130 = vector.multi_reduction <add>, %129, %cst_55 [1] : vector<9x9xf32> to vector<9xf32>
    %131 = vector.shape_cast %130 : vector<9xf32> to vector<9x1xf32>
    %132 = tpu.reciprocal %131 {approx = true} : vector<9x1xf32> -> vector<9x1xf32>
    %133 = vector.broadcast %132 : vector<9x1xf32> to vector<9x9xf32>
    %134 = arith.mulf %129, %133 : vector<9x9xf32>
    %cst_56 = arith.constant dense<0.000000e+00> : vector<9x16xf32>
    %135 = tpu.matmul %134, %119, %cst_56 {dimension_numbers = #tpu.dot_dimension_numbers<[1], [0], [0], [1], [0, 0, 1, 1], [], []>} : vector<9x9xf32>, vector<9x16xf32>, vector<9x16xf32> -> vector<9x16xf32>
    %c9 = arith.constant 9 : index
    %c0_57 = arith.constant 0 : index
    %136 = vector.load %arg24[%c9, %c0_57] : memref<18x32xf32, #tpu.memory_space<vmem>>, vector<9x16xf32>
    tpu.vector_store %arg24[%c9, %c0_57], %135 {strides = array<i32>} : memref<18x32xf32, #tpu.memory_space<vmem>>, vector<9x16xf32>,
    %137 = vector.extract_strided_slice %62 {offsets = [9, 16], sizes = [9, 16], strides = [1, 1]} : vector<18x32xf32> to vector<9x16xf32>
    %138 = vector.extract_strided_slice %69 {offsets = [9, 16], sizes = [9, 16], strides = [1, 1]} : vector<18x32xf32> to vector<9x16xf32>
    %139 = vector.extract_strided_slice %76 {offsets = [9, 16], sizes = [9, 16], strides = [1, 1]} : vector<18x32xf32> to vector<9x16xf32>
    %cst_58 = arith.constant dense<0.000000e+00> : vector<9x9xf32>
    %140 = tpu.matmul %137, %138, %cst_58 {dimension_numbers = #tpu.dot_dimension_numbers<[1], [1], [0], [0], [0, 0, 1, 0], [], []>} : vector<9x16xf32>, vector<9x16xf32>, vector<9x9xf32> -> vector<9x9xf32>
    %cst_59 = arith.constant 2.500000e-01 : f32
    %141 = vector.broadcast %cst_59 : f32 to vector<9x9xf32>
    %142 = arith.mulf %140, %141 : vector<9x9xf32>
    %143 = vector.broadcast %54 : vector<1x9xf32> to vector<9x9xf32>
    %144 = arith.addf %142, %143 : vector<9x9xf32>
    %cst_60 = arith.constant dense<0xFF800000> : vector<9xf32>
    %145 = vector.multi_reduction <maximumf>, %144, %cst_60 [1] : vector<9x9xf32> to vector<9xf32>
    %146 = vector.shape_cast %145 : vector<9xf32> to vector<9x1xf32>
    %147 = vector.broadcast %146 : vector<9x1xf32> to vector<9x9xf32>
    %148 = arith.subf %144, %147 : vector<9x9xf32>
    %149 = math.exp %148 : vector<9x9xf32>
    %cst_61 = arith.constant dense<0.000000e+00> : vector<9xf32>
    %150 = vector.multi_reduction <add>, %149, %cst_61 [1] : vector<9x9xf32> to vector<9xf32>
    %151 = vector.shape_cast %150 : vector<9xf32> to vector<9x1xf32>
    %152 = tpu.reciprocal %151 {approx = true} : vector<9x1xf32> -> vector<9x1xf32>
    %153 = vector.broadcast %152 : vector<9x1xf32> to vector<9x9xf32>
    %154 = arith.mulf %149, %153 : vector<9x9xf32>
    %cst_62 = arith.constant dense<0.000000e+00> : vector<9x16xf32>
    %155 = tpu.matmul %154, %139, %cst_62 {dimension_numbers = #tpu.dot_dimension_numbers<[1], [0], [0], [1], [0, 0, 1, 1], [], []>} : vector<9x9xf32>, vector<9x16xf32>, vector<9x16xf32> -> vector<9x16xf32>
    %c9_63 = arith.constant 9 : index
    %c16_64 = arith.constant 16 : index
    %156 = vector.load %arg24[%c9_63, %c16_64] : memref<18x32xf32, #tpu.memory_space<vmem>>, vector<9x16xf32>
    tpu.vector_store %arg24[%c9_63, %c16_64], %155 {strides = array<i32>} : memref<18x32xf32, #tpu.memory_space<vmem>>, vector<9x16xf32>,
    %c0_65 = arith.constant 0 : index
    %c0_66 = arith.constant 0 : index
    %157 = vector.load %arg24[%c0_65, %c0_66] : memref<18x32xf32, #tpu.memory_space<vmem>>, vector<18x32xf32>
    %c0_67 = arith.constant 0 : index
    %c0_68 = arith.constant 0 : index
    %c0_69 = arith.constant 0 : index
    %158 = vector.load %arg13[%c0_67, %c0_68, %c0_69] : memref<2x32x32xf32, #tpu.memory_space<vmem>>, vector<1x32x32xf32>
    %159 = vector.shape_cast %158 : vector<1x32x32xf32> to vector<32x32xf32>
    %cst_70 = arith.constant dense<0.000000e+00> : vector<18x32xf32>
    %160 = tpu.matmul %157, %159, %cst_70 {dimension_numbers = #tpu.dot_dimension_numbers<[1], [0], [0], [1], [0, 0, 1, 1], [], []>} : vector<18x32xf32>, vector<32x32xf32>, vector<18x32xf32> -> vector<18x32xf32>
    %c0_71 = arith.constant 0 : index
    %c0_72 = arith.constant 0 : index
    %c0_73 = arith.constant 0 : index
    %161 = vector.load %arg14[%c0_71, %c0_72, %c0_73] : memref<2x1x32xf32, #tpu.memory_space<vmem>>, vector<1x1x32xf32>
    %162 = vector.shape_cast %161 : vector<1x1x32xf32> to vector<1x32xf32>
    %163 = vector.broadcast %162 : vector<1x32xf32> to vector<18x32xf32>
    %164 = arith.addf %160, %163 : vector<18x32xf32>
    %165 = arith.addf %164, %55 : vector<18x32xf32>
    %c0_74 = arith.constant 0 : index
    %c0_75 = arith.constant 0 : index
    %c0_76 = arith.constant 0 : index
    %166 = vector.load %arg15[%c0_74, %c0_75, %c0_76] : memref<2x1x32xf32, #tpu.memory_space<vmem>>, vector<1x1x32xf32>
    %167 = vector.shape_cast %166 : vector<1x1x32xf32> to vector<1x32xf32>
    %c0_77 = arith.constant 0 : index
    %c0_78 = arith.constant 0 : index
    %c0_79 = arith.constant 0 : index
    %168 = vector.load %arg16[%c0_77, %c0_78, %c0_79] : memref<2x1x32xf32, #tpu.memory_space<vmem>>, vector<1x1x32xf32>
    %169 = vector.shape_cast %168 : vector<1x1x32xf32> to vector<1x32xf32>
    %cst_80 = arith.constant dense<0.000000e+00> : vector<18xf32>
    %170 = vector.multi_reduction <add>, %165, %cst_80 [1] : vector<18x32xf32> to vector<18xf32>
    %171 = vector.shape_cast %170 : vector<18xf32> to vector<18x1xf32>
    %cst_81 = arith.constant 3.200000e+01 : f32
    %172 = vector.broadcast %cst_81 : f32 to vector<18x1xf32>
    %173 = arith.divf %171, %172 : vector<18x1xf32>
    %174 = vector.broadcast %173 : vector<18x1xf32> to vector<18x32xf32>
    %175 = arith.subf %165, %174 : vector<18x32xf32>
    %176 = arith.mulf %175, %175 : vector<18x32xf32>
    %cst_82 = arith.constant dense<0.000000e+00> : vector<18xf32>
    %177 = vector.multi_reduction <add>, %176, %cst_82 [1] : vector<18x32xf32> to vector<18xf32>
    %178 = vector.shape_cast %177 : vector<18xf32> to vector<18x1xf32>
    %cst_83 = arith.constant 3.200000e+01 : f32
    %179 = vector.broadcast %cst_83 : f32 to vector<18x1xf32>
    %180 = arith.divf %178, %179 : vector<18x1xf32>
    %181 = vector.broadcast %173 : vector<18x1xf32> to vector<18x32xf32>
    %182 = arith.subf %165, %181 : vector<18x32xf32>
    %cst_84 = arith.constant 9.99999974E-6 : f32
    %183 = vector.broadcast %cst_84 : f32 to vector<18x1xf32>
    %184 = arith.addf %180, %183 : vector<18x1xf32>
    %185 = math.rsqrt %184 : vector<18x1xf32>
    %186 = vector.broadcast %185 : vector<18x1xf32> to vector<18x32xf32>
    %187 = arith.mulf %182, %186 : vector<18x32xf32>
    %188 = vector.broadcast %167 : vector<1x32xf32> to vector<18x32xf32>
    %189 = arith.mulf %187, %188 : vector<18x32xf32>
    %190 = vector.broadcast %169 : vector<1x32xf32> to vector<18x32xf32>
    %191 = arith.addf %189, %190 : vector<18x32xf32>
    %c0_85 = arith.constant 0 : index
    %c0_86 = arith.constant 0 : index
    %c0_87 = arith.constant 0 : index
    %192 = vector.load %arg17[%c0_85, %c0_86, %c0_87] : memref<2x32x64xf32, #tpu.memory_space<vmem>>, vector<1x32x64xf32>
    %193 = vector.shape_cast %192 : vector<1x32x64xf32> to vector<32x64xf32>
    %cst_88 = arith.constant dense<0.000000e+00> : vector<18x64xf32>
    %194 = tpu.matmul %191, %193, %cst_88 {dimension_numbers = #tpu.dot_dimension_numbers<[1], [0], [0], [1], [0, 0, 1, 1], [], []>} : vector<18x32xf32>, vector<32x64xf32>, vector<18x64xf32> -> vector<18x64xf32>
    %c0_89 = arith.constant 0 : index
    %c0_90 = arith.constant 0 : index
    %c0_91 = arith.constant 0 : index
    %195 = vector.load %arg18[%c0_89, %c0_90, %c0_91] : memref<2x1x64xf32, #tpu.memory_space<vmem>>, vector<1x1x64xf32>
    %196 = vector.shape_cast %195 : vector<1x1x64xf32> to vector<1x64xf32>
    %197 = vector.broadcast %196 : vector<1x64xf32> to vector<18x64xf32>
    %198 = arith.addf %194, %197 : vector<18x64xf32>
    %cst_92 = arith.constant 0.000000e+00 : f32
    %199 = vector.broadcast %cst_92 : f32 to vector<18x64xf32>
    %200 = arith.maximumf %198, %199 : vector<18x64xf32>
    %c0_93 = arith.constant 0 : index
    %c0_94 = arith.constant 0 : index
    %c0_95 = arith.constant 0 : index
    %201 = vector.load %arg19[%c0_93, %c0_94, %c0_95] : memref<2x64x32xf32, #tpu.memory_space<vmem>>, vector<1x64x32xf32>
    %202 = vector.shape_cast %201 : vector<1x64x32xf32> to vector<64x32xf32>
    %cst_96 = arith.constant dense<0.000000e+00> : vector<18x32xf32>
    %203 = tpu.matmul %200, %202, %cst_96 {dimension_numbers = #tpu.dot_dimension_numbers<[1], [0], [0], [1], [0, 0, 1, 1], [], []>} : vector<18x64xf32>, vector<64x32xf32>, vector<18x32xf32> -> vector<18x32xf32>
    %c0_97 = arith.constant 0 : index
    %c0_98 = arith.constant 0 : index
    %c0_99 = arith.constant 0 : index
    %204 = vector.load %arg20[%c0_97, %c0_98, %c0_99] : memref<2x1x32xf32, #tpu.memory_space<vmem>>, vector<1x1x32xf32>
    %205 = vector.shape_cast %204 : vector<1x1x32xf32> to vector<1x32xf32>
    %206 = vector.broadcast %205 : vector<1x32xf32> to vector<18x32xf32>
    %207 = arith.addf %203, %206 : vector<18x32xf32>
    %208 = arith.addf %207, %191 : vector<18x32xf32>
    %c0_100 = arith.constant 0 : index
    %c0_101 = arith.constant 0 : index
    %c0_102 = arith.constant 0 : index
    %209 = vector.load %arg21[%c0_100, %c0_101, %c0_102] : memref<2x1x32xf32, #tpu.memory_space<vmem>>, vector<1x1x32xf32>
    %210 = vector.shape_cast %209 : vector<1x1x32xf32> to vector<1x32xf32>
    %c0_103 = arith.constant 0 : index
    %c0_104 = arith.constant 0 : index
    %c0_105 = arith.constant 0 : index
    %211 = vector.load %arg22[%c0_103, %c0_104, %c0_105] : memref<2x1x32xf32, #tpu.memory_space<vmem>>, vector<1x1x32xf32>
    %212 = vector.shape_cast %211 : vector<1x1x32xf32> to vector<1x32xf32>
    %cst_106 = arith.constant dense<0.000000e+00> : vector<18xf32>
    %213 = vector.multi_reduction <add>, %208, %cst_106 [1] : vector<18x32xf32> to vector<18xf32>
    %214 = vector.shape_cast %213 : vector<18xf32> to vector<18x1xf32>
    %cst_107 = arith.constant 3.200000e+01 : f32
    %215 = vector.broadcast %cst_107 : f32 to vector<18x1xf32>
    %216 = arith.divf %214, %215 : vector<18x1xf32>
    %217 = vector.broadcast %216 : vector<18x1xf32> to vector<18x32xf32>
    %218 = arith.subf %208, %217 : vector<18x32xf32>
    %219 = arith.mulf %218, %218 : vector<18x32xf32>
    %cst_108 = arith.constant dense<0.000000e+00> : vector<18xf32>
    %220 = vector.multi_reduction <add>, %219, %cst_108 [1] : vector<18x32xf32> to vector<18xf32>
    %221 = vector.shape_cast %220 : vector<18xf32> to vector<18x1xf32>
    %cst_109 = arith.constant 3.200000e+01 : f32
    %222 = vector.broadcast %cst_109 : f32 to vector<18x1xf32>
    %223 = arith.divf %221, %222 : vector<18x1xf32>
    %224 = vector.broadcast %216 : vector<18x1xf32> to vector<18x32xf32>
    %225 = arith.subf %208, %224 : vector<18x32xf32>
    %cst_110 = arith.constant 9.99999974E-6 : f32
    %226 = vector.broadcast %cst_110 : f32 to vector<18x1xf32>
    %227 = arith.addf %223, %226 : vector<18x1xf32>
    %228 = math.rsqrt %227 : vector<18x1xf32>
    %229 = vector.broadcast %228 : vector<18x1xf32> to vector<18x32xf32>
    %230 = arith.mulf %225, %229 : vector<18x32xf32>
    %231 = vector.broadcast %210 : vector<1x32xf32> to vector<18x32xf32>
    %232 = arith.mulf %230, %231 : vector<18x32xf32>
    %233 = vector.broadcast %212 : vector<1x32xf32> to vector<18x32xf32>
    %234 = arith.addf %232, %233 : vector<18x32xf32>
    %c1 = arith.constant 1 : index
    %c0_111 = arith.constant 0 : index
    %c0_112 = arith.constant 0 : index
    %235 = vector.load %arg7[%c1, %c0_111, %c0_112] : memref<2x32x32xf32, #tpu.memory_space<vmem>>, vector<1x32x32xf32>
    %236 = vector.shape_cast %235 : vector<1x32x32xf32> to vector<32x32xf32>
    %cst_113 = arith.constant dense<0.000000e+00> : vector<18x32xf32>
    %237 = tpu.matmul %234, %236, %cst_113 {dimension_numbers = #tpu.dot_dimension_numbers<[1], [0], [0], [1], [0, 0, 1, 1], [], []>} : vector<18x32xf32>, vector<32x32xf32>, vector<18x32xf32> -> vector<18x32xf32>
    %c1_114 = arith.constant 1 : index
    %c0_115 = arith.constant 0 : index
    %c0_116 = arith.constant 0 : index
    %238 = vector.load %arg8[%c1_114, %c0_115, %c0_116] : memref<2x1x32xf32, #tpu.memory_space<vmem>>, vector<1x1x32xf32>
    %239 = vector.shape_cast %238 : vector<1x1x32xf32> to vector<1x32xf32>
    %240 = vector.broadcast %239 : vector<1x32xf32> to vector<18x32xf32>
    %241 = arith.addf %237, %240 : vector<18x32xf32>
    %c1_117 = arith.constant 1 : index
    %c0_118 = arith.constant 0 : index
    %c0_119 = arith.constant 0 : index
    %242 = vector.load %arg9[%c1_117, %c0_118, %c0_119] : memref<2x32x32xf32, #tpu.memory_space<vmem>>, vector<1x32x32xf32>
    %243 = vector.shape_cast %242 : vector<1x32x32xf32> to vector<32x32xf32>
    %cst_120 = arith.constant dense<0.000000e+00> : vector<18x32xf32>
    %244 = tpu.matmul %234, %243, %cst_120 {dimension_numbers = #tpu.dot_dimension_numbers<[1], [0], [0], [1], [0, 0, 1, 1], [], []>} : vector<18x32xf32>, vector<32x32xf32>, vector<18x32xf32> -> vector<18x32xf32>
    %c1_121 = arith.constant 1 : index
    %c0_122 = arith.constant 0 : index
    %c0_123 = arith.constant 0 : index
    %245 = vector.load %arg10[%c1_121, %c0_122, %c0_123] : memref<2x1x32xf32, #tpu.memory_space<vmem>>, vector<1x1x32xf32>
    %246 = vector.shape_cast %245 : vector<1x1x32xf32> to vector<1x32xf32>
    %247 = vector.broadcast %246 : vector<1x32xf32> to vector<18x32xf32>
    %248 = arith.addf %244, %247 : vector<18x32xf32>
    %c1_124 = arith.constant 1 : index
    %c0_125 = arith.constant 0 : index
    %c0_126 = arith.constant 0 : index
    %249 = vector.load %arg11[%c1_124, %c0_125, %c0_126] : memref<2x32x32xf32, #tpu.memory_space<vmem>>, vector<1x32x32xf32>
    %250 = vector.shape_cast %249 : vector<1x32x32xf32> to vector<32x32xf32>
    %cst_127 = arith.constant dense<0.000000e+00> : vector<18x32xf32>
    %251 = tpu.matmul %234, %250, %cst_127 {dimension_numbers = #tpu.dot_dimension_numbers<[1], [0], [0], [1], [0, 0, 1, 1], [], []>} : vector<18x32xf32>, vector<32x32xf32>, vector<18x32xf32> -> vector<18x32xf32>
    %c1_128 = arith.constant 1 : index
    %c0_129 = arith.constant 0 : index
    %c0_130 = arith.constant 0 : index
    %252 = vector.load %arg12[%c1_128, %c0_129, %c0_130] : memref<2x1x32xf32, #tpu.memory_space<vmem>>, vector<1x1x32xf32>
    %253 = vector.shape_cast %252 : vector<1x1x32xf32> to vector<1x32xf32>
    %254 = vector.broadcast %253 : vector<1x32xf32> to vector<18x32xf32>
    %255 = arith.addf %251, %254 : vector<18x32xf32>
    %256 = vector.extract_strided_slice %241 {offsets = [0, 0], sizes = [1, 16], strides = [1, 1]} : vector<18x32xf32> to vector<1x16xf32>
    %257 = vector.extract_strided_slice %248 {offsets = [0, 0], sizes = [9, 16], strides = [1, 1]} : vector<18x32xf32> to vector<9x16xf32>
    %258 = vector.extract_strided_slice %255 {offsets = [0, 0], sizes = [9, 16], strides = [1, 1]} : vector<18x32xf32> to vector<9x16xf32>
    %cst_131 = arith.constant dense<0.000000e+00> : vector<1x9xf32>
    %259 = tpu.matmul %256, %257, %cst_131 {dimension_numbers = #tpu.dot_dimension_numbers<[1], [1], [0], [0], [0, 0, 1, 0], [], []>} : vector<1x16xf32>, vector<9x16xf32>, vector<1x9xf32> -> vector<1x9xf32>
    %cst_132 = arith.constant 2.500000e-01 : f32
    %260 = vector.broadcast %cst_132 : f32 to vector<1x9xf32>
    %261 = arith.mulf %259, %260 : vector<1x9xf32>
    %262 = arith.addf %261, %32 : vector<1x9xf32>
    %cst_133 = arith.constant dense<0xFF800000> : vector<1xf32>
    %263 = vector.multi_reduction <maximumf>, %262, %cst_133 [1] : vector<1x9xf32> to vector<1xf32>
    %264 = vector.shape_cast %263 : vector<1xf32> to vector<1x1xf32>
    %265 = vector.broadcast %264 : vector<1x1xf32> to vector<1x9xf32>
    %266 = arith.subf %262, %265 : vector<1x9xf32>
    %267 = math.exp %266 : vector<1x9xf32>
    %cst_134 = arith.constant dense<0.000000e+00> : vector<1xf32>
    %268 = vector.multi_reduction <add>, %267, %cst_134 [1] : vector<1x9xf32> to vector<1xf32>
    %269 = vector.shape_cast %268 : vector<1xf32> to vector<1x1xf32>
    %270 = tpu.reciprocal %269 {approx = true} : vector<1x1xf32> -> vector<1x1xf32>
    %271 = vector.broadcast %270 : vector<1x1xf32> to vector<1x9xf32>
    %272 = arith.mulf %267, %271 : vector<1x9xf32>
    %cst_135 = arith.constant dense<0.000000e+00> : vector<1x16xf32>
    %273 = tpu.matmul %272, %258, %cst_135 {dimension_numbers = #tpu.dot_dimension_numbers<[1], [0], [0], [1], [0, 0, 1, 1], [], []>} : vector<1x9xf32>, vector<9x16xf32>, vector<1x16xf32> -> vector<1x16xf32>
    %c0_136 = arith.constant 0 : index
    %c0_137 = arith.constant 0 : index
    %274 = vector.load %arg25[%c0_136, %c0_137] : memref<2x32xf32, #tpu.memory_space<vmem>>, vector<1x16xf32>
    tpu.vector_store %arg25[%c0_136, %c0_137], %273 {strides = array<i32>} : memref<2x32xf32, #tpu.memory_space<vmem>>, vector<1x16xf32>,
    %275 = vector.extract_strided_slice %241 {offsets = [0, 16], sizes = [1, 16], strides = [1, 1]} : vector<18x32xf32> to vector<1x16xf32>
    %276 = vector.extract_strided_slice %248 {offsets = [0, 16], sizes = [9, 16], strides = [1, 1]} : vector<18x32xf32> to vector<9x16xf32>
    %277 = vector.extract_strided_slice %255 {offsets = [0, 16], sizes = [9, 16], strides = [1, 1]} : vector<18x32xf32> to vector<9x16xf32>
    %cst_138 = arith.constant dense<0.000000e+00> : vector<1x9xf32>
    %278 = tpu.matmul %275, %276, %cst_138 {dimension_numbers = #tpu.dot_dimension_numbers<[1], [1], [0], [0], [0, 0, 1, 0], [], []>} : vector<1x16xf32>, vector<9x16xf32>, vector<1x9xf32> -> vector<1x9xf32>
    %cst_139 = arith.constant 2.500000e-01 : f32
    %279 = vector.broadcast %cst_139 : f32 to vector<1x9xf32>
    %280 = arith.mulf %278, %279 : vector<1x9xf32>
    %281 = arith.addf %280, %32 : vector<1x9xf32>
    %cst_140 = arith.constant dense<0xFF800000> : vector<1xf32>
    %282 = vector.multi_reduction <maximumf>, %281, %cst_140 [1] : vector<1x9xf32> to vector<1xf32>
    %283 = vector.shape_cast %282 : vector<1xf32> to vector<1x1xf32>
    %284 = vector.broadcast %283 : vector<1x1xf32> to vector<1x9xf32>
    %285 = arith.subf %281, %284 : vector<1x9xf32>
    %286 = math.exp %285 : vector<1x9xf32>
    %cst_141 = arith.constant dense<0.000000e+00> : vector<1xf32>
    %287 = vector.multi_reduction <add>, %286, %cst_141 [1] : vector<1x9xf32> to vector<1xf32>
    %288 = vector.shape_cast %287 : vector<1xf32> to vector<1x1xf32>
    %289 = tpu.reciprocal %288 {approx = true} : vector<1x1xf32> -> vector<1x1xf32>
    %290 = vector.broadcast %289 : vector<1x1xf32> to vector<1x9xf32>
    %291 = arith.mulf %286, %290 : vector<1x9xf32>
    %cst_142 = arith.constant dense<0.000000e+00> : vector<1x16xf32>
    %292 = tpu.matmul %291, %277, %cst_142 {dimension_numbers = #tpu.dot_dimension_numbers<[1], [0], [0], [1], [0, 0, 1, 1], [], []>} : vector<1x9xf32>, vector<9x16xf32>, vector<1x16xf32> -> vector<1x16xf32>
    %c0_143 = arith.constant 0 : index
    %c16_144 = arith.constant 16 : index
    %293 = vector.load %arg25[%c0_143, %c16_144] : memref<2x32xf32, #tpu.memory_space<vmem>>, vector<1x16xf32>
    tpu.vector_store %arg25[%c0_143, %c16_144], %292 {strides = array<i32>} : memref<2x32xf32, #tpu.memory_space<vmem>>, vector<1x16xf32>,
    %294 = vector.extract_strided_slice %241 {offsets = [9, 0], sizes = [1, 16], strides = [1, 1]} : vector<18x32xf32> to vector<1x16xf32>
    %295 = vector.extract_strided_slice %248 {offsets = [9, 0], sizes = [9, 16], strides = [1, 1]} : vector<18x32xf32> to vector<9x16xf32>
    %296 = vector.extract_strided_slice %255 {offsets = [9, 0], sizes = [9, 16], strides = [1, 1]} : vector<18x32xf32> to vector<9x16xf32>
    %cst_145 = arith.constant dense<0.000000e+00> : vector<1x9xf32>
    %297 = tpu.matmul %294, %295, %cst_145 {dimension_numbers = #tpu.dot_dimension_numbers<[1], [1], [0], [0], [0, 0, 1, 0], [], []>} : vector<1x16xf32>, vector<9x16xf32>, vector<1x9xf32> -> vector<1x9xf32>
    %cst_146 = arith.constant 2.500000e-01 : f32
    %298 = vector.broadcast %cst_146 : f32 to vector<1x9xf32>
    %299 = arith.mulf %297, %298 : vector<1x9xf32>
    %300 = arith.addf %299, %54 : vector<1x9xf32>
    %cst_147 = arith.constant dense<0xFF800000> : vector<1xf32>
    %301 = vector.multi_reduction <maximumf>, %300, %cst_147 [1] : vector<1x9xf32> to vector<1xf32>
    %302 = vector.shape_cast %301 : vector<1xf32> to vector<1x1xf32>
    %303 = vector.broadcast %302 : vector<1x1xf32> to vector<1x9xf32>
    %304 = arith.subf %300, %303 : vector<1x9xf32>
    %305 = math.exp %304 : vector<1x9xf32>
    %cst_148 = arith.constant dense<0.000000e+00> : vector<1xf32>
    %306 = vector.multi_reduction <add>, %305, %cst_148 [1] : vector<1x9xf32> to vector<1xf32>
    %307 = vector.shape_cast %306 : vector<1xf32> to vector<1x1xf32>
    %308 = tpu.reciprocal %307 {approx = true} : vector<1x1xf32> -> vector<1x1xf32>
    %309 = vector.broadcast %308 : vector<1x1xf32> to vector<1x9xf32>
    %310 = arith.mulf %305, %309 : vector<1x9xf32>
    %cst_149 = arith.constant dense<0.000000e+00> : vector<1x16xf32>
    %311 = tpu.matmul %310, %296, %cst_149 {dimension_numbers = #tpu.dot_dimension_numbers<[1], [0], [0], [1], [0, 0, 1, 1], [], []>} : vector<1x9xf32>, vector<9x16xf32>, vector<1x16xf32> -> vector<1x16xf32>
    %c1_150 = arith.constant 1 : index
    %c0_151 = arith.constant 0 : index
    %312 = vector.load %arg25[%c1_150, %c0_151] : memref<2x32xf32, #tpu.memory_space<vmem>>, vector<1x16xf32>
    tpu.vector_store %arg25[%c1_150, %c0_151], %311 {strides = array<i32>} : memref<2x32xf32, #tpu.memory_space<vmem>>, vector<1x16xf32>,
    %313 = vector.extract_strided_slice %241 {offsets = [9, 16], sizes = [1, 16], strides = [1, 1]} : vector<18x32xf32> to vector<1x16xf32>
    %314 = vector.extract_strided_slice %248 {offsets = [9, 16], sizes = [9, 16], strides = [1, 1]} : vector<18x32xf32> to vector<9x16xf32>
    %315 = vector.extract_strided_slice %255 {offsets = [9, 16], sizes = [9, 16], strides = [1, 1]} : vector<18x32xf32> to vector<9x16xf32>
    %cst_152 = arith.constant dense<0.000000e+00> : vector<1x9xf32>
    %316 = tpu.matmul %313, %314, %cst_152 {dimension_numbers = #tpu.dot_dimension_numbers<[1], [1], [0], [0], [0, 0, 1, 0], [], []>} : vector<1x16xf32>, vector<9x16xf32>, vector<1x9xf32> -> vector<1x9xf32>
    %cst_153 = arith.constant 2.500000e-01 : f32
    %317 = vector.broadcast %cst_153 : f32 to vector<1x9xf32>
    %318 = arith.mulf %316, %317 : vector<1x9xf32>
    %319 = arith.addf %318, %54 : vector<1x9xf32>
    %cst_154 = arith.constant dense<0xFF800000> : vector<1xf32>
    %320 = vector.multi_reduction <maximumf>, %319, %cst_154 [1] : vector<1x9xf32> to vector<1xf32>
    %321 = vector.shape_cast %320 : vector<1xf32> to vector<1x1xf32>
    %322 = vector.broadcast %321 : vector<1x1xf32> to vector<1x9xf32>
    %323 = arith.subf %319, %322 : vector<1x9xf32>
    %324 = math.exp %323 : vector<1x9xf32>
    %cst_155 = arith.constant dense<0.000000e+00> : vector<1xf32>
    %325 = vector.multi_reduction <add>, %324, %cst_155 [1] : vector<1x9xf32> to vector<1xf32>
    %326 = vector.shape_cast %325 : vector<1xf32> to vector<1x1xf32>
    %327 = tpu.reciprocal %326 {approx = true} : vector<1x1xf32> -> vector<1x1xf32>
    %328 = vector.broadcast %327 : vector<1x1xf32> to vector<1x9xf32>
    %329 = arith.mulf %324, %328 : vector<1x9xf32>
    %cst_156 = arith.constant dense<0.000000e+00> : vector<1x16xf32>
    %330 = tpu.matmul %329, %315, %cst_156 {dimension_numbers = #tpu.dot_dimension_numbers<[1], [0], [0], [1], [0, 0, 1, 1], [], []>} : vector<1x9xf32>, vector<9x16xf32>, vector<1x16xf32> -> vector<1x16xf32>
    %c1_157 = arith.constant 1 : index
    %c16_158 = arith.constant 16 : index
    %331 = vector.load %arg25[%c1_157, %c16_158] : memref<2x32xf32, #tpu.memory_space<vmem>>, vector<1x16xf32>
    tpu.vector_store %arg25[%c1_157, %c16_158], %330 {strides = array<i32>} : memref<2x32xf32, #tpu.memory_space<vmem>>, vector<1x16xf32>,
    %c0_159 = arith.constant 0 : index
    %c0_160 = arith.constant 0 : index
    %332 = vector.load %arg25[%c0_159, %c0_160] : memref<2x32xf32, #tpu.memory_space<vmem>>, vector<2x32xf32>
    %c1_161 = arith.constant 1 : index
    %c0_162 = arith.constant 0 : index
    %c0_163 = arith.constant 0 : index
    %333 = vector.load %arg13[%c1_161, %c0_162, %c0_163] : memref<2x32x32xf32, #tpu.memory_space<vmem>>, vector<1x32x32xf32>
    %334 = vector.shape_cast %333 : vector<1x32x32xf32> to vector<32x32xf32>
    %cst_164 = arith.constant dense<0.000000e+00> : vector<2x32xf32>
    %335 = tpu.matmul %332, %334, %cst_164 {dimension_numbers = #tpu.dot_dimension_numbers<[1], [0], [0], [1], [0, 0, 1, 1], [], []>} : vector<2x32xf32>, vector<32x32xf32>, vector<2x32xf32> -> vector<2x32xf32>
    %c1_165 = arith.constant 1 : index
    %c0_166 = arith.constant 0 : index
    %c0_167 = arith.constant 0 : index
    %336 = vector.load %arg14[%c1_165, %c0_166, %c0_167] : memref<2x1x32xf32, #tpu.memory_space<vmem>>, vector<1x1x32xf32>
    %337 = vector.shape_cast %336 : vector<1x1x32xf32> to vector<1x32xf32>
    %338 = vector.broadcast %337 : vector<1x32xf32> to vector<2x32xf32>
    %339 = arith.addf %335, %338 : vector<2x32xf32>
    %340 = vector.extract_strided_slice %234 {offsets = [0, 0], sizes = [1, 32], strides = [1, 1]} : vector<18x32xf32> to vector<1x32xf32>
    %341 = vector.extract_strided_slice %234 {offsets = [9, 0], sizes = [1, 32], strides = [1, 1]} : vector<18x32xf32> to vector<1x32xf32>
    %342 = tpu.concatenate %340, %341 in 0 : vector<1x32xf32>, vector<1x32xf32> -> vector<2x32xf32>
    %343 = arith.addf %339, %342 : vector<2x32xf32>
    %c1_168 = arith.constant 1 : index
    %c0_169 = arith.constant 0 : index
    %c0_170 = arith.constant 0 : index
    %344 = vector.load %arg15[%c1_168, %c0_169, %c0_170] : memref<2x1x32xf32, #tpu.memory_space<vmem>>, vector<1x1x32xf32>
    %345 = vector.shape_cast %344 : vector<1x1x32xf32> to vector<1x32xf32>
    %c1_171 = arith.constant 1 : index
    %c0_172 = arith.constant 0 : index
    %c0_173 = arith.constant 0 : index
    %346 = vector.load %arg16[%c1_171, %c0_172, %c0_173] : memref<2x1x32xf32, #tpu.memory_space<vmem>>, vector<1x1x32xf32>
    %347 = vector.shape_cast %346 : vector<1x1x32xf32> to vector<1x32xf32>
    %cst_174 = arith.constant dense<0.000000e+00> : vector<2xf32>
    %348 = vector.multi_reduction <add>, %343, %cst_174 [1] : vector<2x32xf32> to vector<2xf32>
    %349 = vector.shape_cast %348 : vector<2xf32> to vector<2x1xf32>
    %cst_175 = arith.constant 3.200000e+01 : f32
    %350 = vector.broadcast %cst_175 : f32 to vector<2x1xf32>
    %351 = arith.divf %349, %350 : vector<2x1xf32>
    %352 = vector.broadcast %351 : vector<2x1xf32> to vector<2x32xf32>
    %353 = arith.subf %343, %352 : vector<2x32xf32>
    %354 = arith.mulf %353, %353 : vector<2x32xf32>
    %cst_176 = arith.constant dense<0.000000e+00> : vector<2xf32>
    %355 = vector.multi_reduction <add>, %354, %cst_176 [1] : vector<2x32xf32> to vector<2xf32>
    %356 = vector.shape_cast %355 : vector<2xf32> to vector<2x1xf32>
    %cst_177 = arith.constant 3.200000e+01 : f32
    %357 = vector.broadcast %cst_177 : f32 to vector<2x1xf32>
    %358 = arith.divf %356, %357 : vector<2x1xf32>
    %359 = vector.broadcast %351 : vector<2x1xf32> to vector<2x32xf32>
    %360 = arith.subf %343, %359 : vector<2x32xf32>
    %cst_178 = arith.constant 9.99999974E-6 : f32
    %361 = vector.broadcast %cst_178 : f32 to vector<2x1xf32>
    %362 = arith.addf %358, %361 : vector<2x1xf32>
    %363 = math.rsqrt %362 : vector<2x1xf32>
    %364 = vector.broadcast %363 : vector<2x1xf32> to vector<2x32xf32>
    %365 = arith.mulf %360, %364 : vector<2x32xf32>
    %366 = vector.broadcast %345 : vector<1x32xf32> to vector<2x32xf32>
    %367 = arith.mulf %365, %366 : vector<2x32xf32>
    %368 = vector.broadcast %347 : vector<1x32xf32> to vector<2x32xf32>
    %369 = arith.addf %367, %368 : vector<2x32xf32>
    %c1_179 = arith.constant 1 : index
    %c0_180 = arith.constant 0 : index
    %c0_181 = arith.constant 0 : index
    %370 = vector.load %arg17[%c1_179, %c0_180, %c0_181] : memref<2x32x64xf32, #tpu.memory_space<vmem>>, vector<1x32x64xf32>
    %371 = vector.shape_cast %370 : vector<1x32x64xf32> to vector<32x64xf32>
    %cst_182 = arith.constant dense<0.000000e+00> : vector<2x64xf32>
    %372 = tpu.matmul %369, %371, %cst_182 {dimension_numbers = #tpu.dot_dimension_numbers<[1], [0], [0], [1], [0, 0, 1, 1], [], []>} : vector<2x32xf32>, vector<32x64xf32>, vector<2x64xf32> -> vector<2x64xf32>
    %c1_183 = arith.constant 1 : index
    %c0_184 = arith.constant 0 : index
    %c0_185 = arith.constant 0 : index
    %373 = vector.load %arg18[%c1_183, %c0_184, %c0_185] : memref<2x1x64xf32, #tpu.memory_space<vmem>>, vector<1x1x64xf32>
    %374 = vector.shape_cast %373 : vector<1x1x64xf32> to vector<1x64xf32>
    %375 = vector.broadcast %374 : vector<1x64xf32> to vector<2x64xf32>
    %376 = arith.addf %372, %375 : vector<2x64xf32>
    %cst_186 = arith.constant 0.000000e+00 : f32
    %377 = vector.broadcast %cst_186 : f32 to vector<2x64xf32>
    %378 = arith.maximumf %376, %377 : vector<2x64xf32>
    %c1_187 = arith.constant 1 : index
    %c0_188 = arith.constant 0 : index
    %c0_189 = arith.constant 0 : index
    %379 = vector.load %arg19[%c1_187, %c0_188, %c0_189] : memref<2x64x32xf32, #tpu.memory_space<vmem>>, vector<1x64x32xf32>
    %380 = vector.shape_cast %379 : vector<1x64x32xf32> to vector<64x32xf32>
    %cst_190 = arith.constant dense<0.000000e+00> : vector<2x32xf32>
    %381 = tpu.matmul %378, %380, %cst_190 {dimension_numbers = #tpu.dot_dimension_numbers<[1], [0], [0], [1], [0, 0, 1, 1], [], []>} : vector<2x64xf32>, vector<64x32xf32>, vector<2x32xf32> -> vector<2x32xf32>
    %c1_191 = arith.constant 1 : index
    %c0_192 = arith.constant 0 : index
    %c0_193 = arith.constant 0 : index
    %382 = vector.load %arg20[%c1_191, %c0_192, %c0_193] : memref<2x1x32xf32, #tpu.memory_space<vmem>>, vector<1x1x32xf32>
    %383 = vector.shape_cast %382 : vector<1x1x32xf32> to vector<1x32xf32>
    %384 = vector.broadcast %383 : vector<1x32xf32> to vector<2x32xf32>
    %385 = arith.addf %381, %384 : vector<2x32xf32>
    %386 = arith.addf %385, %369 : vector<2x32xf32>
    %c1_194 = arith.constant 1 : index
    %c0_195 = arith.constant 0 : index
    %c0_196 = arith.constant 0 : index
    %387 = vector.load %arg21[%c1_194, %c0_195, %c0_196] : memref<2x1x32xf32, #tpu.memory_space<vmem>>, vector<1x1x32xf32>
    %388 = vector.shape_cast %387 : vector<1x1x32xf32> to vector<1x32xf32>
    %c1_197 = arith.constant 1 : index
    %c0_198 = arith.constant 0 : index
    %c0_199 = arith.constant 0 : index
    %389 = vector.load %arg22[%c1_197, %c0_198, %c0_199] : memref<2x1x32xf32, #tpu.memory_space<vmem>>, vector<1x1x32xf32>
    %390 = vector.shape_cast %389 : vector<1x1x32xf32> to vector<1x32xf32>
    %cst_200 = arith.constant dense<0.000000e+00> : vector<2xf32>
    %391 = vector.multi_reduction <add>, %386, %cst_200 [1] : vector<2x32xf32> to vector<2xf32>
    %392 = vector.shape_cast %391 : vector<2xf32> to vector<2x1xf32>
    %cst_201 = arith.constant 3.200000e+01 : f32
    %393 = vector.broadcast %cst_201 : f32 to vector<2x1xf32>
    %394 = arith.divf %392, %393 : vector<2x1xf32>
    %395 = vector.broadcast %394 : vector<2x1xf32> to vector<2x32xf32>
    %396 = arith.subf %386, %395 : vector<2x32xf32>
    %397 = arith.mulf %396, %396 : vector<2x32xf32>
    %cst_202 = arith.constant dense<0.000000e+00> : vector<2xf32>
    %398 = vector.multi_reduction <add>, %397, %cst_202 [1] : vector<2x32xf32> to vector<2xf32>
    %399 = vector.shape_cast %398 : vector<2xf32> to vector<2x1xf32>
    %cst_203 = arith.constant 3.200000e+01 : f32
    %400 = vector.broadcast %cst_203 : f32 to vector<2x1xf32>
    %401 = arith.divf %399, %400 : vector<2x1xf32>
    %402 = vector.broadcast %394 : vector<2x1xf32> to vector<2x32xf32>
    %403 = arith.subf %386, %402 : vector<2x32xf32>
    %cst_204 = arith.constant 9.99999974E-6 : f32
    %404 = vector.broadcast %cst_204 : f32 to vector<2x1xf32>
    %405 = arith.addf %401, %404 : vector<2x1xf32>
    %406 = math.rsqrt %405 : vector<2x1xf32>
    %407 = vector.broadcast %406 : vector<2x1xf32> to vector<2x32xf32>
    %408 = arith.mulf %403, %407 : vector<2x32xf32>
    %409 = vector.broadcast %388 : vector<1x32xf32> to vector<2x32xf32>
    %410 = arith.mulf %408, %409 : vector<2x32xf32>
    %411 = vector.broadcast %390 : vector<1x32xf32> to vector<2x32xf32>
    %412 = arith.addf %410, %411 : vector<2x32xf32>
    %413 = vector.shape_cast %412 : vector<2x32xf32> to vector<2x1x32xf32>
    %c0_205 = arith.constant 0 : index
    %c0_206 = arith.constant 0 : index
    %c0_207 = arith.constant 0 : index
    %414 = vector.load %arg23[%c0_205, %c0_206, %c0_207] : memref<2x1x32xf32, #tpu.memory_space<vmem>>, vector<2x1x32xf32>
    tpu.vector_store %arg23[%c0_205, %c0_206, %c0_207], %413 {strides = array<i32>} : memref<2x1x32xf32, #tpu.memory_space<vmem>>, vector<2x1x32xf32>,
    return
  }
  func.func @transform_0(%arg0: i32, %arg1: memref<2xi32, #tpu.memory_space<smem>>) -> (i32, i32, i32) {
    %c0_i32 = arith.constant 0 : i32
    %c0_i32_0 = arith.constant 0 : i32
    %c0_i32_1 = arith.constant 0 : i32
    return %arg0, %c0_i32, %c0_i32_0 : i32, i32, i32
  }
  func.func @transform_1(%arg0: i32, %arg1: memref<2xi32, #tpu.memory_space<smem>>) -> (i32, i32) {
    %c0_i32 = arith.constant 0 : i32
    %c0_i32_0 = arith.constant 0 : i32
    %c0_i32_1 = arith.constant 0 : i32
    return %c0_i32, %c0_i32_0 : i32, i32
  }
  func.func @transform_2(%arg0: i32, %arg1: memref<2xi32, #tpu.memory_space<smem>>) -> (i32, i32) {
    %c0_i32 = arith.constant 0 : i32
    %c0_i32_0 = arith.constant 0 : i32
    %c0_i32_1 = arith.constant 0 : i32
    return %c0_i32, %c0_i32_0 : i32, i32
  }
  func.func @transform_3(%arg0: i32, %arg1: memref<2xi32, #tpu.memory_space<smem>>) -> (i32, i32) {
    %c0_i32 = arith.constant 0 : i32
    %c0_i32_0 = arith.constant 0 : i32
    %c0_i32_1 = arith.constant 0 : i32
    return %c0_i32, %c0_i32_0 : i32, i32
  }
  func.func @transform_4(%arg0: i32, %arg1: memref<2xi32, #tpu.memory_space<smem>>) -> (i32, i32) {
    %c0_i32 = arith.constant 0 : i32
    %c0_i32_0 = arith.constant 0 : i32
    %c0_i32_1 = arith.constant 0 : i32
    return %c0_i32, %c0_i32_0 : i32, i32
  }
  func.func @transform_5(%arg0: i32, %arg1: memref<2xi32, #tpu.memory_space<smem>>) -> (i32, i32, i32) {
    %c0_i32 = arith.constant 0 : i32
    %c0_i32_0 = arith.constant 0 : i32
    %c0_i32_1 = arith.constant 0 : i32
    %c0_i32_2 = arith.constant 0 : i32
    return %c0_i32, %c0_i32_0, %c0_i32_1 : i32, i32, i32
  }
  func.func @transform_6(%arg0: i32, %arg1: memref<2xi32, #tpu.memory_space<smem>>) -> (i32, i32, i32) {
    %c0_i32 = arith.constant 0 : i32
    %c0_i32_0 = arith.constant 0 : i32
    %c0_i32_1 = arith.constant 0 : i32
    %c0_i32_2 = arith.constant 0 : i32
    return %c0_i32, %c0_i32_0, %c0_i32_1 : i32, i32, i32
  }
  func.func @transform_7(%arg0: i32, %arg1: memref<2xi32, #tpu.memory_space<smem>>) -> (i32, i32, i32) {
    %c0_i32 = arith.constant 0 : i32
    %c0_i32_0 = arith.constant 0 : i32
    %c0_i32_1 = arith.constant 0 : i32
    %c0_i32_2 = arith.constant 0 : i32
    return %c0_i32, %c0_i32_0, %c0_i32_1 : i32, i32, i32
  }
  func.func @transform_8(%arg0: i32, %arg1: memref<2xi32, #tpu.memory_space<smem>>) -> (i32, i32, i32) {
    %c0_i32 = arith.constant 0 : i32
    %c0_i32_0 = arith.constant 0 : i32
    %c0_i32_1 = arith.constant 0 : i32
    %c0_i32_2 = arith.constant 0 : i32
    return %c0_i32, %c0_i32_0, %c0_i32_1 : i32, i32, i32
  }
  func.func @transform_9(%arg0: i32, %arg1: memref<2xi32, #tpu.memory_space<smem>>) -> (i32, i32, i32) {
    %c0_i32 = arith.constant 0 : i32
    %c0_i32_0 = arith.constant 0 : i32
    %c0_i32_1 = arith.constant 0 : i32
    %c0_i32_2 = arith.constant 0 : i32
    return %c0_i32, %c0_i32_0, %c0_i32_1 : i32, i32, i32
  }
  func.func @transform_10(%arg0: i32, %arg1: memref<2xi32, #tpu.memory_space<smem>>) -> (i32, i32, i32) {
    %c0_i32 = arith.constant 0 : i32
    %c0_i32_0 = arith.constant 0 : i32
    %c0_i32_1 = arith.constant 0 : i32
    %c0_i32_2 = arith.constant 0 : i32
    return %c0_i32, %c0_i32_0, %c0_i32_1 : i32, i32, i32
  }
  func.func @transform_11(%arg0: i32, %arg1: memref<2xi32, #tpu.memory_space<smem>>) -> (i32, i32, i32) {
    %c0_i32 = arith.constant 0 : i32
    %c0_i32_0 = arith.constant 0 : i32
    %c0_i32_1 = arith.constant 0 : i32
    %c0_i32_2 = arith.constant 0 : i32
    return %c0_i32, %c0_i32_0, %c0_i32_1 : i32, i32, i32
  }
  func.func @transform_12(%arg0: i32, %arg1: memref<2xi32, #tpu.memory_space<smem>>) -> (i32, i32, i32) {
    %c0_i32 = arith.constant 0 : i32
    %c0_i32_0 = arith.constant 0 : i32
    %c0_i32_1 = arith.constant 0 : i32
    %c0_i32_2 = arith.constant 0 : i32
    return %c0_i32, %c0_i32_0, %c0_i32_1 : i32, i32, i32
  }
  func.func @transform_13(%arg0: i32, %arg1: memref<2xi32, #tpu.memory_space<smem>>) -> (i32, i32, i32) {
    %c0_i32 = arith.constant 0 : i32
    %c0_i32_0 = arith.constant 0 : i32
    %c0_i32_1 = arith.constant 0 : i32
    %c0_i32_2 = arith.constant 0 : i32
    return %c0_i32, %c0_i32_0, %c0_i32_1 : i32, i32, i32
  }
  func.func @transform_14(%arg0: i32, %arg1: memref<2xi32, #tpu.memory_space<smem>>) -> (i32, i32, i32) {
    %c0_i32 = arith.constant 0 : i32
    %c0_i32_0 = arith.constant 0 : i32
    %c0_i32_1 = arith.constant 0 : i32
    %c0_i32_2 = arith.constant 0 : i32
    return %c0_i32, %c0_i32_0, %c0_i32_1 : i32, i32, i32
  }
  func.func @transform_15(%arg0: i32, %arg1: memref<2xi32, #tpu.memory_space<smem>>) -> (i32, i32, i32) {
    %c0_i32 = arith.constant 0 : i32
    %c0_i32_0 = arith.constant 0 : i32
    %c0_i32_1 = arith.constant 0 : i32
    %c0_i32_2 = arith.constant 0 : i32
    return %c0_i32, %c0_i32_0, %c0_i32_1 : i32, i32, i32
  }
  func.func @transform_16(%arg0: i32, %arg1: memref<2xi32, #tpu.memory_space<smem>>) -> (i32, i32, i32) {
    %c0_i32 = arith.constant 0 : i32
    %c0_i32_0 = arith.constant 0 : i32
    %c0_i32_1 = arith.constant 0 : i32
    %c0_i32_2 = arith.constant 0 : i32
    return %c0_i32, %c0_i32_0, %c0_i32_1 : i32, i32, i32
  }
  func.func @transform_17(%arg0: i32, %arg1: memref<2xi32, #tpu.memory_space<smem>>) -> (i32, i32, i32) {
    %c0_i32 = arith.constant 0 : i32
    %c0_i32_0 = arith.constant 0 : i32
    %c0_i32_1 = arith.constant 0 : i32
    %c0_i32_2 = arith.constant 0 : i32
    return %c0_i32, %c0_i32_0, %c0_i32_1 : i32, i32, i32
  }
  func.func @transform_18(%arg0: i32, %arg1: memref<2xi32, #tpu.memory_space<smem>>) -> (i32, i32, i32) {
    %c0_i32 = arith.constant 0 : i32
    %c0_i32_0 = arith.constant 0 : i32
    %c0_i32_1 = arith.constant 0 : i32
    %c0_i32_2 = arith.constant 0 : i32
    return %c0_i32, %c0_i32_0, %c0_i32_1 : i32, i32, i32
  }
  func.func @transform_19(%arg0: i32, %arg1: memref<2xi32, #tpu.memory_space<smem>>) -> (i32, i32, i32) {
    %c0_i32 = arith.constant 0 : i32
    %c0_i32_0 = arith.constant 0 : i32
    %c0_i32_1 = arith.constant 0 : i32
    %c0_i32_2 = arith.constant 0 : i32
    return %c0_i32, %c0_i32_0, %c0_i32_1 : i32, i32, i32
  }
  func.func @transform_20(%arg0: i32, %arg1: memref<2xi32, #tpu.memory_space<smem>>) -> (i32, i32, i32) {
    %c0_i32 = arith.constant 0 : i32
    %c0_i32_0 = arith.constant 0 : i32
    %c0_i32_1 = arith.constant 0 : i32
    %c0_i32_2 = arith.constant 0 : i32
    return %c0_i32, %c0_i32_0, %c0_i32_1 : i32, i32, i32
  }
  func.func @transform_21(%arg0: i32, %arg1: memref<2xi32, #tpu.memory_space<smem>>) -> (i32, i32, i32) {
    %c0_i32 = arith.constant 0 : i32
    %c0_i32_0 = arith.constant 0 : i32
    %c0_i32_1 = arith.constant 0 : i32
    return %arg0, %c0_i32, %c0_i32_0 : i32, i32, i32
  }
}

</mosaic_0001>

<bundles_post_ra>
// kernel: tpu_custom_call.1
= control target key start
LH: loop header
LB: loop body
LE: loop exit
PB: predicated region body
PF: predicated region fallthrough
CT: control target
= control target key end

     0   :  { %s5612_s0 = inlined_call_operand.vmem [shape: s32[2], index: 0, kind: input, shape index: {}]   ;;  %s5613_s1 = inlined_call_operand.vmem [shape: f32[2,8,300], index: 1, kind: input, shape index: {}]   ;;  %s5614_s2 = inlined_call_operand.vmem [shape: f32[1,300], index: 2, kind: input, shape index: {}]   ;;  %s5615_s3 = inlined_call_operand.vmem [shape: f32[9,32], index: 3, kind: input, shape index: {}]   ;;  %s5616_s4 = inlined_call_operand.vmem [shape: f32[1,32], index: 4, kind: input, shape index: {}]   ;;  %s5617_s5 = inlined_call_operand.vmem [shape: f32[300,32], index: 5, kind: input, shape index: {}]   ;;  %s5618_s6 = inlined_call_operand.vmem [shape: f32[2,32,32], index: 6, kind: input, shape index: {}]   ;;  %s5619_s7 = inlined_call_operand.vmem [shape: f32[2,1,32], index: 7, kind: input, shape index: {}]   ;;  %s5620_s8 = inlined_call_operand.vmem [shape: f32[2,32,32], index: 8, kind: input, shape index: {}]   ;;  %s5621_s9 = inlined_call_operand.vmem [shape: f32[2,1,32], index: 9, kind: input, shape index: {}]   ;;  %s5622_s10 = inlined_call_operand.vmem [shape: f32[2,32,32], index: 10, kind: input, shape index: {}]   ;;  %s5623_s11 = inlined_call_operand.vmem [shape: f32[2,1,32], index: 11, kind: input, shape index: {}]   ;;  %s5624_s12 = inlined_call_operand.vmem [shape: f32[2,32,32], index: 12, kind: input, shape index: {}]   ;;  %s5625_s13 = inlined_call_operand.vmem [shape: f32[2,1,32], index: 13, kind: input, shape index: {}]   ;;  %s5626_s14 = inlined_call_operand.vmem [shape: f32[2,1,32], index: 14, kind: input, shape index: {}]   ;;  %s5627_s15 = inlined_call_operand.vmem [shape: f32[2,1,32], index: 15, kind: input, shape index: {}]   ;;  %s5628_s16 = inlined_call_operand.vmem [shape: f32[2,32,64], index: 16, kind: input, shape index: {}]   ;;  %s5629_s17 = inlined_call_operand.vmem [shape: f32[2,1,64], index: 17, kind: input, shape index: {}]   ;;  %s5630_s18 = inlined_call_operand.vmem [shape: f32[2,64,32], index: 18, kind: input, shape index: {}]   ;;  %s5631_s19 = inlined_call_operand.vmem [shape: f32[2,1,32], index: 19, kind: input, shape index: {}]   ;;  %s5632_s20 = inlined_call_operand.vmem [shape: f32[2,1,32], index: 20, kind: input, shape index: {}]   ;;  %s5633_s21 = inlined_call_operand.vmem [shape: f32[2,1,32], index: 21, kind: input, shape index: {}]   ;;  %s5634_s22 = inlined_call_operand.hbm [shape: f32[2,1,32], index: 22, kind: output, shape index: {}]  }
   0x1   :  { %5640 = sst [smem:[#allocation10_spill]] %s5612_s0 }
   0x2   :  { %5641 = sst [smem:[#allocation11_spill]] %s5613_s1  ;;  %s5648_s29 = sld [smem:[#allocation10_spill]] }
   0x3   :  { %5642 = sst [smem:[#allocation12_spill]] %s5614_s2 }
   0x4   :  { %5643 = sst [smem:[#allocation13_spill]] %s5615_s3 }
   0x5   :  { %5644 = sst [smem:[#allocation14_spill]] %s5616_s4 }
   0x6   :  { %5645 = sst [smem:[#allocation15_spill]] %s5617_s5 }
   0x7   :  { %5646 = sst [smem:[#allocation16_spill]] %s5618_s6 }
   0x8   :  { %5647 = sst [smem:[#allocation17_spill]] %s5627_s15  ;;  %s27_s15 = sshll.u32 %s5648_s29, 4  ;;  %s28_s15 = int_to_ptr.vmem [resolvable:$true] %s27_s15 }
   0x9   :  { %s4524_s30 = scalar_lea.vmem %s28_s15, 16  ;;  %p4529_p1 = scmp.lt.s32.totalorder %s28_s15, %s28_s15 }
   0xa   :  { %p4525_p0 = scmp.ne.s32.totalorder %s28_s15, %s4524_s30  ;;  %p4530_p2 = scmp.lt.s32.totalorder %s4524_s30, %s4524_s30 }
   0xc   :  { %p4531_p3 = por %p4530_p2, %p4529_p1 }
   0xe   :  { %p4532_p4 = pnand %p4531_p3, %p4525_p0 }
  0x10   :  { %4535 = shalt.err (!%p4532_p4)  }
  0x11   :  { %s4562_s4 = smov [#allocation5]  }
  0x12   :  { %30 = dma.vmem_to_smem %s28_s15, 16, %s4562_s4, [#allocation4] }
  0x13   :  { %4558 = dma.done.wait [#allocation4], 16 }
  0x14   :  { %4559 = vsyncadd [#allocation4], 4294967280 }
  0x15   :  { %32 = sfence }
  0x16   :  { %s5649_s1 = sld [smem:[#allocation15_spill]]  ;;  %vm127_vm0 = vcmask 1043456   ;;  %vm120_vm1 = vcmask 359424   ;;  %v283_v21 = vlaneseq  ;;  %s5650_s15 = sld [smem:[#allocation11_spill]]  ;;  %vm4563_vm2 = vmmov 1  }
  0x17   :  { %vm4764_vm3 = vmpackc.low %vm127_vm0, %vm4563_vm2  ;;  %s5653_s26 = sld [smem:[#allocation12_spill]] }
  0x18   :  { %v4776_v32 = vshrl.u32 %v283_v21, 7 }
  0x1a   :  { %v289_v39 = vsub.s32 1, %v4776_v32 }
  0x1c   :  { %v98_v0 = vld [vmem:[%s5649_s1 + $0x80] sm:$0xff]  ;;  %v99_v1 = vld [vmem:[%s5649_s1 + $0x88] sm:$0xff]  ;;  %v100_v9 = vld [vmem:[%s5649_s1 + $0x90] sm:$0xff] }
  0x1d   :  { %v114_v2 = vld [vmem:[%s5649_s1 + $0x100] sm:$0xff]  ;;  %v4154_v3 = vpack.c.bf16 %v99_v1, %v98_v0  ;;  %v115_v4 = vld [vmem:[%s5649_s1 + $0x108] sm:$0xff]  ;;  %v101_v10 = vld [vmem:[%s5649_s1 + $0x98] sm:$0xff] }
  0x1e   :  { %v82_v5 = vld [vmem:[%s5649_s1] sm:$0xff]  ;;  %v83_v6 = vld [vmem:[%s5649_s1 + $0x8] sm:$0xff]  ;;  %v4708_v7 = vpack.c.bf16 %v115_v4, %v114_v2  ;;  %v116_v11 = vld [vmem:[%s5649_s1 + $0x110] sm:$0xff]  ;;  %v4721_v12 = vpack.c.bf16 %v101_v10, %v100_v9 }
  0x1f   :  { %v4710_v8 = vpack.c.bf16 %v83_v6, %v82_v5  ;;  %4155 = vmatprep.subr.bf16.mxu0 %v4154_v3  ;;  %v117_v13 = vld [vmem:[%s5649_s1 + $0x118] sm:$0xff]  ;;  %v84_v14 = vld [vmem:[%s5649_s1 + $0x10] sm:$0xff]  ;;  %v102_v18 = vld [vmem:[%s5649_s1 + $0xa0] sm:$0xff] }
  0x20   :  { %v85_v15 = vld [vmem:[%s5649_s1 + $0x18] sm:$0xff]  ;;  %4187 = vmatprep.subr.bf16.mxu1 %v4708_v7  ;;  %v4734_v16 = vpack.c.bf16 %v117_v13, %v116_v11  ;;  %v103_v19 = vld [vmem:[%s5649_s1 + $0xa8] sm:$0xff]  ;;  %v118_v20 = vld [vmem:[%s5649_s1 + $0x120] sm:$0xff] }
  0x21   :  { %4157 = vmatpush3.bf16.msra.mxu0 %v4710_v8  ;;  %v4160_v17 = vpack.c.bf16 %v85_v15, %v84_v14  ;;  %4189 = vmatpush3.bf16.msra.mxu1 %v4708_v7  ;;  %v4162_v22 = vpack.c.bf16 %v103_v19, %v102_v18  ;;  %v119_v23 = vld [vmem:[%s5649_s1 + $0x128] sm:$0xf]  ;;  %v86_v24 = vld [vmem:[%s5649_s1 + $0x20] sm:$0xff]  ;;  %v78_v27 = vld [vmem:[%s5650_s15 + $0x10] sm:$0xff] }
  0x22   :  { %4159 = vmatprep.subr.bf16.mxu0 %v4721_v12  ;;  %4191 = vmatprep.subr.bf16.mxu1 %v4734_v16  ;;  %v4754_v25 = vpack.c.bf16 %v119_v23, %v118_v20  ;;  %v87_v26 = vld [vmem:[%s5649_s1 + $0x28] sm:$0xff]  ;;  %v104_v29 = vld [vmem:[%s5649_s1 + $0xb0] sm:$0xff]  ;;  %v105_v30 = vld [vmem:[%s5649_s1 + $0xb8] sm:$0xff] }
  0x23   :  { %3822 = vmatprep.mubr.msk.f32.mxu1 %vm120_vm1, %v78_v27  ;;  %v4164_v31 = vpack.c.bf16 %v87_v26, %v86_v24  ;;  %v4166_v33 = vpack.c.bf16 %v105_v30, %v104_v29  ;;  %v88_v34 = vld [vmem:[%s5649_s1 + $0x30] sm:$0xff]  ;;  %v89_v35 = vld [vmem:[%s5649_s1 + $0x38] sm:$0xff]  ;;  %v106_v36 = vld [vmem:[%s5649_s1 + $0xc0] sm:$0xff] }
  0x24   :  { %v107_v37 = vld [vmem:[%s5649_s1 + $0xc8] sm:$0xff]  ;;  %v4168_v38 = vpack.c.bf16 %v89_v35, %v88_v34  ;;  %v90_v42 = vld [vmem:[%s5649_s1 + $0x40] sm:$0xff]  ;;  %v108_v44 = vld [vmem:[%s5649_s1 + $0xd0] sm:$0xff] }
  0x25   :  { %4161 = vmatpush3.bf16.msra.mxu0 %v4160_v17  ;;  %4193 = vmatpush3.bf16.msra.mxu1 %v4734_v16  ;;  %v81_v40 = vld [vmem:[%s5650_s15 + $0x28] sm:$0xff]  ;;  %v4170_v41 = vpack.c.bf16 %v107_v37, %v106_v36  ;;  %v109_v45 = vld [vmem:[%s5649_s1 + $0xd8] sm:$0xff]  ;;  %v4819_v47 = vld [vmem:[%s5653_s26] sm:$0x7] }
  0x26   :  { %4163 = vmatprep.subr.bf16.mxu0 %v4162_v22  ;;  %4196 = vmatprep.subr.msk.bf16.mxu1 %vm4764_vm3, %v4754_v25  ;;  %v91_v43 = vld [vmem:[%s5649_s1 + $0x48] sm:$0xff]  ;;  %v290_v49 = vrot.slane %v4819_v47, %v289_v39 }
  0x27   :  { %v77_v46 = vld [vmem:[%s5650_s15 + $0x8] sm:$0xff]  ;;  %v4172_v48 = vpack.c.bf16 %v91_v43, %v90_v42 }
  0x28   :  { %195 = vmatprep.mubr.f32.mxu0 %v77_v46 }
  0x29   :  { %4165 = vmatpush3.bf16.msra.mxu0 %v4164_v31  ;;  %4199 = vmatpush3.bf16.msk.msra.mxu1 %vm4764_vm3, %v4754_v25 }
  0x2a   :  { %4167 = vmatprep.subr.bf16.mxu0 %v4166_v33  ;;  %4201 = vmatprep.subr.bf16.mxu1 %v4154_v3 }
  0x2c   :  { %3823 = vmatmul.mubr.msk.f32.vlgmr.msra.gmra.mrb[0].mxu1 %vm120_vm1, %v81_v40 }
  0x2d   :  { %4169 = vmatpush3.bf16.msra.mxu0 %v4168_v38 }
  0x2e   :  { %33 = vsyncpa [#allocation7], 0  ;;  %4203 = vmatpush3.bf16.msra.mxu1 %v4710_v8  ;;  %4171 = vmatprep.subr.bf16.mxu0 %v4170_v41  ;;  %v4174_v50 = vpack.c.bf16 %v109_v45, %v108_v44  ;;  %v92_v51 = vld [vmem:[%s5649_s1 + $0x50] sm:$0xff]  ;;  %v93_v52 = vld [vmem:[%s5649_s1 + $0x58] sm:$0xff]  ;;  %v4564_v3 = vmov 0.0|0.0   ;;  %v293_v6 = vsub.s32 2, %v4776_v32 }
  0x2f   :  { %4205 = vmatprep.subr.bf16.mxu1 %v4721_v12  ;;  %v110_v53 = vld [vmem:[%s5649_s1 + $0xe0] sm:$0xff]  ;;  %v111_v54 = vld [vmem:[%s5649_s1 + $0xe8] sm:$0xff]  ;;  %363 = vmatprep.mubr.f32.mxu1 %v290_v49  ;;  %v4176_v55 = vpack.c.bf16 %v93_v52, %v92_v51  ;;  %v112_v59 = vld [vmem:[%s5649_s1 + $0xf0] sm:$0xff]  ;;  %v285_v8 = vsub.s32 0, %v4776_v32  ;;  %vm4565_vm4 = vmmov 0   ;;  %v4566_v9 = vmov 0.0  }
  0x30   :  { %v4178_v56 = vpack.c.bf16 %v111_v54, %v110_v53  ;;  %v94_v57 = vld [vmem:[%s5649_s1 + $0x60] sm:$0xff]  ;;  %v95_v58 = vld [vmem:[%s5649_s1 + $0x68] sm:$0xff]  ;;  %v113_v60 = vld [vmem:[%s5649_s1 + $0xf8] sm:$0xff]  ;;  %s5654_s25 = sld [smem:[#allocation16_spill]]  ;;  %s448_s6 = sld [smem:[#allocation5]]  ;;  %v441_v27 = vadd.s32 8, %v4776_v32 }
  0x31   :  { %4173 = vmatpush3.bf16.msra.mxu0 %v4172_v48  ;;  %v4180_v61 = vpack.c.bf16 %v95_v58, %v94_v57  ;;  %v4182_v62 = vpack.c.bf16 %v113_v60, %v112_v59  ;;  %v96_v63 = vld [vmem:[%s5649_s1 + $0x70] sm:$0xff]  ;;  %v97_v0 = vld [vmem:[%s5649_s1 + $0x78] sm:$0xff]  ;;  %v76_v2 = vld [vmem:[%s5650_s15] sm:$0xff]  ;;  %v286_v10 = vrot.slane %v4819_v47, %v285_v8  ;;  %s3443_s26 = sld [smem:[#allocation5 + $0x1]]  ;;  %s5655_s3 = sld [smem:[#allocation13_spill]]  ;;  %vm473_vm9 = vcmask 1040384  }
  0x32   :  { %4207 = vmatpush3.bf16.msra.mxu1 %v4160_v17  ;;  %4175 = vmatprep.subr.bf16.mxu0 %v4174_v50  ;;  %v4184_v1 = vpack.c.bf16 %v97_v0, %v96_v63  ;;  %v80_v4 = vld [vmem:[%s5650_s15 + $0x20] sm:$0xff]  ;;  %v79_v5 = vld [vmem:[%s5650_s15 + $0x18] sm:$0xff]  ;;  %v609_v15 = vld [vmem:[%s5620_s8 + $0x8] sm:$0xff]  ;;  %s5656_s0 = sld [smem:[#allocation14_spill]]  ;;  %vm519_vm10 = vcmask 261120   ;;  %vm790_vm11 = vcmask 130048  }
  0x33   :  { %4209 = vmatprep.subr.bf16.mxu1 %v4162_v22  ;;  %v608_v14 = vld [vmem:[%s5620_s8] sm:$0xff]  ;;  %v610_v20 = vld [vmem:[%s5620_s8 + $0x10] sm:$0xff]  ;;  %v611_v22 = vld [vmem:[%s5620_s8 + $0x18] sm:$0xff]  ;;  %s4567_s30 = smov 112   ;;  %vm1212_vm12 = vcmask 1046528   ;;  %vm886_vm0 = vcmask 65536  }
  0x34   :  { %v4252_v23 = vpack.c.bf16 %v611_v22, %v610_v20  ;;  %vm5020_vm13 = vmpackc.low %vm790_vm11, %vm790_vm11  ;;  %s4568_s23 = smov 16   ;;  %s5661_s28 = sld [smem:[#allocation17_spill]] }
  0x35   :  { %4177 = vmatpush3.bf16.msra.mxu0 %v4176_v55  ;;  %vm5041_vm14 = vmpackc.low %vm473_vm9, %vm4563_vm2  ;;  %vm991_vm2 = vcmask 122880  }
  0x36   :  { %4211 = vmatpush3.bf16.msra.mxu1 %v4164_v31  ;;  %4179 = vmatprep.subr.bf16.mxu0 %v4178_v56  ;;  %v508_v11 = vld [vmem:[%s5654_s25] sm:$0xff]  ;;  %v509_v12 = vld [vmem:[%s5654_s25 + $0x8] sm:$0xff]  ;;  %v510_v17 = vld [vmem:[%s5654_s25 + $0x10] sm:$0xff]  ;;  %v4919_v28 = vstv %s448_s6 }
  0x37   :  { %4213 = vmatprep.subr.bf16.mxu1 %v4166_v33  ;;  %v4243_v13 = vpack.c.bf16 %v509_v12, %v508_v11  ;;  %v511_v18 = vld [vmem:[%s5654_s25 + $0x18] sm:$0xff]  ;;  %v445_v26 = vld [vmem:[%s5655_s3] sm:$0xff]  ;;  %v446_v30 = vld [vmem:[%s5655_s3 + $0x8] sm:$0x1]  ;;  %vm451_vm5 = vcmp.le.s32.totalorder %v441_v27, %v4919_v28  ;;  %v4925_v31 = vstv %s3443_s26  ;;  %vm450_vm7 = vcmp.le.s32.totalorder %v4776_v32, %v4919_v28 }
  0x38   :  { %v4246_v19 = vpack.c.bf16 %v511_v18, %v510_v17  ;;  %v459_v29 = vrot.slane %v445_v26, %v285_v8  ;;  %v3442_v35 = vld [vmem:[%s5656_s0] ss:$0 sm:$0xff]  ;;  %vm483_vm6 = vcmp.le.s32.totalorder %v441_v27, %v4925_v31  ;;  %vm482_vm8 = vcmp.le.s32.totalorder %v4776_v32, %v4925_v31 }
  0x39   :  { %4181 = vmatpush3.bf16.msra.mxu0 %v4180_v61  ;;  %v3444_v12 = vld [vmem:[%s5619_s7] ss:$0 sm:$0xff] }
  0x3a   :  { %4215 = vmatpush3.bf16.msra.mxu1 %v4168_v38  ;;  %4183 = vmatprep.subr.bf16.mxu0 %v4182_v62  ;;  %v461_v36 = vsel %vm451_vm5, %v446_v30, %v459_v29  ;;  %v489_v42 = vsel %vm483_vm6, %v446_v30, %v459_v29  ;;  %v460_v52 = vsel %vm450_vm7, %v445_v26, %v459_v29  ;;  %vm1207_vm5 = vcmask 261248  }
  0x3b   :  { %4217 = vmatprep.subr.bf16.mxu1 %v4170_v41  ;;  %v469_v39 = vadd.f32 %v3442_v35, %v461_v36  ;;  %v488_v53 = vsel %vm482_vm8, %v445_v26, %v459_v29  ;;  %v468_v57 = vadd.f32 %v3442_v35, %v460_v52  ;;  %vm1209_vm6 = vcmask 254080  }
  0x3c   :  { %v490_v58 = vadd.f32 %v3442_v35, %v488_v53  ;;  %vm1748_vm7 = vcmask 254976   ;;  %vm1919_vm8 = vcmask 523264  }
  0x3d   :  { %4185 = vmatpush3.bf16.msra.mxu0 %v4184_v1 }
  0x3e   :  { %4219 = vmatpush3.bf16.msra.mxu1 %v4172_v48  ;;  %4232 = vmatprep.subr.bf16.mxu0 %v4564_v3 }
  0x3f   :  { %4221 = vmatprep.subr.bf16.mxu1 %v4174_v50 }
  0x40   :  { %196 = vmatmul.mubr.f32.vlgmr.msra.gmra.mrb[0].mxu0 %v76_v2 }
  0x41   :  { %200 = vmatprep.mubr.f32.mxu0 %v80_v4  ;;  %4234 = vmatpush3.bf16.msra.mxu0 %v4708_v7  ;;  %v294_v7 = vrot.slane %v4819_v47, %v293_v6  ;;  %v491_v47 = vadd.f32 %v3442_v35, %v489_v42  ;;  %v700_v6 = vld [vmem:[%s5622_s10 + $0x8] sm:$0xff] }
  0x42   :  { %4223 = vmatpush3.bf16.msra.mxu1 %v4176_v55  ;;  %4235 = vmatprep.subr.bf16.mxu0 %v4564_v3 }
  0x43   :  { %4225 = vmatprep.subr.bf16.mxu1 %v4178_v56 }
  0x44   :  { %201 = vmatmul.mubr.f32.gmra.mrb[2].mxu0 %v79_v5  ;;  %v699_v5 = vld [vmem:[%s5622_s10] sm:$0xff] }
  0x45   :  { %4237 = vmatpush3.bf16.msra.mxu0 %v4734_v16  ;;  %3837 = vmatprep.mubr.msk.f32.mxu0 %vm4565_vm4, %v4566_v9  ;;  %v4898_v16 = vpack.c.bf16 %v609_v15, %v608_v14  ;;  %v4255_v8 = vpack.c.bf16 %v700_v6, %v699_v5 }
  0x46   :  { %4227 = vmatpush3.bf16.msra.mxu1 %v4180_v61  ;;  %4238 = vmatprep.subr.bf16.mxu0 %v4564_v3 }
  0x47   :  { %4229 = vmatprep.subr.bf16.mxu1 %v4182_v62 }
  0x49   :  { %4241 = vmatpush3.bf16.msk.msra.mxu0 %vm4764_vm3, %v4754_v25 }
  0x4a   :  { %4231 = vmatpush3.bf16.msra.mxu1 %v4184_v1  ;;  %4242 = vmatprep.subr.bf16.mxu0 %v4564_v3 }
  0x4b   :  { %4406 = vmatprep.subr.bf16.mxu1 %v4564_v3 }
  0x4c   :  { %3838 = vmatmul.mubr.msk.f32.vlgmr.msra.gmra.mrb[4].mxu0 %vm120_vm1, %v294_v7  ;;  %v701_v7 = vld [vmem:[%s5622_s10 + $0x10] sm:$0xff]  ;;  %vm882_vm1 = vcmask 72704  }
  0x4d   :  { %364 = vmatmul.mubr.f32.vlgmr.msra.gmra.mrb[2].mxu1 %v286_v10  ;;  %3848 = vmatprep.mubr.msk.f32.mxu0 %vm4565_vm4, %v4566_v9  ;;  %v702_v10 = vld [vmem:[%s5622_s10 + $0x18] sm:$0xff] }
  0x4e   :  { %3868 = vmatprep.mubr.msk.f32.mxu1 %vm4565_vm4, %v4566_v9  ;;  %4244 = vmatpush3.bf16.msra.mxu0 %v4243_v13  ;;  %v4258_v11 = vpack.c.bf16 %v702_v10, %v701_v7  ;;  %v5075_v7 = vand.u32 127, %v283_v21 }
  0x4f   :  { %4245 = vmatprep.subr.bf16.mxu0 %v4564_v3  ;;  %4408 = vmatpush3.bf16.msra.mxu1 %v4898_v16 }
  0x50   :  { %4407 = vmatprep.subr.bf16.mxu1 %v4564_v3  ;;  %vm477_vm15 = vcmp.gt.s32.totalorder %v5075_v7, %v4919_v28  ;;  %vm498_vm3 = vcmp.gt.s32.totalorder %v5075_v7, %v4925_v31 }
  0x52   :  { %4247 = vmatpush3.bf16.msra.mxu0 %v4246_v19 }
  0x53   :  { %4248 = vmatprep.subr.bf16.mxu0 %v4564_v3  ;;  %4409 = vmatpush3.bf16.msra.mxu1 %v4252_v23 }
  0xff   :  { %v3824_v24 = vpop.f32.mrb[0].mxu1 }
 0x100   :  { %v272_v25 = vpop.f32.mrb[1].mxu1 }
 0x113   :  { %v3612_v33 = vpop.f32.mrb[0].mxu0 }
 0x114   :  { %v3613_v34 = vpop.f32.mrb[1].mxu0 }
 0x115   :  { %v3614_v37 = vadd.f32 %v3613_v34, %v3612_v33 }
 0x117   :  { %v273_v38 = vadd.f32 %v3614_v37, %v272_v25  ;;  %v3615_v40 = vpop.f32.mrb[2].mxu0 }
 0x118   :  { %v3616_v41 = vpop.f32.mrb[3].mxu0 }
 0x119   :  { %v471_v43 = vrot.slane %v273_v38, 7  ;;  %v3617_v44 = vadd.f32 %v3616_v41, %v3615_v40 }
 0x11b   :  { %v476_v45 = vadd.f32 %v471_v43, %v469_v39  ;;  %v278_v46 = vadd.f32 %v3824_v24, %v3617_v44 }
 0x11d   :  { %v493_v48 = vrot.slane %v278_v46, 7  ;;  %v3452_v46 = vld [vmem:[%s5623_s11] ss:$0 sm:$0xff] }
 0x11f   :  { %v497_v49 = vadd.f32 %v493_v48, %v491_v47  ;;  %v435_v50 = vpop.f32.mrb[4].mxu0 }
 0x120   :  { %v3658_v51 = vpop.f32.mrb[2].mxu1  ;;  %v3839_v54 = vpop.f32.mrb[5].mxu0 }
 0x121   :  { %v3659_v55 = vpop.f32.mrb[3].mxu1  ;;  %v503_v0 = vrot.slane %v497_v49, 7 }
 0x122   :  { %v3660_v56 = vadd.f32 %v3659_v55, %v3658_v51  ;;  %v3547_v51 = vld [vmem:[%s5624_s12 + $0x20] sm:$0xff] }
 0x124   :  { %v436_v59 = vadd.f32 %v3660_v56, %v435_v50 }
 0x126   :  { %v474_v60 = vsel %vm473_vm9, %v436_v59, %v471_v43  ;;  %v495_v61 = vsel %vm473_vm9, %v436_v59, %v493_v48 }
 0x127   :  { %v4937_v62 = vadd.f32 %v474_v60, %v468_v57  ;;  %v496_v63 = vadd.f32 %v495_v61, %v490_v58 }
 0x129   :  { %v502_v1 = vrot.slane %v496_v63, 7  ;;  %3849 = vmatmul.mubr.msk.f32.vlgmr.msra.gmra.mrb[6].mxu0 %vm519_vm10, %v4937_v62 }
 0x12a   :  { %3851 = vmatprep.mubr.msk.f32.mxu0 %vm4565_vm4, %v4566_v9  ;;  %4250 = vmatpush3.bf16.msra.mxu0 %v4898_v16  ;;  %v3448_v16 = vld [vmem:[%s5621_s9] ss:$0 sm:$0xff] }
 0x12b   :  { %v4945_v2 = vsel %vm473_vm9, %v476_v45, %v502_v1  ;;  %4251 = vmatprep.subr.bf16.mxu0 %v4564_v3  ;;  %v4949_v4 = vsel %vm473_vm9, %v502_v1, %v503_v0 }
 0x12c   :  { %3869 = vmatmul.mubr.msk.f32.vlgmr.msra.gmra.mrb[4].mxu1 %vm519_vm10, %v4945_v2 }
 0x12d   :  { %3852 = vmatmul.mubr.msk.f32.gmra.mrb[8].mxu0 %vm519_vm10, %v4945_v2  ;;  %3871 = vmatprep.mubr.msk.f32.mxu1 %vm4565_vm4, %v4566_v9 }
 0x12e   :  { %3854 = vmatprep.mubr.msk.f32.mxu0 %vm4565_vm4, %v4566_v9  ;;  %4253 = vmatpush3.bf16.msra.mxu0 %v4252_v23 }
 0x12f   :  { %4254 = vmatprep.subr.bf16.mxu0 %v4564_v3 }
 0x130   :  { %3872 = vmatmul.mubr.msk.f32.gmra.mrb[6].mxu1 %vm519_vm10, %v4949_v4 }
 0x131   :  { %3855 = vmatmul.mubr.msk.f32.gmra.mrb[10].mxu0 %vm519_vm10, %v4949_v4 }
 0x132   :  { %3865 = vmatprep.mubr.msk.f32.mxu0 %vm4565_vm4, %v4566_v9 }
 0x135   :  { %3866 = vmatmul.mubr.msk.f32.vlgmr.msra.gmra.mrb[12].mxu0 %vm519_vm10, %v4937_v62 }
 0x136   :  { %4256 = vmatpush3.bf16.msra.mxu0 %v4255_v8  ;;  %3882 = vmatprep.mubr.msk.f32.mxu0 %vm4565_vm4, %v4566_v9 }
 0x137   :  { %4257 = vmatprep.subr.bf16.mxu0 %v4564_v3 }
 0x13a   :  { %4259 = vmatpush3.bf16.msra.mxu0 %v4258_v11  ;;  %v5080_v11 = vsel %vm477_vm15, -1e+09, %v4566_v9 }
 0x13d   :  { %3883 = vmatmul.mubr.msk.f32.vlgmr.msra.gmra.mrb[14].mxu0 %vm519_vm10, %v4937_v62 }
 0x13e   :  { %3885 = vmatprep.mubr.msk.f32.mxu0 %vm4565_vm4, %v4566_v9 }
 0x141   :  { %3886 = vmatmul.mubr.msk.f32.gmra.mrb[16].mxu0 %vm519_vm10, %v4945_v2 }
 0x142   :  { %3888 = vmatprep.mubr.msk.f32.mxu0 %vm4565_vm4, %v4566_v9 }
 0x145   :  { %3889 = vmatmul.mubr.msk.f32.gmra.mrb[18].mxu0 %vm519_vm10, %v4949_v4 }
 0x1fc   :  { %v594_v13 = vpop.f32.mrb[6].mxu0 }
 0x1fd   :  { %v595_v14 = vadd.f32 %v3444_v12, %v594_v13  ;;  %v3850_v15 = vpop.f32.mrb[7].mxu0 }
 0x1ff   :  { %v690_v17 = vpop.f32.mrb[4].mxu1  ;;  %3895 = vmatprep.mubr.msk.f32.mxu1 %vm790_vm11, %v595_v14 }
 0x200   :  { %v599_v18 = vpop.f32.mrb[8].mxu0  ;;  %v3870_v19 = vpop.f32.mrb[5].mxu1  ;;  %v691_v23 = vadd.f32 %v3448_v16, %v690_v17 }
 0x201   :  { %v5000_v20 = vadd.f32 %v3444_v12, %v599_v18  ;;  %v3853_v22 = vpop.f32.mrb[9].mxu0 }
 0x202   :  { %v1217_v33 = vrot.slane %v691_v23, 1 }
 0x203   :  { %v695_v24 = vpop.f32.mrb[6].mxu1  ;;  %995 = vrot.lane.b32.xlu1 %v5000_v20, %s4567_s30 }
 0x204   :  { %v696_v25 = vadd.f32 %v3448_v16, %v695_v24  ;;  %v604_v26 = vpop.f32.mrb[10].mxu0  ;;  %v3873_v27 = vpop.f32.mrb[7].mxu1 }
 0x205   :  { %v5004_v29 = vadd.f32 %v3444_v12, %v604_v26  ;;  %v3856_v30 = vpop.f32.mrb[11].mxu0 }
 0x206   :  { %v5006_v34 = vrot.slane %v696_v25, 1 }
 0x208   :  { %v5010_v35 = vsel %vm1212_vm12, %v1217_v33, %v5006_v34  ;;  %v685_v36 = vpop.f32.mrb[12].mxu0 }
 0x209   :  { %v5014_v37 = vpack.c.bf16 %v5006_v34, %v5010_v35  ;;  %v686_v38 = vadd.f32 %v3448_v16, %v685_v36  ;;  %v3867_v39 = vpop.f32.mrb[13].mxu0  ;;  %v4430_v40 = vpack.i.bf16 %v5006_v34, %v5010_v35 }
 0x20b   :  { %v4260_v42 = vpack.c.bf16 %v691_v23, %v686_v38  ;;  %v4420_v43 = vpack.i.bf16 %v691_v23, %v686_v38 }
 0x20d   :  { %4421 = vrot.lane.b32.xlu0 %v4420_v43, %s4567_s30  ;;  %4262 = vmatprep.subr.msk.bf16.mxu1 %vm5020_vm13, %v4260_v42 }
 0x20e   :  { %4265 = vmatpush3.bf16.xpose.msk.msra.mxu1 %vm5020_vm13, %v4260_v42 }
 0x210   :  { %v776_v44 = vpop.f32.mrb[14].mxu0 }
 0x211   :  { %v3884_v45 = vpop.f32.mrb[15].mxu0  ;;  %993 = vrot.lane.b32.xlu0 %v595_v14, %s4567_s30  ;;  %v5033_v48 = vadd.f32 %v3452_v46, %v776_v44 }
 0x214   :  { %v781_v47 = vpop.f32.mrb[16].mxu0 }
 0x215   :  { %v5035_v49 = vadd.f32 %v3452_v46, %v781_v47  ;;  %v3887_v50 = vpop.f32.mrb[17].mxu0  ;;  %3896 = vmatmul.mubr.msk.f32.vlgmr.msra.gmra.mrb[8].mxu1 %vm790_vm11, %v5000_v20 }
 0x217   :  { %v4266_v52 = vpack.c.bf16 %v5035_v49, %v5033_v48  ;;  %v4425_v53 = vpack.i.bf16 %v5035_v49, %v5033_v48  ;;  %v1330_v57 = vrot.slane %v5035_v49, 1 }
 0x218   :  { %v786_v54 = vpop.f32.mrb[18].mxu0 }
 0x219   :  { %v787_v55 = vadd.f32 %v3452_v46, %v786_v54  ;;  %v3890_v56 = vpop.f32.mrb[19].mxu0  ;;  %4268 = vmatprep.subr.msk.bf16.mxu1 %vm5041_vm14, %v4266_v52 }
 0x21a   :  { %4271 = vmatpush3.bf16.msk.msra.mxu1 %vm5041_vm14, %v4266_v52 }
 0x21b   :  { %v5054_v58 = vrot.slane %v787_v55, 1 }
 0x21d   :  { %v5058_v59 = vsel %vm1212_vm12, %v1330_v57, %v5054_v58 }
 0x21e   :  { %v4290_v60 = vpack.c.bf16 %v5054_v58, %v5058_v59  ;;  %v4435_v61 = vpack.i.bf16 %v5054_v58, %v5058_v59  ;;  %v1638_v58 = vld [vmem:[%s5624_s12 + $0x8] sm:$0xff] }
 0x275   :  { %v996_v8 = vpop.permute.xlu1 %995 }
 0x27f   :  { %v4422_v63 = vpop.permute.xlu0 %4421 }
 0x280   :  { %v4424_v0 = vunpack.i.h.bf16 %v4422_v63  ;;  %v4423_v1 = vunpack.i.l.bf16 %v4422_v63 }
 0x282   :  { %v4272_v5 = vpack.c.bf16 %v4424_v0, %v4423_v1  ;;  %v1214_v0 = vrot.slane %v5004_v29, 1 }
 0x283   :  { %v994_v6 = vpop.permute.xlu0 %993 }
 0x284   :  { %4274 = vmatprep.subr.msk.bf16.mxu0 %vm5020_vm13, %v4272_v5  ;;  %3909 = vmatprep.mubr.msk.f32.mxu0 %vm790_vm11, %v994_v6  ;;  %v1213_v6 = vrot.slane %v5000_v20, 1 }
 0x285   :  { %4277 = vmatpush3.bf16.xpose.msk.msra.mxu0 %vm5020_vm13, %v4272_v5 }
 0x286   :  { %4292 = vmatprep.subr.msk.bf16.mxu0 %vm5041_vm14, %v4290_v60 }
 0x28c   :  { %3910 = vmatmul.mubr.msk.f32.vlgmr.msra.gmra.mrb[20].mxu0 %vm790_vm11, %v996_v8  ;;  %v1215_v8 = vsel %vm1212_vm12, %v1213_v6, %v1214_v0 }
 0x28d   :  { %4295 = vmatpush3.bf16.msk.msra.mxu0 %vm5041_vm14, %v4290_v60 }
 0x2e8   :  { %v3897_v10 = vpop.f32.mrb[8].mxu1 }
 0x2e9   :  { %v879_v12 = vmul.f32 0.25, %v3897_v10  ;;  %v869_v13 = vpop.f32.mrb[9].mxu1 }
 0x2ea   :  { %v878_v14 = vmul.f32 0.25, %v869_v13 }
 0x2eb   :  { %v881_v15 = vadd.f32 %v879_v12, %v5080_v11 }
 0x2ec   :  { %v880_v16 = vadd.f32 %v878_v14, %v5080_v11 }
 0x2ed   :  { %v887_v17 = vsel %vm886_vm0, %v881_v15, -inf }
 0x2ee   :  { %888 = vmax.xlane.f32.xlu0 %v887_v17  ;;  %v883_v21 = vsel %vm882_vm1, %v880_v16, -inf }
 0x2ef   :  { %884 = vmax.xlane.f32.xlu1 %v883_v21 }
 0x35f   :  { %v3911_v28 = vpop.f32.mrb[20].mxu0 }
 0x360   :  { %v1085_v18 = vmul.f32 0.25, %v3911_v28  ;;  %v1075_v19 = vpop.f32.mrb[21].mxu0 }
 0x361   :  { %v1084_v22 = vmul.f32 0.25, %v1075_v19 }
 0x362   :  { %v1087_v23 = vadd.f32 %v1085_v18, %v5080_v11 }
 0x363   :  { %v1086_v24 = vadd.f32 %v1084_v22, %v5080_v11 }
 0x364   :  { %v1091_v25 = vsel %vm886_vm0, %v1087_v23, -inf }
 0x365   :  { %1092 = vmax.xlane.f32.xlu1 %v1091_v25  ;;  %v1088_v26 = vsel %vm882_vm1, %v1086_v24, -inf }
 0x366   :  { %1089 = vmax.xlane.f32.xlu0 %v1088_v26 }
 0x37b   :  { %v889_v27 = vpop.xlane.xlu0 %888 }
 0x37c   :  { %v891_v30 = vsub.f32 %v881_v15, %v889_v27  ;;  %v885_v33 = vpop.xlane.xlu1 %884 }
 0x37d   :  { %v890_v36 = vsub.f32 %v880_v16, %v885_v33 }
 0x37e   :  { %v894_v38 = vmul.f32 1.442695, %v891_v30 }
 0x37f   :  { %v892_v39 = vmul.f32 1.442695, %v890_v36 }
 0x380   :  { %4460 = vpow2.f32 %v894_v38 }
 0x381   :  { %4462 = vpow2.f32 %v892_v39 }
 0x38a   :  { %v4461_v42 = vpop.eup %4460 }
 0x38b   :  { %v4463_v43 = vpop.eup %4462  ;;  %v899_v44 = vsel %vm886_vm0, %v4461_v42, 0.0 }
 0x38c   :  { %900 = vadd.xlane.f32.xlu1 %v899_v44  ;;  %v896_v45 = vsel %vm882_vm1, %v4463_v43, 0.0 }
 0x38d   :  { %897 = vadd.xlane.f32.xlu0 %v896_v45 }
 0x3f2   :  { %v1093_v46 = vpop.xlane.xlu1 %1092 }
 0x3f3   :  { %v1095_v47 = vsub.f32 %v1087_v23, %v1093_v46  ;;  %v1090_v50 = vpop.xlane.xlu0 %1089 }
 0x3f4   :  { %v1094_v52 = vsub.f32 %v1086_v24, %v1090_v50 }
 0x3f5   :  { %v1098_v54 = vmul.f32 1.442695, %v1095_v47 }
 0x3f6   :  { %v1096_v55 = vmul.f32 1.442695, %v1094_v52 }
 0x3f7   :  { %4464 = vpow2.f32 %v1098_v54 }
 0x3f8   :  { %4466 = vpow2.f32 %v1096_v55 }
 0x401   :  { %v4465_v56 = vpop.eup %4464 }
 0x402   :  { %v4467_v57 = vpop.eup %4466  ;;  %v1103_v60 = vsel %vm886_vm0, %v4465_v56, 0.0 }
 0x403   :  { %1104 = vadd.xlane.f32.xlu1 %v1103_v60  ;;  %v1100_v63 = vsel %vm882_vm1, %v4467_v57, 0.0 }
 0x404   :  { %1101 = vadd.xlane.f32.xlu0 %v1100_v63 }
 0x419   :  { %v901_v1 = vpop.xlane.xlu1 %900 }
 0x41a   :  { %4468 = vrcp.f32 %v901_v1  ;;  %4426 = vrot.lane.b32.xlu0 %v4425_v53, %s4567_s30  ;;  %v898_v5 = vpop.xlane.xlu0 %897 }
 0x41b   :  { %4470 = vrcp.f32 %v898_v5 }
 0x41e   :  { %1419 = vrot.lane.b32.xlu0 %v1215_v8, %s4567_s30 }
 0x422   :  { %1421 = vrot.lane.b32.xlu0 %v1214_v0, %s4567_s30 }
 0x424   :  { %v4469_v10 = vpop.eup %4468 }
 0x425   :  { %v4471_v12 = vpop.eup %4470  ;;  %v905_v13 = vmul.f32 %v4469_v10, %v4461_v42 }
 0x426   :  { %v904_v29 = vmul.f32 %v4471_v12, %v4463_v43 }
 0x428   :  { %3902 = vmatprep.mubr.msk.f32.mxu1 %vm882_vm1, %v904_v29 }
 0x429   :  { %3903 = vmatmul.mubr.msk.f32.vlgmr.msra.gmra.mrb[10].mxu1 %vm882_vm1, %v905_v13 }
 0x490   :  { %v1105_v48 = vpop.xlane.xlu1 %1104 }
 0x491   :  { %4472 = vrcp.f32 %v1105_v48  ;;  %v1102_v49 = vpop.xlane.xlu0 %1101 }
 0x492   :  { %4474 = vrcp.f32 %v1102_v49 }
 0x495   :  { %v4427_v20 = vpop.permute.xlu0 %4426 }
 0x496   :  { %v4429_v53 = vunpack.i.h.bf16 %v4427_v20  ;;  %v4428_v14 = vunpack.i.l.bf16 %v4427_v20 }
 0x498   :  { %v4278_v15 = vpack.c.bf16 %v4429_v53, %v4428_v14 }
 0x499   :  { %v1420_v6 = vpop.permute.xlu0 %1419 }
 0x49a   :  { %4280 = vmatprep.subr.msk.bf16.mxu1 %vm5041_vm14, %v4278_v15 }
 0x49b   :  { %v4473_v16 = vpop.eup %4472  ;;  %4283 = vmatpush3.bf16.msk.msra.mxu1 %vm5041_vm14, %v4278_v15 }
 0x49c   :  { %v4475_v17 = vpop.eup %4474  ;;  %4286 = vmatprep.subr.msk.bf16.mxu1 %vm5020_vm13, %v5014_v37  ;;  %v1109_v28 = vmul.f32 %v4473_v16, %v4465_v56 }
 0x49d   :  { %v1108_v21 = vmul.f32 %v4475_v17, %v4467_v57  ;;  %v1422_v34 = vpop.permute.xlu0 %1421 }
 0x49f   :  { %3916 = vmatprep.mubr.msk.f32.mxu1 %vm882_vm1, %v1108_v21 }
 0x4a0   :  { %3917 = vmatmul.mubr.msk.f32.vlgmr.msra.gmra.mrb[12].mxu1 %vm882_vm1, %v1109_v28 }
 0x4a1   :  { %3923 = vmatprep.mubr.msk.f32.mxu1 %vm790_vm11, %v1215_v8 }
 0x4a4   :  { %4289 = vmatpush3.bf16.xpose.msk.msra.mxu1 %vm5020_vm13, %v5014_v37  ;;  %v5128_v37 = vsel %vm498_vm3, -1e+09, %v4566_v9 }
 0x4ab   :  { %3924 = vmatmul.mubr.msk.f32.vlgmr.msra.gmra.mrb[14].mxu1 %vm790_vm11, %v1214_v0 }
 0x4fc   :  { %v3904_v18 = vpop.f32.mrb[10].mxu1 }
 0x4fd   :  { %992 = vst.msk [vmem:[#allocation2 + $0x8] sm:$0x1] %vm991_vm2, %v3904_v18  ;;  %v981_v19 = vpop.f32.mrb[11].mxu1 }
 0x4fe   :  { %990 = vst.msk [vmem:[#allocation2] sm:$0xff] %vm790_vm11, %v981_v19 }
 0x573   :  { %v5121_v22 = vpop.f32.mrb[12].mxu1 }
 0x574   :  { %v5123_v23 = vpop.f32.mrb[13].mxu1 }
 0x57e   :  { %v3925_v24 = vpop.f32.mrb[14].mxu1 }
 0x57f   :  { %v1294_v25 = vpop.f32.mrb[15].mxu1  ;;  %v1304_v26 = vmul.f32 0.25, %v3925_v24 }
 0x580   :  { %v1303_v27 = vmul.f32 0.25, %v1294_v25 }
 0x581   :  { %v1306_v36 = vadd.f32 %v1304_v26, %v5128_v37 }
 0x582   :  { %v1305_v30 = vadd.f32 %v1303_v27, %v5128_v37 }
 0x583   :  { %v1310_v38 = vsel %vm886_vm0, %v1306_v36, -inf }
 0x584   :  { %v1307_v33 = vsel %vm882_vm1, %v1305_v30, -inf }
 0x585   :  { %1308 = vmax.xlane.f32.xlu1 %v1307_v33 }
 0x589   :  { %1311 = vmax.xlane.f32.xlu1 %v1310_v38  ;;  %v1637_v38 = vld [vmem:[%s5624_s12] sm:$0xff] }
 0x612   :  { %v1309_v39 = vpop.xlane.xlu1 %1308 }
 0x613   :  { %v1313_v42 = vsub.f32 %v1305_v30, %v1309_v39 }
 0x615   :  { %v1315_v43 = vmul.f32 1.442695, %v1313_v42  ;;  %v4309_v42 = vpack.c.bf16 %v1638_v58, %v1637_v38  ;;  %v3488_v58 = vld [vmem:[%s5626_s14] ss:$0 sm:$0xff] }
 0x616   :  { %v1312_v31 = vpop.xlane.xlu1 %1311 }
 0x617   :  { %v1314_v7 = vsub.f32 %v1306_v36, %v1312_v31 }
 0x619   :  { %v1317_v44 = vmul.f32 1.442695, %v1314_v7  ;;  %v1639_v7 = vld [vmem:[%s5624_s12 + $0x10] sm:$0xff] }
 0x61b   :  { %4476 = vpow2.f32 %v1317_v44 }
 0x61c   :  { %4478 = vpow2.f32 %v1315_v43  ;;  %v1640_v43 = vld [vmem:[%s5624_s12 + $0x18] sm:$0xff] }
 0x61d   :  { %v4312_v44 = vpack.c.bf16 %v1640_v43, %v1639_v7  ;;  %v1905_v7 = vld [vmem:[%s5630_s18 + $0x8] sm:$0xff]  ;;  %v1906_v43 = vld [vmem:[%s5630_s18 + $0x10] sm:$0xff] }
 0x625   :  { %v4477_v45 = vpop.eup %4476 }
 0x626   :  { %v1322_v46 = vsel %vm886_vm0, %v4477_v45, 0.0  ;;  %v4479_v47 = vpop.eup %4478 }
 0x627   :  { %1323 = vadd.xlane.f32.xlu1 %v1322_v46  ;;  %v1319_v50 = vsel %vm882_vm1, %v4479_v47, 0.0 }
 0x62b   :  { %1320 = vadd.xlane.f32.xlu1 %v1319_v50 }
 0x63c   :  { %4431 = vrot.lane.b32.xlu1 %v4430_v40, %s4567_s30 }
 0x6b4   :  { %v1324_v52 = vpop.xlane.xlu1 %1323 }
 0x6b5   :  { %4480 = vrcp.f32 %v1324_v52 }
 0x6b8   :  { %v1321_v54 = vpop.xlane.xlu1 %1320 }
 0x6b9   :  { %4482 = vrcp.f32 %v1321_v54  ;;  %v3484_v54 = vld [vmem:[%s5625_s13] ss:$0 sm:$0xff] }
 0x6bc   :  { %v4432_v55 = vpop.permute.xlu1 %4431 }
 0x6bd   :  { %v4434_v56 = vunpack.i.h.bf16 %v4432_v55  ;;  %v4433_v57 = vunpack.i.l.bf16 %v4432_v55 }
 0x6bf   :  { %v4296_v60 = vpack.c.bf16 %v4434_v56, %v4433_v57  ;;  %v4481_v63 = vpop.eup %4480 }
 0x6c0   :  { %v1328_v5 = vmul.f32 %v4481_v63, %v4477_v45 }
 0x6c1   :  { %4298 = vmatprep.subr.msk.bf16.mxu0 %vm5020_vm13, %v4296_v60 }
 0x6c3   :  { %v4483_v0 = vpop.eup %4482 }
 0x6c4   :  { %v1327_v1 = vmul.f32 %v4483_v0, %v4479_v47 }
 0x6c6   :  { %3930 = vmatprep.mubr.msk.f32.mxu0 %vm882_vm1, %v1327_v1 }
 0x6c7   :  { %3931 = vmatmul.mubr.msk.f32.vlgmr.msra.gmra.mrb[22].mxu0 %vm882_vm1, %v1328_v5 }
 0x6c8   :  { %4301 = vmatpush3.bf16.xpose.msk.msra.mxu0 %vm5020_vm13, %v4296_v60  ;;  %3937 = vmatprep.mubr.msk.f32.mxu0 %vm790_vm11, %v1420_v6 }
 0x6c9   :  { %4314 = vmatprep.subr.bf16.mxu0 %v4564_v3 }
 0x6cf   :  { %3938 = vmatmul.mubr.msk.f32.vlgmr.msra.gmra.mrb[24].mxu0 %vm790_vm11, %v1422_v34 }
 0x6d0   :  { %3972 = vmatprep.mubr.msk.f32.mxu0 %vm4565_vm4, %v4566_v9 }
 0x79a   :  { %v3932_v35 = vpop.f32.mrb[22].mxu0 }
 0x79b   :  { %1418 = vst.msk [vmem:[#allocation2 + $0x11] sm:$0x1] %vm991_vm2, %v3932_v35  ;;  %v1408_v40 = vpop.f32.mrb[23].mxu0 }
 0x79c   :  { %1417 = vst.msk [vmem:[#allocation2 + $0x9] sm:$0xff] %vm790_vm11, %v1408_v40 }
 0x7a2   :  { %v3939_v8 = vpop.f32.mrb[24].mxu0 }
 0x7a3   :  { %v1511_v10 = vmul.f32 0.25, %v3939_v8  ;;  %v1501_v12 = vpop.f32.mrb[25].mxu0 }
 0x7a4   :  { %v1510_v29 = vmul.f32 0.25, %v1501_v12 }
 0x7a5   :  { %v1513_v13 = vadd.f32 %v1511_v10, %v5128_v37 }
 0x7a6   :  { %v1512_v48 = vadd.f32 %v1510_v29, %v5128_v37 }
 0x7a7   :  { %v1517_v49 = vsel %vm886_vm0, %v1513_v13, -inf }
 0x7a8   :  { %1518 = vmax.xlane.f32.xlu1 %v1517_v49  ;;  %v1514_v20 = vsel %vm882_vm1, %v1512_v48, -inf }
 0x7a9   :  { %1515 = vmax.xlane.f32.xlu0 %v1514_v20 }
 0x7b9   :  { %1201 = vrot.lane.b32.xlu1 %v5123_v23, %s4568_s23 }
 0x7bd   :  { %1203 = vrot.lane.b32.xlu1 %v5121_v22, %s4568_s23 }
 0x835   :  { %v1519_v53 = vpop.xlane.xlu1 %1518 }
 0x836   :  { %v1521_v14 = vsub.f32 %v1513_v13, %v1519_v53  ;;  %v1516_v15 = vpop.xlane.xlu0 %1515 }
 0x837   :  { %v1520_v16 = vsub.f32 %v1512_v48, %v1516_v15 }
 0x838   :  { %v1524_v17 = vmul.f32 1.442695, %v1521_v14  ;;  %v1802_v14 = vld [vmem:[%s5628_s16 + $0x8] sm:$0xff] }
 0x839   :  { %v1522_v21 = vmul.f32 1.442695, %v1520_v16  ;;  %v1202_v28 = vpop.permute.xlu1 %1201  ;;  %v1804_v16 = vld [vmem:[%s5628_s16 + $0x18] sm:$0xff] }
 0x83a   :  { %4484 = vpow2.f32 %v1524_v17  ;;  %1208 = vst.msk [vmem:[#allocation2] sm:$0xff] %vm1207_vm5, %v1202_v28 }
 0x83b   :  { %4486 = vpow2.f32 %v1522_v21 }
 0x83d   :  { %v1204_v18 = vpop.permute.xlu1 %1203 }
 0x83e   :  { %1210 = vst.msk [vmem:[#allocation2 + $0x8] sm:$0x1] %vm1209_vm6, %v1204_v18 }
 0x841   :  { %v1634_v45 = vld [vmem:[#allocation2] sm:$0xff] }
 0x844   :  { %v4485_v19 = vpop.eup %4484 }
 0x845   :  { %v1529_v23 = vsel %vm886_vm0, %v4485_v19, 0.0  ;;  %v4487_v22 = vpop.eup %4486 }
 0x846   :  { %1530 = vadd.xlane.f32.xlu0 %v1529_v23  ;;  %v1526_v24 = vsel %vm882_vm1, %v4487_v22, 0.0 }
 0x84a   :  { %1527 = vadd.xlane.f32.xlu0 %v1526_v24 }
 0x860   :  { %4436 = vrot.lane.b32.xlu0 %v4435_v61, %s4567_s30 }
 0x8d3   :  { %v1531_v25 = vpop.xlane.xlu0 %1530 }
 0x8d4   :  { %4488 = vrcp.f32 %v1531_v25 }
 0x8d7   :  { %v1528_v26 = vpop.xlane.xlu0 %1527 }
 0x8d8   :  { %4490 = vrcp.f32 %v1528_v26 }
 0x8db   :  { %v4437_v27 = vpop.permute.xlu0 %4436 }
 0x8dc   :  { %v4439_v30 = vunpack.i.h.bf16 %v4437_v27  ;;  %v4438_v33 = vunpack.i.l.bf16 %v4437_v27 }
 0x8de   :  { %v4302_v36 = vpack.c.bf16 %v4439_v30, %v4438_v33  ;;  %v4489_v59 = vpop.eup %4488 }
 0x8df   :  { %v1535_v31 = vmul.f32 %v4489_v59, %v4485_v19 }
 0x8e0   :  { %4304 = vmatprep.subr.msk.bf16.mxu1 %vm5041_vm14, %v4302_v36 }
 0x8e1   :  { %4307 = vmatpush3.bf16.msk.msra.mxu1 %vm5041_vm14, %v4302_v36 }
 0x8e2   :  { %v4491_v61 = vpop.eup %4490  ;;  %4308 = vmatprep.subr.bf16.mxu1 %v4564_v3 }
 0x8e3   :  { %v1534_v39 = vmul.f32 %v4491_v61, %v4487_v22  ;;  %v3489_v61 = vld [vmem:[%s5661_s28] ss:$0 sm:$0xff] }
 0x8e5   :  { %3944 = vmatprep.mubr.msk.f32.mxu1 %vm882_vm1, %v1534_v39 }
 0x8e6   :  { %3945 = vmatmul.mubr.msk.f32.vlgmr.msra.gmra.mrb[16].mxu1 %vm882_vm1, %v1535_v31  ;;  %v1904_v31 = vld [vmem:[%s5630_s18] sm:$0xff] }
 0x8e7   :  { %4310 = vmatpush3.bf16.msra.mxu1 %v4309_v42  ;;  %3955 = vmatprep.mubr.msk.f32.mxu1 %vm4565_vm4, %v4566_v9 }
 0x8e8   :  { %4311 = vmatprep.subr.bf16.mxu1 %v4564_v3 }
 0x8eb   :  { %4313 = vmatpush3.bf16.msra.mxu1 %v4312_v44  ;;  %v4321_v44 = vpack.c.bf16 %v1905_v7, %v1904_v31 }
 0x8ec   :  { %4320 = vmatprep.subr.bf16.mxu1 %v4564_v3 }
 0x8ee   :  { %3956 = vmatmul.mubr.msk.f32.vlgmr.msra.gmra.mrb[18].mxu1 %vm519_vm10, %v1634_v45  ;;  %v1907_v45 = vld [vmem:[%s5630_s18 + $0x18] sm:$0xff] }
 0x8ef   :  { %3958 = vmatprep.mubr.msk.f32.mxu1 %vm4565_vm4, %v4566_v9  ;;  %4322 = vmatpush3.bf16.msra.mxu1 %v4321_v44  ;;  %v3500_v44 = vld [vmem:[%s5654_s25 + $0x20] sm:$0xff] }
 0x8f0   :  { %4323 = vmatprep.subr.bf16.mxu1 %v4564_v3 }
 0x9b9   :  { %v3946_v46 = vpop.f32.mrb[16].mxu1 }
 0x9ba   :  { %1628 = vrot.lane.b32.xlu1 %v3946_v46, %s4568_s23  ;;  %v1615_v47 = vpop.f32.mrb[17].mxu1  ;;  %v4324_v46 = vpack.c.bf16 %v1907_v45, %v1906_v43  ;;  %v3501_v45 = vld [vmem:[%s5654_s25 + $0x28] sm:$0xff] }
 0x9bb   :  { %1626 = vrot.lane.b32.xlu0 %v1615_v47, %s4568_s23  ;;  %v1908_v47 = vld [vmem:[%s5630_s18 + $0x20] sm:$0xff] }
 0x9bc   :  { %4325 = vmatpush3.bf16.msra.mxu1 %v4324_v46  ;;  %v3518_v46 = vld [vmem:[%s5622_s10 + $0x20] sm:$0xff] }
 0x9bd   :  { %4326 = vmatprep.subr.bf16.mxu1 %v4564_v3 }
 0x9c1   :  { %v1723_v50 = vpop.f32.mrb[18].mxu1 }
 0x9c2   :  { %v3957_v52 = vpop.f32.mrb[19].mxu1  ;;  %v1724_v55 = vadd.f32 %v3484_v54, %v1723_v50  ;;  %v1909_v50 = vld [vmem:[%s5630_s18 + $0x28] sm:$0xff] }
 0x9c3   :  { %v4327_v52 = vpack.c.bf16 %v1909_v50, %v1908_v47  ;;  %v4333_v47 = vpack.c.bf16 %v3501_v45, %v3500_v44  ;;  %v3519_v50 = vld [vmem:[%s5622_s10 + $0x28] sm:$0xff]  ;;  %v3523_v44 = vld [vmem:[%s5623_s11 + $0x1] ss:$0 sm:$0xff] }
 0x9c4   :  { %v1737_v56 = vadd.f32 %v1724_v55, %v4937_v62  ;;  %v1911_v55 = vld [vmem:[%s5630_s18 + $0x38] sm:$0xff] }
 0x9c5   :  { %4328 = vmatpush3.bf16.msra.mxu1 %v4327_v52  ;;  %v4345_v52 = vpack.c.bf16 %v3519_v50, %v3518_v46 }
 0x9c6   :  { %v1742_v57 = vsel %vm519_vm10, %v1737_v56, 0.0  ;;  %4329 = vmatprep.subr.bf16.mxu1 %v4564_v3 }
 0x9da   :  { %1743 = vadd.xlane.f32.xlu0 %v1742_v57 }
 0xa2c   :  { %v1629_v60 = vpop.permute.xlu1 %1628 }
 0xa2d   :  { %1633 = vst.msk [vmem:[#allocation2 + $0x11] sm:$0x1] %vm1209_vm6, %v1629_v60  ;;  %v1627_v63 = vpop.permute.xlu0 %1626 }
 0xa2e   :  { %1632 = vst.msk [vmem:[#allocation2 + $0x9] sm:$0xff] %vm1207_vm5, %v1627_v63 }
 0xa35   :  { %v1635_v0 = vld [vmem:[#allocation2 + $0x8] sm:$0xff]  ;;  %v1636_v1 = vld [vmem:[#allocation2 + $0x10] sm:$0x3] }
 0xa36   :  { %3959 = vmatmul.mubr.msk.f32.gmra.mrb[20].mxu1 %vm519_vm10, %v1635_v0 }
 0xa37   :  { %3961 = vmatprep.mubr.msk.f32.mxu1 %vm4565_vm4, %v4566_v9 }
 0xa3a   :  { %3962 = vmatmul.mubr.msk.f32.gmra.mrb[22].mxu1 %vm519_vm10, %v1636_v1 }
 0xa3b   :  { %3997 = vmatprep.mubr.msk.f32.mxu1 %vm4565_vm4, %v4566_v9 }
 0xa67   :  { %v1744_v62 = vpop.xlane.xlu0 %1743 }
 0xa68   :  { %v1753_v6 = vmul.f32 0.03125, %v1744_v62 }
 0xa6a   :  { %v1756_v10 = vsub.f32 %v1737_v56, %v1753_v6 }
 0xa6c   :  { %v1759_v20 = vmul.f32 %v1756_v10, %v1756_v10 }
 0xa6e   :  { %v1762_v53 = vsel %vm519_vm10, %v1759_v20, 0.0 }
 0xb09   :  { %v1728_v5 = vpop.f32.mrb[20].mxu1 }
 0xb0a   :  { %v1729_v34 = vadd.f32 %v3484_v54, %v1728_v5  ;;  %v3960_v35 = vpop.f32.mrb[21].mxu1 }
 0xb0c   :  { %v1738_v40 = vadd.f32 %v1729_v34, %v4945_v2  ;;  %v1801_v2 = vld [vmem:[%s5628_s16] sm:$0xff] }
 0xb0d   :  { %v1733_v8 = vpop.f32.mrb[22].mxu1  ;;  %v4315_v15 = vpack.c.bf16 %v1802_v14, %v1801_v2 }
 0xb0e   :  { %v1734_v12 = vadd.f32 %v3484_v54, %v1733_v8  ;;  %v3963_v29 = vpop.f32.mrb[23].mxu1  ;;  %v1745_v13 = vsel %vm519_vm10, %v1738_v40, 0.0  ;;  %v1910_v54 = vld [vmem:[%s5630_s18 + $0x30] sm:$0xff] }
 0xb0f   :  { %1746 = vadd.xlane.f32.xlu1 %v1745_v13  ;;  %4316 = vmatpush3.bf16.msra.mxu0 %v4315_v15  ;;  %v4330_v56 = vpack.c.bf16 %v1911_v55, %v1910_v54  ;;  %v3490_v29 = vld [vmem:[%s5629_s17] ss:$0 sm:$0xff]  ;;  %v3502_v54 = vld [vmem:[%s5654_s25 + $0x30] sm:$0xff]  ;;  %v3503_v55 = vld [vmem:[%s5654_s25 + $0x38] sm:$0xff] }
 0xb10   :  { %v1739_v48 = vadd.f32 %v1734_v12, %v4949_v4  ;;  %v1803_v4 = vld [vmem:[%s5628_s16 + $0x10] sm:$0xff]  ;;  %4317 = vmatprep.subr.bf16.mxu0 %v4564_v3 }
 0xb11   :  { %v4318_v17 = vpack.c.bf16 %v1804_v16, %v1803_v4  ;;  %4331 = vmatpush3.bf16.msra.mxu1 %v4330_v56  ;;  %v3520_v56 = vld [vmem:[%s5622_s10 + $0x30] sm:$0xff] }
 0xb12   :  { %v1749_v49 = vsel %vm1748_vm7, %v1739_v48, 0.0  ;;  %4344 = vmatprep.subr.bf16.mxu1 %v4564_v3 }
 0xb13   :  { %1750 = vadd.xlane.f32.xlu0 %v1749_v49  ;;  %4319 = vmatpush3.bf16.msra.mxu0 %v4318_v17 }
 0xb14   :  { %4332 = vmatprep.subr.bf16.mxu0 %v4564_v3 }
 0xb17   :  { %1763 = vadd.xlane.f32.xlu0 %v1762_v53 }
 0xb9c   :  { %v1747_v21 = vpop.xlane.xlu1 %1746 }
 0xb9d   :  { %v1754_v28 = vmul.f32 0.03125, %v1747_v21 }
 0xb9f   :  { %v1757_v18 = vsub.f32 %v1738_v40, %v1754_v28  ;;  %v3494_v28 = vld [vmem:[%s5631_s19] ss:$0 sm:$0xff] }
 0xba0   :  { %v1751_v19 = vpop.xlane.xlu0 %1750 }
 0xba1   :  { %v1755_v23 = vmul.f32 0.03125, %v1751_v19  ;;  %v1760_v22 = vmul.f32 %v1757_v18, %v1757_v18 }
 0xba3   :  { %v1758_v24 = vsub.f32 %v1739_v48, %v1755_v23  ;;  %v1765_v25 = vsel %vm519_vm10, %v1760_v22, 0.0 }
 0xba4   :  { %1766 = vadd.xlane.f32.xlu1 %v1765_v25  ;;  %v1764_v26 = vpop.xlane.xlu0 %1763 }
 0xba5   :  { %v1771_v27 = vmul.f32 0.03125, %v1764_v26  ;;  %v1761_v30 = vmul.f32 %v1758_v24, %v1758_v24 }
 0xba7   :  { %v1774_v33 = vadd.f32 1e-05, %v1771_v27  ;;  %v1768_v36 = vsel %vm1748_vm7, %v1761_v30, 0.0 }
 0xba8   :  { %1769 = vadd.xlane.f32.xlu0 %v1768_v36 }
 0xba9   :  { %4492 = vrsqrt.f32 %v1774_v33 }
 0xbb3   :  { %v4493_v38 = vpop.eup %4492 }
 0xbb4   :  { %v1780_v59 = vmul.f32 %v4493_v38, %v1756_v10 }
 0xbb6   :  { %v1789_v39 = vmul.f32 %v3488_v58, %v1780_v59 }
 0xbb8   :  { %v5237_v42 = vadd.f32 %v3489_v61, %v1789_v39 }
 0xbba   :  { %3973 = vmatmul.mubr.msk.f32.vlgmr.msra.gmra.mrb[26].mxu0 %vm519_vm10, %v5237_v42 }
 0xbbb   :  { %3975 = vmatprep.mubr.msk.f32.mxu0 %vm4565_vm4, %v4566_v9  ;;  %4334 = vmatpush3.bf16.msra.mxu0 %v4333_v47 }
 0xbbc   :  { %4335 = vmatprep.subr.bf16.mxu0 %v4564_v3 }
 0xc31   :  { %v1767_v57 = vpop.xlane.xlu1 %1766 }
 0xc32   :  { %v1772_v60 = vmul.f32 0.03125, %v1767_v57  ;;  %v4336_v57 = vpack.c.bf16 %v3503_v55, %v3502_v54 }
 0xc34   :  { %v1775_v63 = vadd.f32 1e-05, %v1772_v60  ;;  %v3521_v60 = vld [vmem:[%s5622_s10 + $0x38] sm:$0xff]  ;;  %4337 = vmatpush3.bf16.msra.mxu0 %v4336_v57 }
 0xc35   :  { %v1770_v0 = vpop.xlane.xlu0 %1769  ;;  %4338 = vmatprep.subr.bf16.mxu0 %v4564_v3 }
 0xc36   :  { %4494 = vrsqrt.f32 %v1775_v63  ;;  %v1773_v1 = vmul.f32 0.03125, %v1770_v0  ;;  %v4348_v63 = vpack.c.bf16 %v3521_v60, %v3520_v56 }
 0xc38   :  { %v1776_v62 = vadd.f32 1e-05, %v1773_v1 }
 0xc3a   :  { %4496 = vrsqrt.f32 %v1776_v62 }
 0xc40   :  { %v4495_v5 = vpop.eup %4494 }
 0xc41   :  { %v1781_v6 = vmul.f32 %v4495_v5, %v1757_v18 }
 0xc43   :  { %v1790_v34 = vmul.f32 %v3488_v58, %v1781_v6 }
 0xc44   :  { %v4497_v35 = vpop.eup %4496 }
 0xc45   :  { %v1799_v40 = vadd.f32 %v3489_v61, %v1790_v34  ;;  %v1782_v8 = vmul.f32 %v4497_v35, %v1758_v24 }
 0xc47   :  { %3976 = vmatmul.mubr.msk.f32.gmra.mrb[28].mxu0 %vm519_vm10, %v1799_v40  ;;  %v1791_v10 = vmul.f32 %v3488_v58, %v1782_v8 }
 0xc48   :  { %3978 = vmatprep.mubr.msk.f32.mxu0 %vm4565_vm4, %v4566_v9 }
 0xc49   :  { %v1800_v12 = vadd.f32 %v3489_v61, %v1791_v10 }
 0xc4b   :  { %3979 = vmatmul.mubr.msk.f32.gmra.mrb[30].mxu0 %vm519_vm10, %v1800_v12 }
 0xc4c   :  { %4014 = vmatprep.mubr.msk.f32.mxu0 %vm4565_vm4, %v4566_v9 }
 0xc8d   :  { %v1887_v13 = vpop.f32.mrb[26].mxu0 }
 0xc8e   :  { %v1888_v48 = vadd.f32 %v3490_v29, %v1887_v13  ;;  %v3974_v49 = vpop.f32.mrb[27].mxu0 }
 0xc8f   :  { %v3498_v49 = vld [vmem:[%s5632_s20] ss:$0 sm:$0xff] }
 0xc90   :  { %v1901_v20 = vmax.f32 %v1888_v48, 0.0 }
 0xc92   :  { %3998 = vmatmul.mubr.msk.f32.vlgmr.msra.gmra.mrb[24].mxu1 %vm1919_vm8, %v1901_v20 }
 0xc93   :  { %4000 = vmatprep.mubr.msk.f32.mxu1 %vm4565_vm4, %v4566_v9  ;;  %4346 = vmatpush3.bf16.msra.mxu1 %v4345_v52 }
 0xc94   :  { %4347 = vmatprep.subr.bf16.mxu1 %v4564_v3 }
 0xc97   :  { %4349 = vmatpush3.bf16.msra.mxu1 %v4348_v63 }
 0xc98   :  { %4354 = vmatprep.subr.bf16.mxu1 %v4564_v3 }
 0xd1a   :  { %v1892_v53 = vpop.f32.mrb[28].mxu0 }
 0xd1b   :  { %v1893_v2 = vadd.f32 %v3490_v29, %v1892_v53  ;;  %v3977_v14 = vpop.f32.mrb[29].mxu0  ;;  %v3499_v53 = vld [vmem:[%s5633_s21] ss:$0 sm:$0xff] }
 0xd1d   :  { %v1902_v15 = vmax.f32 %v1893_v2, 0.0 }
 0xd1e   :  { %v1897_v4 = vpop.f32.mrb[30].mxu0 }
 0xd1f   :  { %v1898_v16 = vadd.f32 %v3490_v29, %v1897_v4  ;;  %v3980_v17 = vpop.f32.mrb[31].mxu0  ;;  %4001 = vmatmul.mubr.msk.f32.gmra.mrb[26].mxu1 %vm1919_vm8, %v1902_v15  ;;  %v3509_v15 = vld [vmem:[%s5620_s8 + $0x20] sm:$0xff]  ;;  %v3510_v4 = vld [vmem:[%s5620_s8 + $0x28] sm:$0xff] }
 0xd20   :  { %4003 = vmatprep.mubr.msk.f32.mxu1 %vm4565_vm4, %v4566_v9  ;;  %v3511_v17 = vld [vmem:[%s5620_s8 + $0x30] sm:$0xff] }
 0xd21   :  { %v1903_v21 = vmax.f32 %v1898_v16, 0.0  ;;  %v4339_v16 = vpack.c.bf16 %v3510_v4, %v3509_v15 }
 0xd23   :  { %4004 = vmatmul.mubr.msk.f32.gmra.mrb[28].mxu1 %vm1919_vm8, %v1903_v21  ;;  %v3512_v21 = vld [vmem:[%s5620_s8 + $0x38] sm:$0xff] }
 0xd24   :  { %4048 = vmatprep.mubr.msk.f32.mxu1 %vm4565_vm4, %v4566_v9 }
 0xd65   :  { %v1995_v18 = vpop.f32.mrb[24].mxu1 }
 0xd66   :  { %v1996_v19 = vadd.f32 %v3494_v28, %v1995_v18  ;;  %v3999_v23 = vpop.f32.mrb[25].mxu1 }
 0xd68   :  { %v2009_v22 = vadd.f32 %v1996_v19, %v5237_v42 }
 0xd6a   :  { %v2014_v24 = vsel %vm519_vm10, %v2009_v22, 0.0 }
 0xd6b   :  { %2015 = vadd.xlane.f32.xlu1 %v2014_v24 }
 0xdf2   :  { %v2000_v25 = vpop.f32.mrb[26].mxu1 }
 0xdf3   :  { %v2001_v26 = vadd.f32 %v3494_v28, %v2000_v25  ;;  %v4002_v27 = vpop.f32.mrb[27].mxu1 }
 0xdf5   :  { %v2010_v30 = vadd.f32 %v2001_v26, %v1799_v40 }
 0xdf6   :  { %v2005_v33 = vpop.f32.mrb[28].mxu1 }
 0xdf7   :  { %v2006_v36 = vadd.f32 %v3494_v28, %v2005_v33  ;;  %v4005_v38 = vpop.f32.mrb[29].mxu1  ;;  %v2017_v58 = vsel %vm519_vm10, %v2010_v30, 0.0  ;;  %v4342_v28 = vpack.c.bf16 %v3512_v21, %v3511_v17 }
 0xdf8   :  { %v2016_v59 = vpop.xlane.xlu1 %2015  ;;  %2018 = vadd.xlane.f32.xlu0 %v2017_v58 }
 0xdf9   :  { %v2023_v61 = vmul.f32 0.03125, %v2016_v59  ;;  %v2011_v39 = vadd.f32 %v2006_v36, %v1800_v12 }
 0xdfb   :  { %v2026_v31 = vsub.f32 %v2009_v22, %v2023_v61  ;;  %v2020_v7 = vsel %vm1748_vm7, %v2011_v39, 0.0  ;;  %v5387_v61 = vld [vmem:[%s5619_s7 + $0x1] ss:$0 sm:$0xff]  ;;  %s4570_s7 = smov [#allocation6]  }
 0xdfc   :  { %2021 = vadd.xlane.f32.xlu1 %v2020_v7  ;;  %s3426_s11 = sshll.u32 %s4570_s7, 4  ;;  %s3427_s11 = int_to_ptr.vmem [resolvable:$true] %s3426_s11 }
 0xdfd   :  { %v2029_v42 = vmul.f32 %v2026_v31, %v2026_v31  ;;  %p4541_p6 = scmp.lt.s32.totalorder %s3427_s11, %s3427_s11 }
 0xdff   :  { %v2032_v43 = vsel %vm519_vm10, %v2029_v42, 0.0 }
 0xe00   :  { %2033 = vadd.xlane.f32.xlu0 %v2032_v43 }
 0xe85   :  { %v2019_v0 = vpop.xlane.xlu0 %2018 }
 0xe86   :  { %v2024_v1 = vmul.f32 0.03125, %v2019_v0 }
 0xe88   :  { %v2027_v62 = vsub.f32 %v2010_v30, %v2024_v1 }
 0xe89   :  { %v2022_v5 = vpop.xlane.xlu1 %2021 }
 0xe8a   :  { %v2025_v6 = vmul.f32 0.03125, %v2022_v5  ;;  %v2030_v34 = vmul.f32 %v2027_v62, %v2027_v62 }
 0xe8c   :  { %v2028_v35 = vsub.f32 %v2011_v39, %v2025_v6  ;;  %v2035_v40 = vsel %vm519_vm10, %v2030_v34, 0.0 }
 0xe8d   :  { %v2034_v8 = vpop.xlane.xlu0 %2033  ;;  %2036 = vadd.xlane.f32.xlu1 %v2035_v40 }
 0xe8e   :  { %v2041_v10 = vmul.f32 0.03125, %v2034_v8  ;;  %v2031_v12 = vmul.f32 %v2028_v35, %v2028_v35  ;;  %v3514_v8 = vld [vmem:[%s5621_s9 + $0x1] ss:$0 sm:$0xff] }
 0xe90   :  { %v2044_v29 = vadd.f32 1e-05, %v2041_v10  ;;  %v2038_v13 = vsel %vm1748_vm7, %v2031_v12, 0.0 }
 0xe91   :  { %2039 = vadd.xlane.f32.xlu0 %v2038_v13 }
 0xe92   :  { %4498 = vrsqrt.f32 %v2044_v29 }
 0xe9c   :  { %v4499_v48 = vpop.eup %4498 }
 0xe9d   :  { %v2050_v20 = vmul.f32 %v4499_v48, %v2026_v31 }
 0xe9f   :  { %v2059_v2 = vmul.f32 %v3498_v49, %v2050_v20 }
 0xea1   :  { %v5333_v14 = vadd.f32 %v3499_v53, %v2059_v2 }
 0xea3   :  { %4015 = vmatmul.mubr.msk.f32.vlgmr.msra.gmra.mrb[32].mxu0 %vm519_vm10, %v5333_v14  ;;  %4049 = vmatmul.mubr.msk.f32.vlgmr.msra.gmra.mrb[30].mxu1 %vm519_vm10, %v5333_v14 }
 0xea4   :  { %4017 = vmatprep.mubr.msk.f32.mxu0 %vm4565_vm4, %v4566_v9  ;;  %4051 = vmatprep.mubr.msk.f32.mxu1 %vm4565_vm4, %v4566_v9 }
 0xea5   :  { %4340 = vmatpush3.bf16.msra.mxu0 %v4339_v16 }
 0xea6   :  { %4341 = vmatprep.subr.bf16.mxu0 %v4564_v3 }
 0xea9   :  { %4343 = vmatpush3.bf16.msra.mxu0 %v4342_v28 }
 0xeaa   :  { %4350 = vmatprep.subr.bf16.mxu0 %v4564_v3 }
 0xf1a   :  { %v2037_v18 = vpop.xlane.xlu1 %2036 }
 0xf1b   :  { %v2042_v19 = vmul.f32 0.03125, %v2037_v18 }
 0xf1d   :  { %v2045_v23 = vadd.f32 1e-05, %v2042_v19 }
 0xf1e   :  { %v2040_v22 = vpop.xlane.xlu0 %2039 }
 0xf1f   :  { %4500 = vrsqrt.f32 %v2045_v23  ;;  %v2043_v24 = vmul.f32 0.03125, %v2040_v22 }
 0xf21   :  { %v2046_v25 = vadd.f32 1e-05, %v2043_v24 }
 0xf23   :  { %4502 = vrsqrt.f32 %v2046_v25 }
 0xf29   :  { %v4501_v26 = vpop.eup %4500 }
 0xf2a   :  { %v2051_v27 = vmul.f32 %v4501_v26, %v2027_v62 }
 0xf2c   :  { %v2060_v30 = vmul.f32 %v3498_v49, %v2051_v27 }
 0xf2d   :  { %v4503_v33 = vpop.eup %4502 }
 0xf2e   :  { %v5357_v36 = vadd.f32 %v3499_v53, %v2060_v30  ;;  %v2052_v38 = vmul.f32 %v4503_v33, %v2028_v35 }
 0xf30   :  { %4018 = vmatmul.mubr.msk.f32.gmra.mrb[34].mxu0 %vm519_vm10, %v5357_v36  ;;  %4052 = vmatmul.mubr.msk.f32.gmra.mrb[32].mxu1 %vm519_vm10, %v5357_v36  ;;  %v2061_v58 = vmul.f32 %v3498_v49, %v2052_v38 }
 0xf31   :  { %4020 = vmatprep.mubr.msk.f32.mxu0 %vm4565_vm4, %v4566_v9  ;;  %4054 = vmatprep.mubr.msk.f32.mxu1 %vm4565_vm4, %v4566_v9 }
 0xf32   :  { %v2070_v59 = vadd.f32 %v3499_v53, %v2061_v58 }
 0xf34   :  { %4021 = vmatmul.mubr.msk.f32.gmra.mrb[36].mxu0 %vm519_vm10, %v2070_v59  ;;  %4055 = vmatmul.mubr.msk.f32.gmra.mrb[34].mxu1 %vm519_vm10, %v2070_v59 }
 0xf35   :  { %4031 = vmatprep.mubr.msk.f32.mxu0 %vm4565_vm4, %v4566_v9  ;;  %4068 = vmatprep.mubr.msk.f32.mxu1 %vm4565_vm4, %v4566_v9 }
 0xf38   :  { %4032 = vmatmul.mubr.msk.f32.vlgmr.msra.gmra.mrb[38].mxu0 %vm519_vm10, %v5333_v14 }
 0xf39   :  { %4034 = vmatprep.mubr.msk.f32.mxu0 %vm4565_vm4, %v4566_v9 }
 0xf3c   :  { %4035 = vmatmul.mubr.msk.f32.gmra.mrb[40].mxu0 %vm519_vm10, %v5357_v36 }
 0xf3d   :  { %4037 = vmatprep.mubr.msk.f32.mxu0 %vm4565_vm4, %v4566_v9 }
 0xf40   :  { %4038 = vmatmul.mubr.msk.f32.gmra.mrb[42].mxu0 %vm519_vm10, %v2070_v59 }
 0xf41   :  { %4061 = vmatprep.mubr.msk.f32.mxu0 %vm4565_vm4, %v4566_v9 }
 0xf76   :  { %v2159_v39 = vpop.f32.mrb[32].mxu0  ;;  %v2344_v31 = vpop.f32.mrb[30].mxu1 }
 0xf77   :  { %v2160_v7 = vadd.f32 %v5387_v61, %v2159_v39  ;;  %v4016_v42 = vpop.f32.mrb[33].mxu0  ;;  %v4050_v43 = vpop.f32.mrb[31].mxu1  ;;  %v5396_v47 = vadd.f32 %v3523_v44, %v2344_v31 }
 0xf79   :  { %2527 = vrot.lane.b32.xlu0 %v2160_v7, %s4567_s30 }
 0xfeb   :  { %v2528_v24 = vpop.permute.xlu0 %2527 }
0x1003   :  { %v5394_v45 = vpop.f32.mrb[34].mxu0  ;;  %v2349_v46 = vpop.f32.mrb[32].mxu1 }
0x1004   :  { %v5398_v50 = vadd.f32 %v3523_v44, %v2349_v46  ;;  %v4019_v52 = vpop.f32.mrb[35].mxu0  ;;  %v4053_v54 = vpop.f32.mrb[33].mxu1 }
0x1005   :  { %v2165_v52 = vadd.f32 %v5387_v61, %v5394_v45 }
0x1006   :  { %v4355_v55 = vpack.c.bf16 %v5398_v50, %v5396_v47  ;;  %v4445_v56 = vpack.i.bf16 %v5398_v50, %v5396_v47  ;;  %v2804_v62 = vrot.slane %v5398_v50, 1 }
0x1007   :  { %v2169_v57 = vpop.f32.mrb[36].mxu0  ;;  %v2354_v60 = vpop.f32.mrb[34].mxu1 }
0x1008   :  { %v2355_v63 = vadd.f32 %v3523_v44, %v2354_v60  ;;  %v4022_v0 = vpop.f32.mrb[37].mxu0  ;;  %v4056_v1 = vpop.f32.mrb[35].mxu1  ;;  %4357 = vmatpush3.bf16.msk.msra.mxu1 %vm5041_vm14, %v4355_v55 }
0x1009   :  { %4362 = vmatprep.subr.bf16.mxu1 %v4564_v3 }
0x100a   :  { %v5408_v5 = vrot.slane %v2355_v63, 1 }
0x100b   :  { %v2251_v6 = vpop.f32.mrb[38].mxu0 }
0x100c   :  { %v5412_v34 = vsel %vm1212_vm12, %v2804_v62, %v5408_v5  ;;  %v4033_v35 = vpop.f32.mrb[39].mxu0  ;;  %v2252_v29 = vadd.f32 %v3514_v8, %v2251_v6 }
0x100d   :  { %v4371_v40 = vpack.c.bf16 %v5408_v5, %v5412_v34  ;;  %v4455_v10 = vpack.i.bf16 %v5408_v5, %v5412_v34 }
0x100f   :  { %v2256_v12 = vpop.f32.mrb[40].mxu0 }
0x1010   :  { %v2257_v13 = vadd.f32 %v3514_v8, %v2256_v12  ;;  %v4036_v48 = vpop.f32.mrb[41].mxu0 }
0x1012   :  { %v4351_v49 = vpack.c.bf16 %v2257_v13, %v2252_v29  ;;  %v4440_v20 = vpack.i.bf16 %v2257_v13, %v2252_v29  ;;  %v2711_v4 = vrot.slane %v2257_v13, 1 }
0x1013   :  { %v2261_v53 = vpop.f32.mrb[42].mxu0 }
0x1014   :  { %v2262_v2 = vadd.f32 %v3514_v8, %v2261_v53  ;;  %4441 = vrot.lane.b32.xlu1 %v4440_v20, %s4567_s30  ;;  %v4039_v15 = vpop.f32.mrb[43].mxu0  ;;  %4353 = vmatpush3.bf16.xpose.msk.msra.mxu0 %vm5020_vm13, %v4351_v49 }
0x1015   :  { %4358 = vmatprep.subr.bf16.mxu0 %v4564_v3 }
0x1016   :  { %v5425_v16 = vrot.slane %v2262_v2, 1 }
0x1018   :  { %v5429_v17 = vsel %vm1212_vm12, %v2711_v4, %v5425_v16 }
0x1019   :  { %v4367_v21 = vpack.c.bf16 %v5425_v16, %v5429_v17  ;;  %v4450_v28 = vpack.i.bf16 %v5425_v16, %v5429_v17 }
0x101b   :  { %4062 = vmatmul.mubr.msk.f32.vlgmr.msra.gmra.mrb[44].mxu0 %vm790_vm11, %v2160_v7 }
0x101c   :  { %4075 = vmatprep.mubr.msk.f32.mxu0 %vm4565_vm4, %v4566_v9 }
0x1086   :  { %v4442_v18 = vpop.permute.xlu1 %4441 }
0x1087   :  { %v4444_v19 = vunpack.i.h.bf16 %v4442_v18  ;;  %v4443_v23 = vunpack.i.l.bf16 %v4442_v18 }
0x1089   :  { %v4359_v22 = vpack.c.bf16 %v4444_v19, %v4443_v23 }
0x108b   :  { %4361 = vmatpush3.bf16.xpose.msk.msra.mxu0 %vm5020_vm13, %v4359_v22 }
0x108c   :  { %4370 = vmatprep.subr.bf16.mxu0 %v4564_v3 }
0x1092   :  { %4076 = vmatmul.mubr.msk.f32.vlgmr.msra.gmra.mrb[46].mxu0 %vm790_vm11, %v2528_v24 }
0x1093   :  { %4373 = vmatpush3.bf16.msk.msra.mxu0 %vm5041_vm14, %v4371_v40  ;;  %4096 = vmatprep.mubr.msk.f32.mxu0 %vm4565_vm4, %v4566_v9 }
0x1094   :  { %4374 = vmatprep.subr.bf16.mxu0 %v4564_v3 }
0x10ee   :  { %v2433_v25 = vpop.f32.mrb[44].mxu0 }
0x10ef   :  { %v2437_v26 = vmul.f32 0.25, %v2433_v25  ;;  %v4063_v27 = vpop.f32.mrb[45].mxu0 }
0x10f1   :  { %v2438_v30 = vadd.f32 %v2437_v26, %v5080_v11 }
0x10f3   :  { %v2439_v33 = vsel %vm886_vm0, %v2438_v30, -inf }
0x10f4   :  { %2440 = vmax.xlane.f32.xlu1 %v2439_v33 }
0x1165   :  { %v2605_v38 = vpop.f32.mrb[46].mxu0 }
0x1166   :  { %v2609_v58 = vmul.f32 0.25, %v2605_v38  ;;  %v4077_v59 = vpop.f32.mrb[47].mxu0 }
0x1168   :  { %v2610_v39 = vadd.f32 %v2609_v58, %v5080_v11  ;;  %v2709_v11 = vrot.slane %v2165_v52, 1 }
0x116a   :  { %v2611_v31 = vsel %vm886_vm0, %v2610_v39, -inf }
0x116b   :  { %2612 = vmax.xlane.f32.xlu0 %v2611_v31 }
0x1181   :  { %v2441_v7 = vpop.xlane.xlu1 %2440 }
0x1182   :  { %v2442_v42 = vsub.f32 %v2438_v30, %v2441_v7 }
0x1184   :  { %v2443_v43 = vmul.f32 1.442695, %v2442_v42 }
0x1186   :  { %4504 = vpow2.f32 %v2443_v43 }
0x1190   :  { %v4505_v44 = vpop.eup %4504 }
0x1191   :  { %v2445_v46 = vsel %vm886_vm0, %v4505_v44, 0.0 }
0x1192   :  { %2446 = vadd.xlane.f32.xlu1 %v2445_v46 }
0x11a3   :  { %4446 = vrot.lane.b32.xlu1 %v4445_v56, %s4567_s30 }
0x11a7   :  { %2884 = vrot.lane.b32.xlu1 %v2709_v11, %s4567_s30 }
0x11f8   :  { %v2613_v54 = vpop.xlane.xlu0 %2612 }
0x11f9   :  { %v2614_v55 = vsub.f32 %v2610_v39, %v2613_v54 }
0x11fb   :  { %v2615_v57 = vmul.f32 1.442695, %v2614_v55  ;;  %v3549_v55 = vld [vmem:[%s5624_s12 + $0x30] sm:$0xff] }
0x11fd   :  { %4506 = vpow2.f32 %v2615_v57  ;;  %v3550_v57 = vld [vmem:[%s5624_s12 + $0x38] sm:$0xff] }
0x1207   :  { %v4507_v60 = vpop.eup %4506 }
0x1208   :  { %v2617_v63 = vsel %vm886_vm0, %v4507_v60, 0.0 }
0x1209   :  { %2618 = vadd.xlane.f32.xlu0 %v2617_v63 }
0x121f   :  { %v2447_v0 = vpop.xlane.xlu1 %2446 }
0x1220   :  { %4508 = vrcp.f32 %v2447_v0 }
0x1223   :  { %v4447_v1 = vpop.permute.xlu1 %4446 }
0x1224   :  { %v4449_v61 = vunpack.i.h.bf16 %v4447_v1  ;;  %v4448_v45 = vunpack.i.l.bf16 %v4447_v1 }
0x1226   :  { %v4363_v47 = vpack.c.bf16 %v4449_v61, %v4448_v45  ;;  %v3552_v45 = vld [vmem:[%s5625_s13 + $0x1] ss:$0 sm:$0xff] }
0x1227   :  { %v2885_v16 = vpop.permute.xlu1 %2884 }
0x122a   :  { %v4509_v62 = vpop.eup %4508 }
0x122b   :  { %v2449_v6 = vmul.f32 %v4509_v62, %v4505_v44 }
0x122d   :  { %4069 = vmatmul.mubr.msk.f32.vlgmr.msra.gmra.mrb[36].mxu1 %vm882_vm1, %v2449_v6 }
0x122e   :  { %4365 = vmatpush3.bf16.msk.msra.mxu1 %vm5041_vm14, %v4363_v47  ;;  %4082 = vmatprep.mubr.msk.f32.mxu1 %vm4565_vm4, %v4566_v9 }
0x122f   :  { %4366 = vmatprep.subr.bf16.mxu1 %v4564_v3 }
0x1296   :  { %v2619_v50 = vpop.xlane.xlu0 %2618 }
0x1297   :  { %4510 = vrcp.f32 %v2619_v50  ;;  %v3151_v50 = vsel %vm473_vm9, %v5333_v14, %v5357_v36  ;;  %v3560_v36 = vld [vmem:[%s5628_s16 + $0x30] sm:$0xff] }
0x12a1   :  { %v4511_v56 = vpop.eup %4510 }
0x12a2   :  { %v2621_v35 = vmul.f32 %v4511_v56, %v4507_v60  ;;  %v4386_v60 = vpack.c.bf16 %v3550_v57, %v3549_v55 }
0x12a4   :  { %4083 = vmatmul.mubr.msk.f32.vlgmr.msra.gmra.mrb[38].mxu1 %vm882_vm1, %v2621_v35 }
0x12a5   :  { %4369 = vmatpush3.bf16.xpose.msk.msra.mxu1 %vm5020_vm13, %v4367_v21  ;;  %4089 = vmatprep.mubr.msk.f32.mxu1 %vm4565_vm4, %v4566_v9 }
0x12a6   :  { %4378 = vmatprep.subr.bf16.mxu1 %v4564_v3 }
0x12ac   :  { %4090 = vmatmul.mubr.msk.f32.vlgmr.msra.gmra.mrb[40].mxu1 %vm790_vm11, %v2709_v11  ;;  %v3548_v11 = vld [vmem:[%s5624_s12 + $0x28] sm:$0xff] }
0x12ad   :  { %4110 = vmatprep.mubr.msk.f32.mxu1 %vm4565_vm4, %v4566_v9  ;;  %v4383_v54 = vpack.c.bf16 %v3548_v11, %v3547_v51 }
0x1300   :  { %v2522_v40 = vpop.f32.mrb[36].mxu1 }
0x1301   :  { %2526 = vst.msk [vmem:[#allocation3] sm:$0x1] %vm991_vm2, %v2522_v40  ;;  %v4070_v8 = vpop.f32.mrb[37].mxu1 }
0x1377   :  { %v2699_v12 = vpop.f32.mrb[38].mxu1 }
0x1378   :  { %v4084_v29 = vpop.f32.mrb[39].mxu1 }
0x137f   :  { %v2786_v13 = vpop.f32.mrb[40].mxu1 }
0x1380   :  { %v2790_v48 = vmul.f32 0.25, %v2786_v13  ;;  %v4091_v49 = vpop.f32.mrb[41].mxu1  ;;  %v3558_v13 = vld [vmem:[%s5628_s16 + $0x20] sm:$0xff] }
0x1381   :  { %v3561_v49 = vld [vmem:[%s5628_s16 + $0x38] sm:$0xff] }
0x1382   :  { %v2791_v20 = vadd.f32 %v2790_v48, %v5128_v37  ;;  %v3559_v48 = vld [vmem:[%s5628_s16 + $0x28] sm:$0xff] }
0x1383   :  { %v4389_v14 = vpack.c.bf16 %v3559_v48, %v3558_v13 }
0x1384   :  { %v2792_v53 = vsel %vm886_vm0, %v2791_v20, -inf }
0x1385   :  { %2793 = vmax.xlane.f32.xlu0 %v2792_v53  ;;  %v3565_v53 = vld [vmem:[%s5630_s18 + $0x40] sm:$0xff] }
0x1412   :  { %v2794_v2 = vpop.xlane.xlu0 %2793 }
0x1413   :  { %v2795_v15 = vsub.f32 %v2791_v20, %v2794_v2  ;;  %v4392_v20 = vpack.c.bf16 %v3561_v49, %v3560_v36  ;;  %v3566_v2 = vld [vmem:[%s5630_s18 + $0x48] sm:$0xff] }
0x1415   :  { %v2796_v4 = vmul.f32 1.442695, %v2795_v15  ;;  %v3567_v15 = vld [vmem:[%s5630_s18 + $0x50] sm:$0xff] }
0x1417   :  { %4512 = vpow2.f32 %v2796_v4  ;;  %v4395_v4 = vpack.c.bf16 %v3566_v2, %v3565_v53 }
0x1421   :  { %v4513_v21 = vpop.eup %4512 }
0x1422   :  { %v2798_v18 = vsel %vm886_vm0, %v4513_v21, 0.0 }
0x1423   :  { %2799 = vadd.xlane.f32.xlu0 %v2798_v18 }
0x1439   :  { %4451 = vrot.lane.b32.xlu0 %v4450_v28, %s4567_s30 }
0x14b0   :  { %v2800_v19 = vpop.xlane.xlu0 %2799 }
0x14b1   :  { %4514 = vrcp.f32 %v2800_v19  ;;  %v3569_v19 = vld [vmem:[%s5630_s18 + $0x60] sm:$0xff] }
0x14b4   :  { %v4452_v23 = vpop.permute.xlu0 %4451 }
0x14b5   :  { %v4454_v22 = vunpack.i.h.bf16 %v4452_v23  ;;  %v4453_v24 = vunpack.i.l.bf16 %v4452_v23  ;;  %v3570_v23 = vld [vmem:[%s5630_s18 + $0x68] sm:$0xff] }
0x14b7   :  { %v4375_v27 = vpack.c.bf16 %v4454_v22, %v4453_v24  ;;  %v4401_v22 = vpack.c.bf16 %v3570_v23, %v3569_v19 }
0x14bb   :  { %v4515_v25 = vpop.eup %4514 }
0x14bc   :  { %v2802_v26 = vmul.f32 %v4515_v25, %v4513_v21  ;;  %v3568_v21 = vld [vmem:[%s5630_s18 + $0x58] sm:$0xff] }
0x14bd   :  { %v4398_v18 = vpack.c.bf16 %v3568_v21, %v3567_v15 }
0x14be   :  { %4097 = vmatmul.mubr.msk.f32.vlgmr.msra.gmra.mrb[48].mxu0 %vm882_vm1, %v2802_v26 }
0x14bf   :  { %4377 = vmatpush3.bf16.xpose.msk.msra.mxu0 %vm5020_vm13, %v4375_v27  ;;  %4103 = vmatprep.mubr.msk.f32.mxu0 %vm4565_vm4, %v4566_v9 }
0x14c0   :  { %4388 = vmatprep.subr.bf16.mxu0 %v4564_v3 }
0x14c6   :  { %4104 = vmatmul.mubr.msk.f32.vlgmr.msra.gmra.mrb[50].mxu0 %vm790_vm11, %v2885_v16  ;;  %v3556_v16 = vld [vmem:[%s5626_s14 + $0x1] ss:$0 sm:$0xff] }
0x14c7   :  { %4132 = vmatprep.mubr.msk.f32.mxu0 %vm4565_vm4, %v4566_v9  ;;  %4390 = vmatpush3.bf16.msra.mxu0 %v4389_v14 }
0x14c8   :  { %4391 = vmatprep.subr.bf16.mxu0 %v4564_v3 }
0x14cb   :  { %4393 = vmatpush3.bf16.msra.mxu0 %v4392_v20 }
0x1591   :  { %v2879_v17 = vpop.f32.mrb[48].mxu0 }
0x1592   :  { %2883 = vst.msk [vmem:[#allocation3 + $0x1] sm:$0x1] %vm991_vm2, %v2879_v17  ;;  %v4098_v28 = vpop.f32.mrb[49].mxu0 }
0x1593   :  { %v3557_v28 = vld [vmem:[%s5661_s28 + $0x1] ss:$0 sm:$0xff] }
0x1599   :  { %v2962_v30 = vpop.f32.mrb[50].mxu0 }
0x159a   :  { %v2966_v33 = vmul.f32 0.25, %v2962_v30  ;;  %v4105_v38 = vpop.f32.mrb[51].mxu0 }
0x159b   :  { %v3572_v38 = vld [vmem:[%s5630_s18 + $0x78] sm:$0xff] }
0x159c   :  { %v2967_v41 = vadd.f32 %v2966_v33, %v5128_v37 }
0x159e   :  { %v2968_v58 = vsel %vm886_vm0, %v2967_v41, -inf }
0x159f   :  { %2969 = vmax.xlane.f32.xlu1 %v2968_v58  ;;  %v3563_v58 = vld [vmem:[%s5629_s17 + $0x1] ss:$0 sm:$0xff] }
0x15b0   :  { %4456 = vrot.lane.b32.xlu1 %v4455_v10, %s4567_s30 }
0x162c   :  { %v2970_v59 = vpop.xlane.xlu1 %2969 }
0x162d   :  { %v2971_v39 = vsub.f32 %v2967_v41, %v2970_v59 }
0x162f   :  { %v2972_v31 = vmul.f32 1.442695, %v2971_v39 }
0x1630   :  { %v4457_v7 = vpop.permute.xlu1 %4456 }
0x1631   :  { %4516 = vpow2.f32 %v2972_v31  ;;  %v4459_v42 = vunpack.i.h.bf16 %v4457_v7  ;;  %v4458_v43 = vunpack.i.l.bf16 %v4457_v7 }
0x1633   :  { %v4379_v44 = vpack.c.bf16 %v4459_v42, %v4458_v43  ;;  %v3574_v42 = vld [vmem:[%s5631_s19 + $0x1] ss:$0 sm:$0xff] }
0x1635   :  { %4381 = vmatpush3.bf16.msk.msra.mxu1 %vm5041_vm14, %v4379_v44 }
0x1636   :  { %4382 = vmatprep.subr.bf16.mxu1 %v4564_v3 }
0x163b   :  { %v4517_v37 = vpop.eup %4516 }
0x163c   :  { %v2974_v46 = vsel %vm886_vm0, %v4517_v37, 0.0 }
0x163d   :  { %2975 = vadd.xlane.f32.xlu0 %v2974_v46 }
0x1653   :  { %2704 = vrot.lane.b32.xlu0 %v2699_v12, %s4568_s23 }
0x16ca   :  { %v2976_v5 = vpop.xlane.xlu0 %2975 }
0x16cb   :  { %4518 = vrcp.f32 %v2976_v5 }
0x16ce   :  { %v2705_v34 = vpop.permute.xlu0 %2704 }
0x16cf   :  { %2707 = vst.msk [vmem:[#allocation3] sm:$0x1] %vm1209_vm6, %v2705_v34 }
0x16d5   :  { %v4519_v10 = vpop.eup %4518 }
0x16d6   :  { %v2978_v52 = vmul.f32 %v4519_v10, %v4517_v37 }
0x16d8   :  { %4111 = vmatmul.mubr.msk.f32.vlgmr.msra.gmra.mrb[42].mxu1 %vm882_vm1, %v2978_v52 }
0x16d9   :  { %4121 = vmatprep.mubr.msk.f32.mxu1 %vm4565_vm4, %v4566_v9  ;;  %4384 = vmatpush3.bf16.msra.mxu1 %v4383_v54 }
0x16da   :  { %4385 = vmatprep.subr.bf16.mxu1 %v4564_v3 }
0x16dd   :  { %4387 = vmatpush3.bf16.msra.mxu1 %v4386_v60  ;;  %v4569_v60 = vmov 1966171168  }
0x16de   :  { %4394 = vmatprep.subr.bf16.mxu1 %v4564_v3 }
0x17ab   :  { %v3055_v63 = vpop.f32.mrb[42].mxu1 }
0x17ac   :  { %3060 = vrot.lane.b32.xlu1 %v3055_v63, %s4568_s23  ;;  %v4112_v0 = vpop.f32.mrb[43].mxu1  ;;  %v3395_v63 = vunpack.c.l.s4 %v4569_v60 }
0x17ae   :  { %v3396_v0 = vunpack.c.0.s8 %v3395_v63 }
0x181e   :  { %v3061_v1 = vpop.permute.xlu1 %3060 }
0x181f   :  { %3063 = vst.msk [vmem:[#allocation3 + $0x1] sm:$0x1] %vm1209_vm6, %v3061_v1 }
0x1826   :  { %v3064_v61 = vld [vmem:[#allocation3] sm:$0x3] }
0x1827   :  { %4122 = vmatmul.mubr.msk.f32.vlgmr.msra.gmra.mrb[44].mxu1 %vm519_vm10, %v3064_v61  ;;  %v3578_v61 = vld [vmem:[%s5632_s20 + $0x1] ss:$0 sm:$0xff]  ;;  %s4536_s20 = scalar_lea.vmem %s3427_s11, 32 }
0x1828   :  { %4151 = vmatprep.mubr.msk.f32.mxu1 %vm4565_vm4, %v4566_v9  ;;  %4396 = vmatpush3.bf16.msra.mxu1 %v4395_v4  ;;  %vm3418_vm4 = vcmask 253952   ;;  %p4537_p5 = scmp.ne.s32.totalorder %s3427_s11, %s4536_s20  ;;  %p4542_p7 = scmp.lt.s32.totalorder %s4536_s20, %s4536_s20 }
0x1829   :  { %4397 = vmatprep.subr.bf16.mxu1 %v4564_v3 }
0x182a   :  { %p4543_p8 = por %p4542_p7, %p4541_p6 }
0x182c   :  { %4399 = vmatpush3.bf16.msra.mxu1 %v4398_v18  ;;  %p4544_p9 = pnand %p4543_p8, %p4537_p5 }
0x182d   :  { %4400 = vmatprep.subr.bf16.mxu1 %v4564_v3 }
0x1830   :  { %4402 = vmatpush3.bf16.msra.mxu1 %v4401_v22 }
0x1831   :  { %4403 = vmatprep.subr.bf16.mxu1 %v4564_v3  ;;  %v3571_v3 = vld [vmem:[%s5630_s18 + $0x70] sm:$0xff] }
0x1832   :  { %v4404_v41 = vpack.c.bf16 %v3572_v38, %v3571_v3 }
0x1834   :  { %4405 = vmatpush3.bf16.msra.mxu1 %v4404_v41 }
0x18fa   :  { %v3147_v62 = vpop.f32.mrb[44].mxu1 }
0x18fb   :  { %v3148_v6 = vadd.f32 %v3552_v45, %v3147_v62  ;;  %v4123_v47 = vpop.f32.mrb[45].mxu1  ;;  %v3579_v62 = vld [vmem:[%s5633_s21 + $0x1] ss:$0 sm:$0xff] }
0x18fc   :  { %v3399_v47 = vsub.s32 %v3396_v0, %v4776_v32 }
0x18fd   :  { %v3152_v56 = vadd.f32 %v3151_v50, %v3148_v6 }
0x18ff   :  { %v3157_v35 = vsel %vm1748_vm7, %v3152_v56, 0.0 }
0x1900   :  { %3158 = vadd.xlane.f32.xlu1 %v3157_v35 }
0x198d   :  { %v3159_v40 = vpop.xlane.xlu1 %3158 }
0x198e   :  { %v3160_v8 = vmul.f32 0.03125, %v3159_v40 }
0x1990   :  { %v3161_v12 = vsub.f32 %v3152_v56, %v3160_v8 }
0x1992   :  { %v3162_v29 = vmul.f32 %v3161_v12, %v3161_v12 }
0x1994   :  { %v3163_v9 = vsel %vm1748_vm7, %v3162_v29, 0.0 }
0x1995   :  { %3164 = vadd.xlane.f32.xlu0 %v3163_v9 }
0x1a22   :  { %v3165_v24 = vpop.xlane.xlu0 %3164 }
0x1a23   :  { %v3166_v25 = vmul.f32 0.03125, %v3165_v24 }
0x1a25   :  { %v3167_v26 = vadd.f32 1e-05, %v3166_v25 }
0x1a27   :  { %4520 = vrsqrt.f32 %v3167_v26 }
0x1a31   :  { %v4521_v27 = vpop.eup %4520 }
0x1a32   :  { %v3169_v17 = vmul.f32 %v4521_v27, %v3161_v12 }
0x1a34   :  { %v3176_v30 = vmul.f32 %v3556_v16, %v3169_v17 }
0x1a36   :  { %v3183_v33 = vadd.f32 %v3557_v28, %v3176_v30 }
0x1a38   :  { %4133 = vmatmul.mubr.msk.f32.vlgmr.msra.gmra.mrb[52].mxu0 %vm519_vm10, %v3183_v33 }
0x1b0b   :  { %v3266_v59 = vpop.f32.mrb[52].mxu0 }
0x1b0c   :  { %v3267_v39 = vadd.f32 %v3563_v58, %v3266_v59  ;;  %v4134_v31 = vpop.f32.mrb[53].mxu0 }
0x1b0e   :  { %v3270_v7 = vmax.f32 %v3267_v39, 0.0 }
0x1b10   :  { %4152 = vmatmul.mubr.msk.f32.vlgmr.msra.gmra.mrb[46].mxu1 %vm1919_vm8, %v3270_v7 }
0x1be3   :  { %v3357_v43 = vpop.f32.mrb[46].mxu1 }
0x1be4   :  { %v3358_v44 = vadd.f32 %v3574_v42, %v3357_v43  ;;  %v4153_v37 = vpop.f32.mrb[47].mxu1 }
0x1be6   :  { %v3361_v46 = vadd.f32 %v3358_v44, %v3183_v33 }
0x1be8   :  { %v3366_v5 = vsel %vm1748_vm7, %v3361_v46, 0.0 }
0x1be9   :  { %3367 = vadd.xlane.f32.xlu1 %v3366_v5 }
0x1c76   :  { %v3368_v34 = vpop.xlane.xlu1 %3367 }
0x1c77   :  { %v3369_v10 = vmul.f32 0.03125, %v3368_v34 }
0x1c79   :  { %v3370_v52 = vsub.f32 %v3361_v46, %v3369_v10 }
0x1c7b   :  { %v3371_v51 = vmul.f32 %v3370_v52, %v3370_v52 }
0x1c7d   :  { %v3372_v11 = vsel %vm1748_vm7, %v3371_v51, 0.0 }
0x1c7e   :  { %3373 = vadd.xlane.f32.xlu0 %v3372_v11 }
0x1d0b   :  { %v3374_v54 = vpop.xlane.xlu0 %3373 }
0x1d0c   :  { %v3375_v55 = vmul.f32 0.03125, %v3374_v54 }
0x1d0e   :  { %v3376_v57 = vadd.f32 1e-05, %v3375_v55 }
0x1d10   :  { %4522 = vrsqrt.f32 %v3376_v57 }
0x1d1a   :  { %v4523_v1 = vpop.eup %4522 }
0x1d1b   :  { %v3378_v45 = vmul.f32 %v4523_v1, %v3370_v52 }
0x1d1d   :  { %v3385_v6 = vmul.f32 %v3578_v61, %v3378_v45 }
0x1d1f   :  { %v3392_v50 = vadd.f32 %v3579_v62, %v3385_v6 }
0x1d21   :  { %v3400_v56 = vrot.slane %v3392_v50, %v3399_v47 }
0x1d23   :  { %v3401_v35 = vcombine.high %v3400_v56, %v3400_v56  ;;  %v3408_v40 = vrot.slane %v3400_v56, %v3399_v47 }
0x1d25   :  { %v3415_v8 = vrot.slane %v3401_v35, %v3399_v47  ;;  %3419 = vst.msk [vmem:[#allocation6] sm:$0x1] %vm3418_vm4, %v3408_v40 }
0x1d27   :  { %3420 = vst.msk [vmem:[#allocation6 + $0x1] sm:$0x1] %vm3418_vm4, %v3415_v8 }
0x1d28   :  { %4547 = shalt.err (!%p4544_p9)
}
0x1d29   :  { %s4548_s30 = scalar_lea.hbm %s5634_s22, 32 }
0x1d2a   :  { %p4549_p10 = scmp.ne.s32.totalorder %s5634_s22, %s4548_s30  ;;  %p4552_p11 = scmp.lt.u32.totalorder %s4548_s30, %s5634_s22 }
0x1d2c   :  { %p4554_p12 = pnand %p4552_p11, %p4549_p10 }
0x1d2e   :  { %4557 = shalt.err (!%p4554_p12)
}
0x1d2f   :  { %s4571_s0 = smov 1  }
0x1d30   :  { %3432 = dma.vmem_to_hbm [thread:$0]  %s3427_s11, 32, %s5634_s22, [#allocation7], %s4568_s23, %s4568_s23, %s4571_s0  }
0x1d31   :  { %4560 = dma.done.wait [#allocation7], 32  }
0x1d32   :  { %4561 = vsyncadd [#allocation7], 4294967264 }
0x1d33   :  { %3436 = vsyncpa [#allocation7], 1 }

</bundles_post_ra>
